<compile_context>
chip_gen: v7x
topology: tpu7x:2x2x1
jax: 0.10.0
libtpu: 0.0.40
codegen_flags: <defaults>
</compile_context>

<pallas_src>
import functools

import jax
import jax.numpy as jnp
from jax.experimental import pallas as pl
from jax.experimental.pallas import tpu as pltpu

_EPS = 1e-5
_NEG_SLOPE = 0.2
_COMPUTE_DTYPE = jnp.bfloat16      # MXU input dtype; accumulation stays f32
_NB_MAX = 128                      # images per grid step (batch tile)
_VMEM_LIMIT = 32 * 1024 * 1024     # safe on v5e/v6e (128 MiB) and v7x (64 MiB)


def _leaky(x):
    return jnp.where(x > 0, x, _NEG_SLOPE * x)


# ----------------------------------------------------------------------------
# Pallas kernels
# ----------------------------------------------------------------------------
def _conv_tap_kernel(zw_ref, w_ref, y_ref, *stats_refs, nb, ho_wo, n_real, act):
    """Fused 4x4/stride-2 conv: two batched MXU matmuls over pre-sliced tap
    windows, optional LeakyReLU epilogue and optional partial BN statistics.

      zw_ref : (2, nb*Ho*Wo, 8*Cin)  tap windows   (compute dtype)
      w_ref  : (2, 8*Cin, Cout)      tap weights   (compute dtype)
      y_ref  : (nb*Ho*Wo, Cout)      conv output (activated only for layer 1)
      stats  : (1, 8, 2*Cout) f32    per-step [sum | sum_sq] over valid images
    """
    acc = jnp.dot(zw_ref[0], w_ref[0], preferred_element_type=jnp.float32)
    acc = acc + jnp.dot(zw_ref[1], w_ref[1], preferred_element_type=jnp.float32)
    if act == "leaky":
        acc = _leaky(acc)
    y_ref[...] = acc.astype(y_ref.dtype)

    if stats_refs:
        cout = acc.shape[-1]
        step = pl.program_id(0)
        # Rows belonging to batch-padding images are masked out of the stats.
        n_valid_rows = jnp.minimum(jnp.maximum(n_real - step * nb, 0), nb) * ho_wo
        row = jax.lax.broadcasted_iota(jnp.int32, acc.shape, 0)
        valid = (row < n_valid_rows).astype(jnp.float32)
        am = acc * valid
        s1 = jnp.sum(am, axis=0, keepdims=True)          # (1, Cout)
        s2 = jnp.sum(am * acc, axis=0, keepdims=True)    # (1, Cout)
        packed = jnp.concatenate([s1, s2], axis=-1)      # (1, 2*Cout) lane-dense
        stats_refs[0][...] = jnp.broadcast_to(packed[:, None, :], (1, 8, 2 * cout))


# ----------------------------------------------------------------------------
# Wrappers
# ----------------------------------------------------------------------------
def _fold_s2d_taps(x, dtype):
    """(N, H, W, C) -> (2, N*Ho*Wo, 8C) pre-sliced tap windows.

    Pad by 1, fold the 2x2 spatial parity into channels (space-to-depth),
    pre-bake the 2-wide column window and pre-slice the two row-tap windows so
    the 4x4/s2/p1 conv becomes two aligned batched matmuls inside the kernel.
    """
    # TODO(synk): this pad/reshape/slice glue (and the per-layer BN scale/shift
    # + LeakyReLU folded into it) stays as thin XLA ops over the bf16
    # activation; it has no clean single-Pallas-kernel equivalent here.
    x = x.astype(dtype)
    n, h, w, c = x.shape
    ho, wo = h // 2, w // 2
    xp = jnp.pad(x, ((0, 0), (1, 1), (1, 1), (0, 0)))
    z = xp.reshape(n, ho + 1, 2, wo + 1, 2, c)
    z = jnp.transpose(z, (0, 1, 3, 2, 4, 5)).reshape(n, ho + 1, wo + 1, 4 * c)
    zw = jnp.concatenate([z[:, :, :wo, :], z[:, :, 1:, :]], axis=-1)  # (n,ho+1,wo,8c)
    tap0 = zw[:, :ho, :, :].reshape(n * ho * wo, 8 * c)
    tap1 = zw[:, 1:, :, :].reshape(n * ho * wo, 8 * c)
    return jnp.stack([tap0, tap1], axis=0)               # (2, n*ho*wo, 8c)


def conv4x4_s2(x, w_taps, *, act, with_stats, nb, n_real):
    """x: (Npad, H, W, Cin).  Returns (y, stats):
         y     : (Npad*Ho*Wo, Cout) compute dtype
         stats : (steps, 8, 2*Cout) f32 partial [sum | sum_sq] or None."""
    n_pad, h, w, cin = x.shape
    ho, wo = h // 2, w // 2
    n_taps, k8, cout = w_taps.shape
    assert n_taps == 2 and k8 == 8 * cin and n_pad % nb == 0
    zw = _fold_s2d_taps(x, _COMPUTE_DTYPE)               # (2, Npad*Ho*Wo, 8Cin)
    steps = n_pad // nb
    m_blk = nb * ho * wo

    kernel = functools.partial(_conv_tap_kernel, nb=nb, ho_wo=ho * wo,
                               n_real=n_real, act=act)
    in_specs = [
        pl.BlockSpec((2, m_blk, k8), lambda i: (0, i, 0)),
        pl.BlockSpec((2, k8, cout), lambda i: (0, 0, 0)),
    ]
    out_shape = [jax.ShapeDtypeStruct((n_pad * ho * wo, cout), _COMPUTE_DTYPE)]
    out_specs = [pl.BlockSpec((m_blk, cout), lambda i: (i, 0))]
    if with_stats:
        out_shape.append(jax.ShapeDtypeStruct((steps, 8, 2 * cout), jnp.float32))
        out_specs.append(pl.BlockSpec((1, 8, 2 * cout), lambda i: (i, 0, 0)))

    res = pl.pallas_call(
        kernel,
        out_shape=tuple(out_shape),
        grid=(steps,),
        in_specs=in_specs,
        out_specs=tuple(out_specs),
        compiler_params=pltpu.CompilerParams(
            dimension_semantics=("parallel",),
            vmem_limit_bytes=_VMEM_LIMIT,
        ),
    )(zw, w_taps)
    if with_stats:
        return res[0], res[1]
    return res[0], None


# ----------------------------------------------------------------------------
# Full forward pass
# ----------------------------------------------------------------------------
def discriminative_forward(x_nchw, params):
    x = jnp.transpose(x_nchw, (0, 2, 3, 1)).astype(jnp.float32)   # NHWC
    n_real = x.shape[0]
    # nb: big batch tile (small per-step overhead, large MXU M), but keep >= 2
    # grid steps for large batches so v7x's two TensorCores both get work, and
    # keep nb even so the layer-4 M block (nb*4) stays sublane-aligned.
    nb = max(1, min(_NB_MAX, -(-n_real // 2)))
    if nb % 2:
        nb += 1
    n_pad = -(-n_real // nb) * nb
    if n_pad != n_real:
        x = jnp.pad(x, ((0, n_pad - n_real), (0, 0), (0, 0), (0, 0)))

    # Layer 1: Conv(3->32,4,2,1) + LeakyReLU (fused kernel epilogue, no BN).
    ho, wo = x.shape[1] // 2, x.shape[2] // 2
    y, _ = conv4x4_s2(x, params["w1"], act="leaky", with_stats=False,
                      nb=nb, n_real=n_real)
    x = y.reshape(n_pad, ho, wo, -1)                      # bf16

    # Layers 2-4: Conv (+ fused partial BN stats) -> BN (batch stats) + LeakyReLU.
    for name in ("w2", "w3", "w4"):
        ho, wo = x.shape[1] // 2, x.shape[2] // 2
        y, stats = conv4x4_s2(x, params[name], act=None, with_stats=True,
                              nb=nb, n_real=n_real)
        cout = params[name].shape[-1]
        s = jnp.sum(stats[:, 0, :], axis=0)               # (2*Cout,), tiny
        m = float(n_real * ho * wo)
        mean = s[:cout] / m
        var = s[cout:] / m - mean * mean                  # biased var (PyTorch BN)
        scale = jax.lax.rsqrt(var + _EPS)                 # gamma = 1
        shift = -mean * scale                             # beta  = 0
        # BN scale/shift + LeakyReLU: f32 register math, bf16 result; XLA fuses
        # it into the next layer's fold glue (no f32 activation HBM round trip).
        yf = y.reshape(n_pad, ho, wo, cout)
        x = _leaky(yf.astype(jnp.float32) * scale + shift).astype(_COMPUTE_DTYPE)

    # Layer 5: Conv(256->1,2,1,0) over a 2x2 map + Sigmoid == (Npad,1024)x(1024,1)
    # dot; left to XLA and fused with the layer-4 glue (an N=1 MXU matmul in its
    # own pallas_call is pure launch/DMA overhead on every TPU generation).
    x_flat = x.reshape(n_pad, -1)
    logits = jnp.dot(x_flat, params["w5"], preferred_element_type=jnp.float32)
    out = jax.nn.sigmoid(logits)
    return out[:n_real].reshape(n_real, 1, 1, 1)          # NCHW


# ----------------------------------------------------------------------------
# Parameters
# ----------------------------------------------------------------------------
def _conv_weight_to_taps(w):
    """PyTorch conv weight (Cout, Cin, 4, 4) -> tap weights (2, 8*Cin, Cout)
    matching the folded-input channel layout (dwf, py, px, cin)."""
    cout, cin, kh, kw = w.shape
    assert kh == 4 and kw == 4
    wr = jnp.transpose(w, (2, 3, 1, 0))             # (kh, kw, Cin, Cout)
    wr = wr.reshape(2, 2, 2, 2, cin, cout)          # (dhf, py, dwf, px, Cin, Cout)
    wr = jnp.transpose(wr, (0, 2, 1, 3, 4, 5))      # (dhf, dwf, py, px, Cin, Cout)
    return wr.reshape(2, 8 * cin, cout)


def init_params(key):
    """DCGAN-style init (weights ~ N(0, 0.02)); conv weights are rearranged into
    the tap layout and pre-cast to the MXU compute dtype ONCE here (not per call)."""
    shapes = {
        "w1": (32, 3, 4, 4),
        "w2": (64, 32, 4, 4),
        "w3": (128, 64, 4, 4),
        "w4": (256, 128, 4, 4),
        "w5": (1, 256, 2, 2),
    }
    raw = {}
    for name, shape in shapes.items():
        key, sub = jax.random.split(key)
        raw[name] = 0.02 * jax.random.normal(sub, shape, dtype=jnp.float32)
    params = {n: _conv_weight_to_taps(raw[n]).astype(_COMPUTE_DTYPE)
              for n in ("w1", "w2", "w3", "w4")}
    params["w5"] = (jnp.transpose(raw["w5"], (2, 3, 1, 0))
                    .reshape(-1, 1).astype(_COMPUTE_DTYPE))
    return params, raw


def _reference_forward(x_nchw, raw):
    """Plain-XLA f32 reference with identical forward semantics (for validation)."""
    def conv(x, w, stride, pad):
        return jax.lax.conv_general_dilated(
            x, w, window_strides=(stride, stride),
            padding=[(pad, pad), (pad, pad)],
            dimension_numbers=("NHWC", "OIHW", "NHWC"))

    x = jnp.transpose(x_nchw, (0, 2, 3, 1)).astype(jnp.float32)
    x = _leaky(conv(x, raw["w1"], 2, 1))
    for name in ("w2", "w3", "w4"):
        y = conv(x, raw[name], 2, 1)
        mean = jnp.mean(y, axis=(0, 1, 2))
        var = jnp.mean((y - mean) ** 2, axis=(0, 1, 2))
        x = _leaky((y - mean) * jax.lax.rsqrt(var + _EPS))
    y = jax.nn.sigmoid(conv(x, raw["w5"], 1, 0))
    return jnp.transpose(y, (0, 3, 1, 2))


if __name__ == "__main__":
    key = jax.random.PRNGKey(0)
    key, pkey, xkey = jax.random.split(key, 3)
    params, raw = init_params(pkey)

    # Input consistent with the module: NCHW, 3 channels, 32x32 spatial.
    x = jax.random.normal(xkey, (2, 3, 32, 32), dtype=jnp.float32)

    out = jax.block_until_ready(jax.jit(discriminative_forward)(x, params))

    assert out.shape == (2, 1, 1, 1), out.shape
    assert bool(jnp.all(jnp.isfinite(out)))
    assert bool(jnp.all((out >= 0.0) & (out <= 1.0)))

    # Validate against a plain-XLA f32 reference (bf16 MXU inputs -> loose tol).
    ref = jax.block_until_ready(jax.jit(_reference_forward)(x, raw))
    max_err = float(jnp.max(jnp.abs(out - ref)))
    assert max_err < 5e-2, f"max |out - ref| = {max_err}"

    print("KERNEL_OK")
</pallas_src>

<mosaic_0001>
module attributes {stable_mosaic.version = 11 : i64} {
  func.func @_conv_tap_kernel(%arg0: i32, %arg1: memref<2x512x24xbf16, #tpu.memory_space<vmem>>, %arg2: memref<2x24x32xbf16, #tpu.memory_space<vmem>>, %arg3: memref<512x32xbf16, #tpu.memory_space<vmem>>) attributes {dimension_semantics = [#tpu.dimension_semantics<parallel>], iteration_bounds = array<i64: 1>, scalar_prefetch = 0 : i64, scratch_operands = 0 : i64, tpu.core_type = #tpu.core_type<tc>, window_params = [{transform_indices = @transform_0, window_bounds = array<i64: 2, 512, 24>}, {pipeline_mode = #tpu.pipeline_mode<synchronous>, transform_indices = @transform_1, window_bounds = array<i64: 2, 24, 32>}, {transform_indices = @transform_2, window_bounds = array<i64: 512, 32>}]} {
    %c0 = arith.constant 0 : index
    %c0_0 = arith.constant 0 : index
    %c0_1 = arith.constant 0 : index
    %0 = vector.load %arg1[%c0, %c0_0, %c0_1] : memref<2x512x24xbf16, #tpu.memory_space<vmem>>, vector<1x512x24xbf16>
    %1 = vector.shape_cast %0 : vector<1x512x24xbf16> to vector<512x24xbf16>
    %c0_2 = arith.constant 0 : index
    %c0_3 = arith.constant 0 : index
    %c0_4 = arith.constant 0 : index
    %2 = vector.load %arg2[%c0_2, %c0_3, %c0_4] : memref<2x24x32xbf16, #tpu.memory_space<vmem>>, vector<1x24x32xbf16>
    %3 = vector.shape_cast %2 : vector<1x24x32xbf16> to vector<24x32xbf16>
    %cst = arith.constant dense<0.000000e+00> : vector<512x32xf32>
    %4 = tpu.matmul %1, %3, %cst {dimension_numbers = #tpu.dot_dimension_numbers<[1], [0], [0], [1], [0, 0, 1, 1], [], []>} : vector<512x24xbf16>, vector<24x32xbf16>, vector<512x32xf32> -> vector<512x32xf32>
    %c1 = arith.constant 1 : index
    %c0_5 = arith.constant 0 : index
    %c0_6 = arith.constant 0 : index
    %5 = vector.load %arg1[%c1, %c0_5, %c0_6] : memref<2x512x24xbf16, #tpu.memory_space<vmem>>, vector<1x512x24xbf16>
    %6 = vector.shape_cast %5 : vector<1x512x24xbf16> to vector<512x24xbf16>
    %c1_7 = arith.constant 1 : index
    %c0_8 = arith.constant 0 : index
    %c0_9 = arith.constant 0 : index
    %7 = vector.load %arg2[%c1_7, %c0_8, %c0_9] : memref<2x24x32xbf16, #tpu.memory_space<vmem>>, vector<1x24x32xbf16>
    %8 = vector.shape_cast %7 : vector<1x24x32xbf16> to vector<24x32xbf16>
    %cst_10 = arith.constant dense<0.000000e+00> : vector<512x32xf32>
    %9 = tpu.matmul %6, %8, %cst_10 {dimension_numbers = #tpu.dot_dimension_numbers<[1], [0], [0], [1], [0, 0, 1, 1], [], []>} : vector<512x24xbf16>, vector<24x32xbf16>, vector<512x32xf32> -> vector<512x32xf32>
    %10 = arith.addf %4, %9 : vector<512x32xf32>
    %cst_11 = arith.constant 0.000000e+00 : f32
    %11 = vector.broadcast %cst_11 : f32 to vector<512x32xf32>
    %12 = arith.cmpf ogt, %10, %11 : vector<512x32xf32>
    %cst_12 = arith.constant 2.000000e-01 : f32
    %13 = vector.broadcast %cst_12 : f32 to vector<512x32xf32>
    %14 = arith.mulf %13, %10 : vector<512x32xf32>
    %15 = arith.select %12, %10, %14 : vector<512x32xi1>, vector<512x32xf32>
    %16 = arith.truncf %15 : vector<512x32xf32> to vector<512x32xbf16>
    %c0_13 = arith.constant 0 : index
    %c0_14 = arith.constant 0 : index
    %17 = vector.load %arg3[%c0_13, %c0_14] : memref<512x32xbf16, #tpu.memory_space<vmem>>, vector<512x32xbf16>
    tpu.vector_store %arg3[%c0_13, %c0_14], %16 {strides = array<i32>} : memref<512x32xbf16, #tpu.memory_space<vmem>>, vector<512x32xbf16>,
    return
  }
  func.func @transform_0(%arg0: i32) -> (i32, i32, i32) {
    %c0_i32 = arith.constant 0 : i32
    %c0_i32_0 = arith.constant 0 : i32
    %c0_i32_1 = arith.constant 0 : i32
    return %c0_i32, %arg0, %c0_i32_0 : i32, i32, i32
  }
  func.func @transform_1(%arg0: i32) -> (i32, i32, i32) {
    %c0_i32 = arith.constant 0 : i32
    %c0_i32_0 = arith.constant 0 : i32
    %c0_i32_1 = arith.constant 0 : i32
    %c0_i32_2 = arith.constant 0 : i32
    return %c0_i32, %c0_i32_0, %c0_i32_1 : i32, i32, i32
  }
  func.func @transform_2(%arg0: i32) -> (i32, i32) {
    %c0_i32 = arith.constant 0 : i32
    %c0_i32_0 = arith.constant 0 : i32
    return %arg0, %c0_i32 : i32, i32
  }
}

module attributes {stable_mosaic.version = 11 : i64} {
  func.func @_conv_tap_kernel(%arg0: i32, %arg1: memref<2x128x256xbf16, #tpu.memory_space<vmem>>, %arg2: memref<2x256x64xbf16, #tpu.memory_space<vmem>>, %arg3: memref<128x64xbf16, #tpu.memory_space<vmem>>, %arg4: memref<1x8x128xf32, #tpu.memory_space<vmem>>) attributes {dimension_semantics = [#tpu.dimension_semantics<parallel>], iteration_bounds = array<i64: 1>, scalar_prefetch = 0 : i64, scratch_operands = 0 : i64, tpu.core_type = #tpu.core_type<tc>, window_params = [{transform_indices = @transform_0, window_bounds = array<i64: 2, 128, 256>}, {pipeline_mode = #tpu.pipeline_mode<synchronous>, transform_indices = @transform_1, window_bounds = array<i64: 2, 256, 64>}, {transform_indices = @transform_2, window_bounds = array<i64: 128, 64>}, {transform_indices = @transform_3, window_bounds = array<i64: 1, 8, 128>}]} {
    %c0 = arith.constant 0 : index
    %c0_0 = arith.constant 0 : index
    %c0_1 = arith.constant 0 : index
    %0 = vector.load %arg1[%c0, %c0_0, %c0_1] : memref<2x128x256xbf16, #tpu.memory_space<vmem>>, vector<1x128x256xbf16>
    %1 = vector.shape_cast %0 : vector<1x128x256xbf16> to vector<128x256xbf16>
    %c0_2 = arith.constant 0 : index
    %c0_3 = arith.constant 0 : index
    %c0_4 = arith.constant 0 : index
    %2 = vector.load %arg2[%c0_2, %c0_3, %c0_4] : memref<2x256x64xbf16, #tpu.memory_space<vmem>>, vector<1x256x64xbf16>
    %3 = vector.shape_cast %2 : vector<1x256x64xbf16> to vector<256x64xbf16>
    %cst = arith.constant dense<0.000000e+00> : vector<128x64xf32>
    %4 = tpu.matmul %1, %3, %cst {dimension_numbers = #tpu.dot_dimension_numbers<[1], [0], [0], [1], [0, 0, 1, 1], [], []>} : vector<128x256xbf16>, vector<256x64xbf16>, vector<128x64xf32> -> vector<128x64xf32>
    %c1 = arith.constant 1 : index
    %c0_5 = arith.constant 0 : index
    %c0_6 = arith.constant 0 : index
    %5 = vector.load %arg1[%c1, %c0_5, %c0_6] : memref<2x128x256xbf16, #tpu.memory_space<vmem>>, vector<1x128x256xbf16>
    %6 = vector.shape_cast %5 : vector<1x128x256xbf16> to vector<128x256xbf16>
    %c1_7 = arith.constant 1 : index
    %c0_8 = arith.constant 0 : index
    %c0_9 = arith.constant 0 : index
    %7 = vector.load %arg2[%c1_7, %c0_8, %c0_9] : memref<2x256x64xbf16, #tpu.memory_space<vmem>>, vector<1x256x64xbf16>
    %8 = vector.shape_cast %7 : vector<1x256x64xbf16> to vector<256x64xbf16>
    %cst_10 = arith.constant dense<0.000000e+00> : vector<128x64xf32>
    %9 = tpu.matmul %6, %8, %cst_10 {dimension_numbers = #tpu.dot_dimension_numbers<[1], [0], [0], [1], [0, 0, 1, 1], [], []>} : vector<128x256xbf16>, vector<256x64xbf16>, vector<128x64xf32> -> vector<128x64xf32>
    %10 = arith.addf %4, %9 : vector<128x64xf32>
    %11 = arith.truncf %10 : vector<128x64xf32> to vector<128x64xbf16>
    %c0_11 = arith.constant 0 : index
    %c0_12 = arith.constant 0 : index
    %12 = vector.load %arg3[%c0_11, %c0_12] : memref<128x64xbf16, #tpu.memory_space<vmem>>, vector<128x64xbf16>
    tpu.vector_store %arg3[%c0_11, %c0_12], %11 {strides = array<i32>} : memref<128x64xbf16, #tpu.memory_space<vmem>>, vector<128x64xbf16>,
    %c2_i32 = arith.constant 2 : i32
    %13 = arith.muli %arg0, %c2_i32 : i32
    %c2_i32_13 = arith.constant 2 : i32
    %14 = arith.subi %c2_i32_13, %13 : i32
    %c0_i32 = arith.constant 0 : i32
    %15 = arith.maxsi %14, %c0_i32 : i32
    %c2_i32_14 = arith.constant 2 : i32
    %16 = arith.minsi %15, %c2_i32_14 : i32
    %c64_i32 = arith.constant 64 : i32
    %17 = arith.muli %16, %c64_i32 : i32
    %18 = tpu.iota {dimensions = array<i32: 0>} : vector<128x64xi32>
    %19 = vector.broadcast %17 : i32 to vector<128x64xi32>
    %20 = arith.cmpi slt, %18, %19 : vector<128x64xi32>
    %21 = arith.extui %20 : vector<128x64xi1> to vector<128x64xi32>
    %22 = arith.sitofp %21 : vector<128x64xi32> to vector<128x64xf32>
    %23 = arith.mulf %10, %22 : vector<128x64xf32>
    %cst_15 = arith.constant dense<0.000000e+00> : vector<64xf32>
    %24 = vector.multi_reduction <add>, %23, %cst_15 [0] : vector<128x64xf32> to vector<64xf32>
    %25 = vector.shape_cast %24 : vector<64xf32> to vector<1x64xf32>
    %26 = arith.mulf %23, %10 : vector<128x64xf32>
    %cst_16 = arith.constant dense<0.000000e+00> : vector<64xf32>
    %27 = vector.multi_reduction <add>, %26, %cst_16 [0] : vector<128x64xf32> to vector<64xf32>
    %28 = vector.shape_cast %27 : vector<64xf32> to vector<1x64xf32>
    %29 = tpu.concatenate %25, %28 in 1 : vector<1x64xf32>, vector<1x64xf32> -> vector<1x128xf32>
    %30 = vector.shape_cast %29 : vector<1x128xf32> to vector<1x1x128xf32>
    %31 = vector.shape_cast %30 : vector<1x1x128xf32> to vector<1x1x128xf32>
    %32 = vector.broadcast %31 : vector<1x1x128xf32> to vector<1x8x128xf32>
    %c0_17 = arith.constant 0 : index
    %c0_18 = arith.constant 0 : index
    %c0_19 = arith.constant 0 : index
    %33 = vector.load %arg4[%c0_17, %c0_18, %c0_19] : memref<1x8x128xf32, #tpu.memory_space<vmem>>, vector<1x8x128xf32>
    tpu.vector_store %arg4[%c0_17, %c0_18, %c0_19], %32 {strides = array<i32>} : memref<1x8x128xf32, #tpu.memory_space<vmem>>, vector<1x8x128xf32>,
    return
  }
  func.func @transform_0(%arg0: i32) -> (i32, i32, i32) {
    %c0_i32 = arith.constant 0 : i32
    %c0_i32_0 = arith.constant 0 : i32
    %c0_i32_1 = arith.constant 0 : i32
    return %c0_i32, %arg0, %c0_i32_0 : i32, i32, i32
  }
  func.func @transform_1(%arg0: i32) -> (i32, i32, i32) {
    %c0_i32 = arith.constant 0 : i32
    %c0_i32_0 = arith.constant 0 : i32
    %c0_i32_1 = arith.constant 0 : i32
    %c0_i32_2 = arith.constant 0 : i32
    return %c0_i32, %c0_i32_0, %c0_i32_1 : i32, i32, i32
  }
  func.func @transform_2(%arg0: i32) -> (i32, i32) {
    %c0_i32 = arith.constant 0 : i32
    %c0_i32_0 = arith.constant 0 : i32
    return %arg0, %c0_i32 : i32, i32
  }
  func.func @transform_3(%arg0: i32) -> (i32, i32, i32) {
    %c0_i32 = arith.constant 0 : i32
    %c0_i32_0 = arith.constant 0 : i32
    %c0_i32_1 = arith.constant 0 : i32
    return %arg0, %c0_i32, %c0_i32_0 : i32, i32, i32
  }
}

module attributes {stable_mosaic.version = 11 : i64} {
  func.func @_conv_tap_kernel(%arg0: i32, %arg1: memref<2x32x512xbf16, #tpu.memory_space<vmem>>, %arg2: memref<2x512x128xbf16, #tpu.memory_space<vmem>>, %arg3: memref<32x128xbf16, #tpu.memory_space<vmem>>, %arg4: memref<1x8x256xf32, #tpu.memory_space<vmem>>) attributes {dimension_semantics = [#tpu.dimension_semantics<parallel>], iteration_bounds = array<i64: 1>, scalar_prefetch = 0 : i64, scratch_operands = 0 : i64, tpu.core_type = #tpu.core_type<tc>, window_params = [{transform_indices = @transform_0, window_bounds = array<i64: 2, 32, 512>}, {pipeline_mode = #tpu.pipeline_mode<synchronous>, transform_indices = @transform_1, window_bounds = array<i64: 2, 512, 128>}, {transform_indices = @transform_2, window_bounds = array<i64: 32, 128>}, {transform_indices = @transform_3, window_bounds = array<i64: 1, 8, 256>}]} {
    %c0 = arith.constant 0 : index
    %c0_0 = arith.constant 0 : index
    %c0_1 = arith.constant 0 : index
    %0 = vector.load %arg1[%c0, %c0_0, %c0_1] : memref<2x32x512xbf16, #tpu.memory_space<vmem>>, vector<1x32x512xbf16>
    %1 = vector.shape_cast %0 : vector<1x32x512xbf16> to vector<32x512xbf16>
    %c0_2 = arith.constant 0 : index
    %c0_3 = arith.constant 0 : index
    %c0_4 = arith.constant 0 : index
    %2 = vector.load %arg2[%c0_2, %c0_3, %c0_4] : memref<2x512x128xbf16, #tpu.memory_space<vmem>>, vector<1x512x128xbf16>
    %3 = vector.shape_cast %2 : vector<1x512x128xbf16> to vector<512x128xbf16>
    %cst = arith.constant dense<0.000000e+00> : vector<32x128xf32>
    %4 = tpu.matmul %1, %3, %cst {dimension_numbers = #tpu.dot_dimension_numbers<[1], [0], [0], [1], [0, 0, 1, 1], [], []>} : vector<32x512xbf16>, vector<512x128xbf16>, vector<32x128xf32> -> vector<32x128xf32>
    %c1 = arith.constant 1 : index
    %c0_5 = arith.constant 0 : index
    %c0_6 = arith.constant 0 : index
    %5 = vector.load %arg1[%c1, %c0_5, %c0_6] : memref<2x32x512xbf16, #tpu.memory_space<vmem>>, vector<1x32x512xbf16>
    %6 = vector.shape_cast %5 : vector<1x32x512xbf16> to vector<32x512xbf16>
    %c1_7 = arith.constant 1 : index
    %c0_8 = arith.constant 0 : index
    %c0_9 = arith.constant 0 : index
    %7 = vector.load %arg2[%c1_7, %c0_8, %c0_9] : memref<2x512x128xbf16, #tpu.memory_space<vmem>>, vector<1x512x128xbf16>
    %8 = vector.shape_cast %7 : vector<1x512x128xbf16> to vector<512x128xbf16>
    %cst_10 = arith.constant dense<0.000000e+00> : vector<32x128xf32>
    %9 = tpu.matmul %6, %8, %cst_10 {dimension_numbers = #tpu.dot_dimension_numbers<[1], [0], [0], [1], [0, 0, 1, 1], [], []>} : vector<32x512xbf16>, vector<512x128xbf16>, vector<32x128xf32> -> vector<32x128xf32>
    %10 = arith.addf %4, %9 : vector<32x128xf32>
    %11 = arith.truncf %10 : vector<32x128xf32> to vector<32x128xbf16>
    %c0_11 = arith.constant 0 : index
    %c0_12 = arith.constant 0 : index
    %12 = vector.load %arg3[%c0_11, %c0_12] : memref<32x128xbf16, #tpu.memory_space<vmem>>, vector<32x128xbf16>
    tpu.vector_store %arg3[%c0_11, %c0_12], %11 {strides = array<i32>} : memref<32x128xbf16, #tpu.memory_space<vmem>>, vector<32x128xbf16>,
    %c2_i32 = arith.constant 2 : i32
    %13 = arith.muli %arg0, %c2_i32 : i32
    %c2_i32_13 = arith.constant 2 : i32
    %14 = arith.subi %c2_i32_13, %13 : i32
    %c0_i32 = arith.constant 0 : i32
    %15 = arith.maxsi %14, %c0_i32 : i32
    %c2_i32_14 = arith.constant 2 : i32
    %16 = arith.minsi %15, %c2_i32_14 : i32
    %c16_i32 = arith.constant 16 : i32
    %17 = arith.muli %16, %c16_i32 : i32
    %18 = tpu.iota {dimensions = array<i32: 0>} : vector<32x128xi32>
    %19 = vector.broadcast %17 : i32 to vector<32x128xi32>
    %20 = arith.cmpi slt, %18, %19 : vector<32x128xi32>
    %21 = arith.extui %20 : vector<32x128xi1> to vector<32x128xi32>
    %22 = arith.sitofp %21 : vector<32x128xi32> to vector<32x128xf32>
    %23 = arith.mulf %10, %22 : vector<32x128xf32>
    %cst_15 = arith.constant dense<0.000000e+00> : vector<128xf32>
    %24 = vector.multi_reduction <add>, %23, %cst_15 [0] : vector<32x128xf32> to vector<128xf32>
    %25 = vector.shape_cast %24 : vector<128xf32> to vector<1x128xf32>
    %26 = arith.mulf %23, %10 : vector<32x128xf32>
    %cst_16 = arith.constant dense<0.000000e+00> : vector<128xf32>
    %27 = vector.multi_reduction <add>, %26, %cst_16 [0] : vector<32x128xf32> to vector<128xf32>
    %28 = vector.shape_cast %27 : vector<128xf32> to vector<1x128xf32>
    %29 = tpu.concatenate %25, %28 in 1 : vector<1x128xf32>, vector<1x128xf32> -> vector<1x256xf32>
    %30 = vector.shape_cast %29 : vector<1x256xf32> to vector<1x1x256xf32>
    %31 = vector.shape_cast %30 : vector<1x1x256xf32> to vector<1x1x256xf32>
    %32 = vector.broadcast %31 : vector<1x1x256xf32> to vector<1x8x256xf32>
    %c0_17 = arith.constant 0 : index
    %c0_18 = arith.constant 0 : index
    %c0_19 = arith.constant 0 : index
    %33 = vector.load %arg4[%c0_17, %c0_18, %c0_19] : memref<1x8x256xf32, #tpu.memory_space<vmem>>, vector<1x8x256xf32>
    tpu.vector_store %arg4[%c0_17, %c0_18, %c0_19], %32 {strides = array<i32>} : memref<1x8x256xf32, #tpu.memory_space<vmem>>, vector<1x8x256xf32>,
    return
  }
  func.func @transform_0(%arg0: i32) -> (i32, i32, i32) {
    %c0_i32 = arith.constant 0 : i32
    %c0_i32_0 = arith.constant 0 : i32
    %c0_i32_1 = arith.constant 0 : i32
    return %c0_i32, %arg0, %c0_i32_0 : i32, i32, i32
  }
  func.func @transform_1(%arg0: i32) -> (i32, i32, i32) {
    %c0_i32 = arith.constant 0 : i32
    %c0_i32_0 = arith.constant 0 : i32
    %c0_i32_1 = arith.constant 0 : i32
    %c0_i32_2 = arith.constant 0 : i32
    return %c0_i32, %c0_i32_0, %c0_i32_1 : i32, i32, i32
  }
  func.func @transform_2(%arg0: i32) -> (i32, i32) {
    %c0_i32 = arith.constant 0 : i32
    %c0_i32_0 = arith.constant 0 : i32
    return %arg0, %c0_i32 : i32, i32
  }
  func.func @transform_3(%arg0: i32) -> (i32, i32, i32) {
    %c0_i32 = arith.constant 0 : i32
    %c0_i32_0 = arith.constant 0 : i32
    %c0_i32_1 = arith.constant 0 : i32
    return %arg0, %c0_i32, %c0_i32_0 : i32, i32, i32
  }
}

module attributes {stable_mosaic.version = 11 : i64} {
  func.func @_conv_tap_kernel(%arg0: i32, %arg1: memref<2x8x1024xbf16, #tpu.memory_space<vmem>>, %arg2: memref<2x1024x256xbf16, #tpu.memory_space<vmem>>, %arg3: memref<8x256xbf16, #tpu.memory_space<vmem>>, %arg4: memref<1x8x512xf32, #tpu.memory_space<vmem>>) attributes {dimension_semantics = [#tpu.dimension_semantics<parallel>], iteration_bounds = array<i64: 1>, scalar_prefetch = 0 : i64, scratch_operands = 0 : i64, tpu.core_type = #tpu.core_type<tc>, window_params = [{transform_indices = @transform_0, window_bounds = array<i64: 2, 8, 1024>}, {pipeline_mode = #tpu.pipeline_mode<synchronous>, transform_indices = @transform_1, window_bounds = array<i64: 2, 1024, 256>}, {transform_indices = @transform_2, window_bounds = array<i64: 8, 256>}, {transform_indices = @transform_3, window_bounds = array<i64: 1, 8, 512>}]} {
    %c0 = arith.constant 0 : index
    %c0_0 = arith.constant 0 : index
    %c0_1 = arith.constant 0 : index
    %0 = vector.load %arg1[%c0, %c0_0, %c0_1] : memref<2x8x1024xbf16, #tpu.memory_space<vmem>>, vector<1x8x1024xbf16>
    %1 = vector.shape_cast %0 : vector<1x8x1024xbf16> to vector<8x1024xbf16>
    %c0_2 = arith.constant 0 : index
    %c0_3 = arith.constant 0 : index
    %c0_4 = arith.constant 0 : index
    %2 = vector.load %arg2[%c0_2, %c0_3, %c0_4] : memref<2x1024x256xbf16, #tpu.memory_space<vmem>>, vector<1x1024x256xbf16>
    %3 = vector.shape_cast %2 : vector<1x1024x256xbf16> to vector<1024x256xbf16>
    %cst = arith.constant dense<0.000000e+00> : vector<8x256xf32>
    %4 = tpu.matmul %1, %3, %cst {dimension_numbers = #tpu.dot_dimension_numbers<[1], [0], [0], [1], [0, 0, 1, 1], [], []>} : vector<8x1024xbf16>, vector<1024x256xbf16>, vector<8x256xf32> -> vector<8x256xf32>
    %c1 = arith.constant 1 : index
    %c0_5 = arith.constant 0 : index
    %c0_6 = arith.constant 0 : index
    %5 = vector.load %arg1[%c1, %c0_5, %c0_6] : memref<2x8x1024xbf16, #tpu.memory_space<vmem>>, vector<1x8x1024xbf16>
    %6 = vector.shape_cast %5 : vector<1x8x1024xbf16> to vector<8x1024xbf16>
    %c1_7 = arith.constant 1 : index
    %c0_8 = arith.constant 0 : index
    %c0_9 = arith.constant 0 : index
    %7 = vector.load %arg2[%c1_7, %c0_8, %c0_9] : memref<2x1024x256xbf16, #tpu.memory_space<vmem>>, vector<1x1024x256xbf16>
    %8 = vector.shape_cast %7 : vector<1x1024x256xbf16> to vector<1024x256xbf16>
    %cst_10 = arith.constant dense<0.000000e+00> : vector<8x256xf32>
    %9 = tpu.matmul %6, %8, %cst_10 {dimension_numbers = #tpu.dot_dimension_numbers<[1], [0], [0], [1], [0, 0, 1, 1], [], []>} : vector<8x1024xbf16>, vector<1024x256xbf16>, vector<8x256xf32> -> vector<8x256xf32>
    %10 = arith.addf %4, %9 : vector<8x256xf32>
    %11 = arith.truncf %10 : vector<8x256xf32> to vector<8x256xbf16>
    %c0_11 = arith.constant 0 : index
    %c0_12 = arith.constant 0 : index
    %12 = vector.load %arg3[%c0_11, %c0_12] : memref<8x256xbf16, #tpu.memory_space<vmem>>, vector<8x256xbf16>
    tpu.vector_store %arg3[%c0_11, %c0_12], %11 {strides = array<i32>} : memref<8x256xbf16, #tpu.memory_space<vmem>>, vector<8x256xbf16>,
    %c2_i32 = arith.constant 2 : i32
    %13 = arith.muli %arg0, %c2_i32 : i32
    %c2_i32_13 = arith.constant 2 : i32
    %14 = arith.subi %c2_i32_13, %13 : i32
    %c0_i32 = arith.constant 0 : i32
    %15 = arith.maxsi %14, %c0_i32 : i32
    %c2_i32_14 = arith.constant 2 : i32
    %16 = arith.minsi %15, %c2_i32_14 : i32
    %c4_i32 = arith.constant 4 : i32
    %17 = arith.muli %16, %c4_i32 : i32
    %18 = tpu.iota {dimensions = array<i32: 0>} : vector<8x256xi32>
    %19 = vector.broadcast %17 : i32 to vector<8x256xi32>
    %20 = arith.cmpi slt, %18, %19 : vector<8x256xi32>
    %21 = arith.extui %20 : vector<8x256xi1> to vector<8x256xi32>
    %22 = arith.sitofp %21 : vector<8x256xi32> to vector<8x256xf32>
    %23 = arith.mulf %10, %22 : vector<8x256xf32>
    %cst_15 = arith.constant dense<0.000000e+00> : vector<256xf32>
    %24 = vector.multi_reduction <add>, %23, %cst_15 [0] : vector<8x256xf32> to vector<256xf32>
    %25 = vector.shape_cast %24 : vector<256xf32> to vector<1x256xf32>
    %26 = arith.mulf %23, %10 : vector<8x256xf32>
    %cst_16 = arith.constant dense<0.000000e+00> : vector<256xf32>
    %27 = vector.multi_reduction <add>, %26, %cst_16 [0] : vector<8x256xf32> to vector<256xf32>
    %28 = vector.shape_cast %27 : vector<256xf32> to vector<1x256xf32>
    %29 = tpu.concatenate %25, %28 in 1 : vector<1x256xf32>, vector<1x256xf32> -> vector<1x512xf32>
    %30 = vector.shape_cast %29 : vector<1x512xf32> to vector<1x1x512xf32>
    %31 = vector.shape_cast %30 : vector<1x1x512xf32> to vector<1x1x512xf32>
    %32 = vector.broadcast %31 : vector<1x1x512xf32> to vector<1x8x512xf32>
    %c0_17 = arith.constant 0 : index
    %c0_18 = arith.constant 0 : index
    %c0_19 = arith.constant 0 : index
    %33 = vector.load %arg4[%c0_17, %c0_18, %c0_19] : memref<1x8x512xf32, #tpu.memory_space<vmem>>, vector<1x8x512xf32>
    tpu.vector_store %arg4[%c0_17, %c0_18, %c0_19], %32 {strides = array<i32>} : memref<1x8x512xf32, #tpu.memory_space<vmem>>, vector<1x8x512xf32>,
    return
  }
  func.func @transform_0(%arg0: i32) -> (i32, i32, i32) {
    %c0_i32 = arith.constant 0 : i32
    %c0_i32_0 = arith.constant 0 : i32
    %c0_i32_1 = arith.constant 0 : i32
    return %c0_i32, %arg0, %c0_i32_0 : i32, i32, i32
  }
  func.func @transform_1(%arg0: i32) -> (i32, i32, i32) {
    %c0_i32 = arith.constant 0 : i32
    %c0_i32_0 = arith.constant 0 : i32
    %c0_i32_1 = arith.constant 0 : i32
    %c0_i32_2 = arith.constant 0 : i32
    return %c0_i32, %c0_i32_0, %c0_i32_1 : i32, i32, i32
  }
  func.func @transform_2(%arg0: i32) -> (i32, i32) {
    %c0_i32 = arith.constant 0 : i32
    %c0_i32_0 = arith.constant 0 : i32
    return %arg0, %c0_i32 : i32, i32
  }
  func.func @transform_3(%arg0: i32) -> (i32, i32, i32) {
    %c0_i32 = arith.constant 0 : i32
    %c0_i32_0 = arith.constant 0 : i32
    %c0_i32_1 = arith.constant 0 : i32
    return %arg0, %c0_i32, %c0_i32_0 : i32, i32, i32
  }
}

</mosaic_0001>

<bundles_post_ra>
// kernel: discriminative_forward.4
= control target key start
LH: loop header
LB: loop body
LE: loop exit
PB: predicated region body
PF: predicated region fallthrough
CT: control target
= control target key end

     0   :  { %vm414_vm0 = vcmask 1043456   ;;  %vm317_vm1 = vcmask 195584   ;;  %vm1712_vm4 = vcmask 257024   ;;  %s2985_s1 = inlined_call_operand.vmem [shape: bf16[2,24,32], index: 1, kind: input, shape index: {}]   ;;  %s2986_s0 = inlined_call_operand.vmem [shape: bf16[2,512,24], index: 0, kind: input, shape index: {}]   ;;  %s2987_s2 = inlined_call_operand.vmem [shape: bf16[512,32], index: 2, kind: output, shape index: {}]  }
   0x1   :  { %v2378_v0 = vld [vmem:[%s2985_s1 + $0xc] sm:$0xff]   ;;  %v2379_v1 = vld [vmem:[%s2985_s1] sm:$0xff]   ;;  %v2380_v2 = vld [vmem:[%s2985_s1 + $0x14] ss:$0 sps:$4 sm:$0xff]  }
   0x2   :  { %2176 = vmatprep.subr.bf16.mxu1 %v2378_v0  ;;  %2244 = vmatprep.subr.bf16.mxu0 %v2379_v1  ;;  %v2381_v3 = vld [vmem:[%s2985_s1 + $0x8] ss:$0 sps:$4 sm:$0xff]   ;;  %v416_v4 = vsel %vm414_vm0, %v2380_v2, 0  ;;  %v2382_v5 = vld [vmem:[%s2986_s0 + $0x100] sm:$0xff]   ;;  %v2386_v10 = vld [vmem:[%s2986_s0 + $0x110] sm:$0xff]  }
   0x3   :  { %2177 = vmatpush3.bf16.msra.mxu1 %v2378_v0  ;;  %2245 = vmatpush3.bf16.msra.mxu0 %v2379_v1  ;;  %v973_v6 = vsel %vm414_vm0, %v2381_v3, 0  ;;  %v2383_v7 = vld [vmem:[%s2986_s0] sm:$0xff]   ;;  %v2384_v8 = vld [vmem:[%s2986_s0 + $0x108] sm:$0xff]   ;;  %v2387_v11 = vld [vmem:[%s2986_s0 + $0x10] sm:$0xff]  }
   0x4   :  { %2376 = vmatprep.subr.msk.bf16.mxu1 %vm414_vm0, %v2380_v2  ;;  %2377 = vmatprep.subr.msk.bf16.mxu0 %vm414_vm0, %v2381_v3  ;;  %v2385_v9 = vld [vmem:[%s2986_s0 + $0x8] sm:$0xff]   ;;  %v2388_v12 = vld [vmem:[%s2986_s0 + $0x118] sm:$0xff]   ;;  %v2390_v14 = vld [vmem:[%s2986_s0 + $0x120] sm:$0xff]  }
   0x5   :  { %2180 = vmatprep.mubr.msk.bf16.mxu1 %vm317_vm1, %v2382_v5  ;;  %2248 = vmatprep.mubr.msk.bf16.mxu0 %vm317_vm1, %v2383_v7  ;;  %v2389_v13 = vld [vmem:[%s2986_s0 + $0x18] sm:$0xff]   ;;  %v2391_v15 = vld [vmem:[%s2986_s0 + $0x20] sm:$0xff]   ;;  %v2392_v16 = vld [vmem:[%s2986_s0 + $0x128] sm:$0xff]  }
   0x6   :  { %v2393_v17 = vld [vmem:[%s2986_s0 + $0x28] sm:$0xff]   ;;  %v2394_v18 = vld [vmem:[%s2986_s0 + $0x130] sm:$0xff]   ;;  %v2396_v20 = vld [vmem:[%s2986_s0 + $0x138] sm:$0xff]  }
   0x7   :  { %2179 = vmatpush3.bf16.msra.mxu1 %v416_v4  ;;  %2247 = vmatpush3.bf16.msra.mxu0 %v973_v6  ;;  %v2395_v19 = vld [vmem:[%s2986_s0 + $0x30] sm:$0xff]   ;;  %v2397_v21 = vld [vmem:[%s2986_s0 + $0x38] sm:$0xff]   ;;  %v2398_v22 = vld [vmem:[%s2986_s0 + $0x140] sm:$0xff]  }
   0x8   :  { %v2399_v23 = vld [vmem:[%s2986_s0 + $0x40] sm:$0xff]   ;;  %v2400_v24 = vld [vmem:[%s2986_s0 + $0x148] sm:$0xff]   ;;  %v2402_v26 = vld [vmem:[%s2986_s0 + $0x150] sm:$0xff]  }
   0x9   :  { %v2401_v25 = vld [vmem:[%s2986_s0 + $0x48] sm:$0xff]   ;;  %v2403_v27 = vld [vmem:[%s2986_s0 + $0x50] sm:$0xff]   ;;  %v2404_v28 = vld [vmem:[%s2986_s0 + $0x158] sm:$0xff]  }
   0xa   :  { %2181 = vmatmul.mubr.msk.bf16.vlgmr.msra.gmra.mrb[0].mxu1 %vm317_vm1, %v2384_v8  ;;  %2249 = vmatmul.mubr.msk.bf16.vlgmr.msra.gmra.mrb[0].mxu0 %vm317_vm1, %v2385_v9  ;;  %v2405_v29 = vld [vmem:[%s2986_s0 + $0x58] sm:$0xff]   ;;  %v2406_v30 = vld [vmem:[%s2986_s0 + $0x160] sm:$0xff]   ;;  %v2408_v32 = vld [vmem:[%s2986_s0 + $0x168] sm:$0xff]  }
   0xb   :  { %2184 = vmatprep.mubr.msk.bf16.mxu1 %vm317_vm1, %v2386_v10  ;;  %2252 = vmatprep.mubr.msk.bf16.mxu0 %vm317_vm1, %v2387_v11  ;;  %v2407_v31 = vld [vmem:[%s2986_s0 + $0x60] sm:$0xff]   ;;  %v2409_v33 = vld [vmem:[%s2986_s0 + $0x68] sm:$0xff]   ;;  %v2410_v34 = vld [vmem:[%s2986_s0 + $0x170] sm:$0xff]  }
   0xc   :  { %v2411_v35 = vld [vmem:[%s2986_s0 + $0x70] sm:$0xff]   ;;  %v2412_v36 = vld [vmem:[%s2986_s0 + $0x178] sm:$0xff]   ;;  %v2414_v38 = vld [vmem:[%s2986_s0 + $0x180] sm:$0xff]  }
   0xd   :  { %v2413_v37 = vld [vmem:[%s2986_s0 + $0x78] sm:$0xff]   ;;  %v2415_v39 = vld [vmem:[%s2986_s0 + $0x80] sm:$0xff]   ;;  %v2416_v40 = vld [vmem:[%s2986_s0 + $0x188] sm:$0xff]  }
   0xe   :  { %v2417_v41 = vld [vmem:[%s2986_s0 + $0x88] sm:$0xff]   ;;  %v2418_v42 = vld [vmem:[%s2986_s0 + $0x190] sm:$0xff]   ;;  %v2420_v44 = vld [vmem:[%s2986_s0 + $0x198] sm:$0xff]  }
   0xf   :  { %v2419_v43 = vld [vmem:[%s2986_s0 + $0x90] sm:$0xff]   ;;  %v2421_v45 = vld [vmem:[%s2986_s0 + $0x98] sm:$0xff]   ;;  %v2422_v46 = vld [vmem:[%s2986_s0 + $0x1a0] sm:$0xff]  }
  0x10   :  { %v2423_v47 = vld [vmem:[%s2986_s0 + $0xa0] sm:$0xff]   ;;  %v2424_v48 = vld [vmem:[%s2986_s0 + $0x1a8] sm:$0xff]   ;;  %v2426_v50 = vld [vmem:[%s2986_s0 + $0x1b0] sm:$0xff]  }
  0x11   :  { %v2425_v49 = vld [vmem:[%s2986_s0 + $0xa8] sm:$0xff]   ;;  %v2427_v51 = vld [vmem:[%s2986_s0 + $0xb0] sm:$0xff]   ;;  %v2428_v52 = vld [vmem:[%s2986_s0 + $0x1b8] sm:$0xff]  }
  0x12   :  { %2185 = vmatmul.mubr.msk.bf16.gmra.mrb[4].mxu1 %vm317_vm1, %v2388_v12  ;;  %2253 = vmatmul.mubr.msk.bf16.gmra.mrb[4].mxu0 %vm317_vm1, %v2389_v13  ;;  %v2429_v53 = vld [vmem:[%s2986_s0 + $0xb8] sm:$0xff]   ;;  %v2430_v54 = vld [vmem:[%s2986_s0 + $0x1c0] sm:$0xff]   ;;  %v2432_v56 = vld [vmem:[%s2986_s0 + $0x1c8] sm:$0xff]  }
  0x13   :  { %2188 = vmatprep.mubr.msk.bf16.mxu1 %vm317_vm1, %v2390_v14  ;;  %2256 = vmatprep.mubr.msk.bf16.mxu0 %vm317_vm1, %v2391_v15  ;;  %v2431_v55 = vld [vmem:[%s2986_s0 + $0xc0] sm:$0xff]   ;;  %v2433_v57 = vld [vmem:[%s2986_s0 + $0xc8] sm:$0xff]   ;;  %v2434_v58 = vld [vmem:[%s2986_s0 + $0x1d0] sm:$0xff]  }
  0x14   :  { %v2435_v59 = vld [vmem:[%s2986_s0 + $0xd0] sm:$0xff]   ;;  %v2436_v60 = vld [vmem:[%s2986_s0 + $0x1d8] sm:$0xff]   ;;  %v2438_v62 = vld [vmem:[%s2986_s0 + $0x1e0] sm:$0xff]  }
  0x15   :  { %v2437_v61 = vld [vmem:[%s2986_s0 + $0xd8] sm:$0xff]   ;;  %v2439_v63 = vld [vmem:[%s2986_s0 + $0xe0] sm:$0xff]   ;;  %v2440_v0 = vld [vmem:[%s2986_s0 + $0x1e8] sm:$0xff]  }
  0x16   :  { %v2441_v1 = vld [vmem:[%s2986_s0 + $0xe8] sm:$0xff]   ;;  %v2442_v2 = vld [vmem:[%s2986_s0 + $0x1f0] sm:$0xff]   ;;  %v2444_v4 = vld [vmem:[%s2986_s0 + $0x1f8] sm:$0xff]  }
  0x17   :  { %v2443_v3 = vld [vmem:[%s2986_s0 + $0xf0] sm:$0xff]   ;;  %v2445_v5 = vld [vmem:[%s2986_s0 + $0xf8] sm:$0xff]  }
  0x1a   :  { %2189 = vmatmul.mubr.msk.bf16.gmra.mrb[8].mxu1 %vm317_vm1, %v2392_v16  ;;  %2257 = vmatmul.mubr.msk.bf16.gmra.mrb[8].mxu0 %vm317_vm1, %v2393_v17 }
  0x1b   :  { %2192 = vmatprep.mubr.msk.bf16.mxu1 %vm317_vm1, %v2394_v18  ;;  %2260 = vmatprep.mubr.msk.bf16.mxu0 %vm317_vm1, %v2395_v19 }
  0x22   :  { %2193 = vmatmul.mubr.msk.bf16.gmra.mrb[12].mxu1 %vm317_vm1, %v2396_v20  ;;  %2261 = vmatmul.mubr.msk.bf16.gmra.mrb[12].mxu0 %vm317_vm1, %v2397_v21 }
  0x23   :  { %2196 = vmatprep.mubr.msk.bf16.mxu1 %vm317_vm1, %v2398_v22  ;;  %2264 = vmatprep.mubr.msk.bf16.mxu0 %vm317_vm1, %v2399_v23 }
  0x2a   :  { %2197 = vmatmul.mubr.msk.bf16.gmra.mrb[16].mxu1 %vm317_vm1, %v2400_v24  ;;  %2265 = vmatmul.mubr.msk.bf16.gmra.mrb[16].mxu0 %vm317_vm1, %v2401_v25 }
  0x2b   :  { %2200 = vmatprep.mubr.msk.bf16.mxu1 %vm317_vm1, %v2402_v26  ;;  %2268 = vmatprep.mubr.msk.bf16.mxu0 %vm317_vm1, %v2403_v27 }
  0x32   :  { %2201 = vmatmul.mubr.msk.bf16.gmra.mrb[20].mxu1 %vm317_vm1, %v2404_v28  ;;  %2269 = vmatmul.mubr.msk.bf16.gmra.mrb[20].mxu0 %vm317_vm1, %v2405_v29 }
  0x33   :  { %2204 = vmatprep.mubr.msk.bf16.mxu1 %vm317_vm1, %v2406_v30  ;;  %2272 = vmatprep.mubr.msk.bf16.mxu0 %vm317_vm1, %v2407_v31 }
  0x3a   :  { %2205 = vmatmul.mubr.msk.bf16.gmra.mrb[24].mxu1 %vm317_vm1, %v2408_v32  ;;  %2273 = vmatmul.mubr.msk.bf16.gmra.mrb[24].mxu0 %vm317_vm1, %v2409_v33 }
  0x3b   :  { %2208 = vmatprep.mubr.msk.bf16.mxu1 %vm317_vm1, %v2410_v34  ;;  %2276 = vmatprep.mubr.msk.bf16.mxu0 %vm317_vm1, %v2411_v35 }
  0x42   :  { %2209 = vmatmul.mubr.msk.bf16.gmra.mrb[28].mxu1 %vm317_vm1, %v2412_v36  ;;  %2277 = vmatmul.mubr.msk.bf16.gmra.mrb[28].mxu0 %vm317_vm1, %v2413_v37 }
  0x43   :  { %2212 = vmatprep.mubr.msk.bf16.mxu1 %vm317_vm1, %v2414_v38  ;;  %2280 = vmatprep.mubr.msk.bf16.mxu0 %vm317_vm1, %v2415_v39 }
  0x4a   :  { %2213 = vmatmul.mubr.msk.bf16.gmra.mrb[32].mxu1 %vm317_vm1, %v2416_v40  ;;  %2281 = vmatmul.mubr.msk.bf16.gmra.mrb[32].mxu0 %vm317_vm1, %v2417_v41 }
  0x4b   :  { %2216 = vmatprep.mubr.msk.bf16.mxu1 %vm317_vm1, %v2418_v42  ;;  %2284 = vmatprep.mubr.msk.bf16.mxu0 %vm317_vm1, %v2419_v43 }
  0x52   :  { %2217 = vmatmul.mubr.msk.bf16.gmra.mrb[36].mxu1 %vm317_vm1, %v2420_v44  ;;  %2285 = vmatmul.mubr.msk.bf16.gmra.mrb[36].mxu0 %vm317_vm1, %v2421_v45 }
  0x53   :  { %2220 = vmatprep.mubr.msk.bf16.mxu1 %vm317_vm1, %v2422_v46  ;;  %2288 = vmatprep.mubr.msk.bf16.mxu0 %vm317_vm1, %v2423_v47 }
  0x5a   :  { %2221 = vmatmul.mubr.msk.bf16.gmra.mrb[40].mxu1 %vm317_vm1, %v2424_v48  ;;  %2289 = vmatmul.mubr.msk.bf16.gmra.mrb[40].mxu0 %vm317_vm1, %v2425_v49 }
  0x5b   :  { %2224 = vmatprep.mubr.msk.bf16.mxu1 %vm317_vm1, %v2426_v50  ;;  %2292 = vmatprep.mubr.msk.bf16.mxu0 %vm317_vm1, %v2427_v51 }
  0x62   :  { %2225 = vmatmul.mubr.msk.bf16.gmra.mrb[44].mxu1 %vm317_vm1, %v2428_v52  ;;  %2293 = vmatmul.mubr.msk.bf16.gmra.mrb[44].mxu0 %vm317_vm1, %v2429_v53 }
  0x63   :  { %2228 = vmatprep.mubr.msk.bf16.mxu1 %vm317_vm1, %v2430_v54  ;;  %2296 = vmatprep.mubr.msk.bf16.mxu0 %vm317_vm1, %v2431_v55 }
  0x6a   :  { %2229 = vmatmul.mubr.msk.bf16.gmra.mrb[48].mxu1 %vm317_vm1, %v2432_v56  ;;  %2297 = vmatmul.mubr.msk.bf16.gmra.mrb[48].mxu0 %vm317_vm1, %v2433_v57 }
  0x6b   :  { %2232 = vmatprep.mubr.msk.bf16.mxu1 %vm317_vm1, %v2434_v58  ;;  %2300 = vmatprep.mubr.msk.bf16.mxu0 %vm317_vm1, %v2435_v59 }
  0x72   :  { %2233 = vmatmul.mubr.msk.bf16.gmra.mrb[52].mxu1 %vm317_vm1, %v2436_v60  ;;  %2301 = vmatmul.mubr.msk.bf16.gmra.mrb[52].mxu0 %vm317_vm1, %v2437_v61 }
  0x73   :  { %2236 = vmatprep.mubr.msk.bf16.mxu1 %vm317_vm1, %v2438_v62  ;;  %2304 = vmatprep.mubr.msk.bf16.mxu0 %vm317_vm1, %v2439_v63 }
  0x7a   :  { %2237 = vmatmul.mubr.msk.bf16.gmra.mrb[56].mxu1 %vm317_vm1, %v2440_v0  ;;  %2305 = vmatmul.mubr.msk.bf16.gmra.mrb[56].mxu0 %vm317_vm1, %v2441_v1 }
  0x7b   :  { %2240 = vmatprep.mubr.msk.bf16.mxu1 %vm317_vm1, %v2442_v2  ;;  %2308 = vmatprep.mubr.msk.bf16.mxu0 %vm317_vm1, %v2443_v3 }
  0x82   :  { %2241 = vmatmul.mubr.msk.bf16.gmra.mrb[60].mxu1 %vm317_vm1, %v2444_v4  ;;  %2309 = vmatmul.mubr.msk.bf16.gmra.mrb[60].mxu0 %vm317_vm1, %v2445_v5 }
  0xdd   :  { %v2182_v6 = vpop.f32.mrb[0].mxu1  ;;  %v2250_v7 = vpop.f32.mrb[0].mxu0 }
  0xde   :  { %v452_v8 = vpop.f32.mrb[1].mxu1  ;;  %v1018_v9 = vadd.f32 %v2250_v7, %v2182_v6  ;;  %v1009_v10 = vpop.f32.mrb[1].mxu0 }
  0xdf   :  { %v2183_v11 = vpop.f32.mrb[2].mxu1  ;;  %v1010_v12 = vadd.f32 %v1009_v10, %v452_v8  ;;  %v2251_v13 = vpop.f32.mrb[2].mxu0 }
  0xe0   :  { %v455_v14 = vpop.f32.mrb[3].mxu1  ;;  %vm1266_vm2 = vcmp.gt.f32.partialorder %v1018_v9, 0.0  ;;  %v1330_v15 = vmul.f32 0.2, %v1018_v9  ;;  %v1021_v16 = vadd.f32 %v2251_v13, %v2183_v11  ;;  %v1012_v17 = vpop.f32.mrb[3].mxu0 }
  0xe1   :  { %vm1264_vm3 = vcmp.gt.f32.partialorder %v1010_v12, 0.0  ;;  %v1328_v18 = vmul.f32 0.2, %v1010_v12  ;;  %v1013_v19 = vadd.f32 %v1012_v17, %v455_v14 }
  0xe2   :  { %v1394_v20 = vsel %vm1266_vm2, %v1018_v9, %v1330_v15  ;;  %vm1267_vm5 = vcmp.gt.f32.partialorder %v1021_v16, 0.0  ;;  %v1331_v21 = vmul.f32 0.2, %v1021_v16 }
  0xe3   :  { %v2046_v22 = vpack.c.bf16 %v1394_v20, %v1394_v20  ;;  %v1392_v23 = vsel %vm1264_vm3, %v1010_v12, %v1328_v18  ;;  %vm1265_vm6 = vcmp.gt.f32.partialorder %v1013_v19, 0.0  ;;  %v1329_v24 = vmul.f32 0.2, %v1013_v19 }
  0xe4   :  { %v2044_v25 = vpack.c.bf16 %v1392_v23, %v1392_v23  ;;  %v1395_v26 = vsel %vm1267_vm5, %v1021_v16, %v1331_v21 }
  0xe5   :  { %v2186_v27 = vpop.f32.mrb[4].mxu1  ;;  %1715 = vst.msk [vmem:[%s2987_s2 + $0x8] sm:$0xf] %vm1712_vm4, %v2046_v22  ;;  %v2047_v28 = vpack.c.bf16 %v1395_v26, %v1395_v26  ;;  %v1393_v29 = vsel %vm1265_vm6, %v1013_v19, %v1329_v24  ;;  %v2254_v30 = vpop.f32.mrb[4].mxu0 }
  0xe6   :  { %v468_v31 = vpop.f32.mrb[5].mxu1  ;;  %1713 = vst.msk [vmem:[%s2987_s2] sm:$0xf] %vm1712_vm4, %v2044_v25  ;;  %v2045_v32 = vpack.c.bf16 %v1393_v29, %v1393_v29  ;;  %v1034_v33 = vadd.f32 %v2254_v30, %v2186_v27  ;;  %v1025_v34 = vpop.f32.mrb[5].mxu0 }
  0xe7   :  { %v2187_v35 = vpop.f32.mrb[6].mxu1  ;;  %1716 = vst.msk [vmem:[%s2987_s2 + $0xc] sm:$0xf] %vm1712_vm4, %v2047_v28  ;;  %v1026_v36 = vadd.f32 %v1025_v34, %v468_v31  ;;  %v2255_v37 = vpop.f32.mrb[6].mxu0 }
  0xe8   :  { %v471_v38 = vpop.f32.mrb[7].mxu1  ;;  %1714 = vst.msk [vmem:[%s2987_s2 + $0x4] sm:$0xf] %vm1712_vm4, %v2045_v32  ;;  %vm1270_vm7 = vcmp.gt.f32.partialorder %v1034_v33, 0.0  ;;  %v1334_v39 = vmul.f32 0.2, %v1034_v33  ;;  %v1037_v40 = vadd.f32 %v2255_v37, %v2187_v35 }
  0xe9   :  { %v1028_v41 = vpop.f32.mrb[7].mxu0  ;;  %vm1268_vm8 = vcmp.gt.f32.partialorder %v1026_v36, 0.0  ;;  %v1332_v42 = vmul.f32 0.2, %v1026_v36 }
  0xea   :  { %v1029_v43 = vadd.f32 %v1028_v41, %v471_v38  ;;  %v1398_v44 = vsel %vm1270_vm7, %v1034_v33, %v1334_v39  ;;  %vm1271_vm9 = vcmp.gt.f32.partialorder %v1037_v40, 0.0  ;;  %v1335_v45 = vmul.f32 0.2, %v1037_v40 }
  0xeb   :  { %v2050_v46 = vpack.c.bf16 %v1398_v44, %v1398_v44  ;;  %v1396_v47 = vsel %vm1268_vm8, %v1026_v36, %v1332_v42 }
  0xec   :  { %vm1269_vm10 = vcmp.gt.f32.partialorder %v1029_v43, 0.0  ;;  %v1333_v48 = vmul.f32 0.2, %v1029_v43  ;;  %v2048_v49 = vpack.c.bf16 %v1396_v47, %v1396_v47  ;;  %v1399_v50 = vsel %vm1271_vm9, %v1037_v40, %v1335_v45 }
  0xed   :  { %v2190_v51 = vpop.f32.mrb[8].mxu1  ;;  %1719 = vst.msk [vmem:[%s2987_s2 + $0x18] sm:$0xf] %vm1712_vm4, %v2050_v46  ;;  %v2051_v52 = vpack.c.bf16 %v1399_v50, %v1399_v50  ;;  %v2258_v54 = vpop.f32.mrb[8].mxu0 }
  0xee   :  { %v1397_v53 = vsel %vm1269_vm10, %v1029_v43, %v1333_v48  ;;  %v484_v55 = vpop.f32.mrb[9].mxu1  ;;  %1717 = vst.msk [vmem:[%s2987_s2 + $0x10] sm:$0xf] %vm1712_vm4, %v2048_v49  ;;  %v1050_v57 = vadd.f32 %v2258_v54, %v2190_v51  ;;  %v1041_v58 = vpop.f32.mrb[9].mxu0 }
  0xef   :  { %v2049_v56 = vpack.c.bf16 %v1397_v53, %v1397_v53  ;;  %v2191_v59 = vpop.f32.mrb[10].mxu1  ;;  %1720 = vst.msk [vmem:[%s2987_s2 + $0x1c] sm:$0xf] %vm1712_vm4, %v2051_v52  ;;  %v1042_v60 = vadd.f32 %v1041_v58, %v484_v55  ;;  %v2259_v61 = vpop.f32.mrb[10].mxu0 }
  0xf0   :  { %v487_v62 = vpop.f32.mrb[11].mxu1  ;;  %vm1274_vm11 = vcmp.gt.f32.partialorder %v1050_v57, 0.0  ;;  %v1338_v63 = vmul.f32 0.2, %v1050_v57  ;;  %v1053_v0 = vadd.f32 %v2259_v61, %v2191_v59  ;;  %v1044_v1 = vpop.f32.mrb[11].mxu0 }
  0xf1   :  { %1718 = vst.msk [vmem:[%s2987_s2 + $0x14] sm:$0xf] %vm1712_vm4, %v2049_v56  ;;  %vm1272_vm12 = vcmp.gt.f32.partialorder %v1042_v60, 0.0  ;;  %v1336_v2 = vmul.f32 0.2, %v1042_v60  ;;  %v1045_v3 = vadd.f32 %v1044_v1, %v487_v62 }
  0xf2   :  { %v1402_v4 = vsel %vm1274_vm11, %v1050_v57, %v1338_v63  ;;  %vm1275_vm13 = vcmp.gt.f32.partialorder %v1053_v0, 0.0  ;;  %v1339_v5 = vmul.f32 0.2, %v1053_v0 }
  0xf3   :  { %v2054_v6 = vpack.c.bf16 %v1402_v4, %v1402_v4  ;;  %v1400_v7 = vsel %vm1272_vm12, %v1042_v60, %v1336_v2  ;;  %vm1273_vm14 = vcmp.gt.f32.partialorder %v1045_v3, 0.0  ;;  %v1337_v8 = vmul.f32 0.2, %v1045_v3 }
  0xf4   :  { %v2052_v9 = vpack.c.bf16 %v1400_v7, %v1400_v7  ;;  %v1403_v10 = vsel %vm1275_vm13, %v1053_v0, %v1339_v5 }
  0xf5   :  { %v2194_v11 = vpop.f32.mrb[12].mxu1  ;;  %1723 = vst.msk [vmem:[%s2987_s2 + $0x28] sm:$0xf] %vm1712_vm4, %v2054_v6  ;;  %v2055_v12 = vpack.c.bf16 %v1403_v10, %v1403_v10  ;;  %v1401_v13 = vsel %vm1273_vm14, %v1045_v3, %v1337_v8  ;;  %v2262_v14 = vpop.f32.mrb[12].mxu0 }
  0xf6   :  { %v500_v15 = vpop.f32.mrb[13].mxu1  ;;  %1721 = vst.msk [vmem:[%s2987_s2 + $0x20] sm:$0xf] %vm1712_vm4, %v2052_v9  ;;  %v2053_v16 = vpack.c.bf16 %v1401_v13, %v1401_v13  ;;  %v1066_v17 = vadd.f32 %v2262_v14, %v2194_v11  ;;  %v1057_v18 = vpop.f32.mrb[13].mxu0 }
  0xf7   :  { %v2195_v19 = vpop.f32.mrb[14].mxu1  ;;  %1724 = vst.msk [vmem:[%s2987_s2 + $0x2c] sm:$0xf] %vm1712_vm4, %v2055_v12  ;;  %v1058_v20 = vadd.f32 %v1057_v18, %v500_v15  ;;  %v2263_v21 = vpop.f32.mrb[14].mxu0 }
  0xf8   :  { %v503_v22 = vpop.f32.mrb[15].mxu1  ;;  %1722 = vst.msk [vmem:[%s2987_s2 + $0x24] sm:$0xf] %vm1712_vm4, %v2053_v16  ;;  %vm1278_vm15 = vcmp.gt.f32.partialorder %v1066_v17, 0.0  ;;  %v1342_v23 = vmul.f32 0.2, %v1066_v17  ;;  %v1069_v24 = vadd.f32 %v2263_v21, %v2195_v19 }
  0xf9   :  { %v1060_v25 = vpop.f32.mrb[15].mxu0  ;;  %vm1276_vm0 = vcmp.gt.f32.partialorder %v1058_v20, 0.0  ;;  %v1340_v26 = vmul.f32 0.2, %v1058_v20 }
  0xfa   :  { %v1061_v27 = vadd.f32 %v1060_v25, %v503_v22  ;;  %v1406_v28 = vsel %vm1278_vm15, %v1066_v17, %v1342_v23  ;;  %vm1279_vm1 = vcmp.gt.f32.partialorder %v1069_v24, 0.0  ;;  %v1343_v29 = vmul.f32 0.2, %v1069_v24 }
  0xfb   :  { %v2058_v30 = vpack.c.bf16 %v1406_v28, %v1406_v28  ;;  %v1404_v31 = vsel %vm1276_vm0, %v1058_v20, %v1340_v26 }
  0xfc   :  { %vm1277_vm2 = vcmp.gt.f32.partialorder %v1061_v27, 0.0  ;;  %v1341_v32 = vmul.f32 0.2, %v1061_v27  ;;  %v2056_v33 = vpack.c.bf16 %v1404_v31, %v1404_v31  ;;  %v1407_v34 = vsel %vm1279_vm1, %v1069_v24, %v1343_v29 }
  0xfd   :  { %v2198_v35 = vpop.f32.mrb[16].mxu1  ;;  %1727 = vst.msk [vmem:[%s2987_s2 + $0x38] sm:$0xf] %vm1712_vm4, %v2058_v30  ;;  %v2059_v36 = vpack.c.bf16 %v1407_v34, %v1407_v34  ;;  %v2266_v38 = vpop.f32.mrb[16].mxu0 }
  0xfe   :  { %v1405_v37 = vsel %vm1277_vm2, %v1061_v27, %v1341_v32  ;;  %v516_v39 = vpop.f32.mrb[17].mxu1  ;;  %1725 = vst.msk [vmem:[%s2987_s2 + $0x30] sm:$0xf] %vm1712_vm4, %v2056_v33  ;;  %v1082_v41 = vadd.f32 %v2266_v38, %v2198_v35  ;;  %v1073_v42 = vpop.f32.mrb[17].mxu0 }
  0xff   :  { %v2057_v40 = vpack.c.bf16 %v1405_v37, %v1405_v37  ;;  %v2199_v43 = vpop.f32.mrb[18].mxu1  ;;  %1728 = vst.msk [vmem:[%s2987_s2 + $0x3c] sm:$0xf] %vm1712_vm4, %v2059_v36  ;;  %v1074_v44 = vadd.f32 %v1073_v42, %v516_v39  ;;  %v2267_v45 = vpop.f32.mrb[18].mxu0 }
 0x100   :  { %v519_v46 = vpop.f32.mrb[19].mxu1  ;;  %vm1282_vm3 = vcmp.gt.f32.partialorder %v1082_v41, 0.0  ;;  %v1346_v47 = vmul.f32 0.2, %v1082_v41  ;;  %v1085_v48 = vadd.f32 %v2267_v45, %v2199_v43  ;;  %v1076_v49 = vpop.f32.mrb[19].mxu0 }
 0x101   :  { %1726 = vst.msk [vmem:[%s2987_s2 + $0x34] sm:$0xf] %vm1712_vm4, %v2057_v40  ;;  %vm1280_vm5 = vcmp.gt.f32.partialorder %v1074_v44, 0.0  ;;  %v1344_v50 = vmul.f32 0.2, %v1074_v44  ;;  %v1077_v51 = vadd.f32 %v1076_v49, %v519_v46 }
 0x102   :  { %v1410_v52 = vsel %vm1282_vm3, %v1082_v41, %v1346_v47  ;;  %vm1283_vm6 = vcmp.gt.f32.partialorder %v1085_v48, 0.0  ;;  %v1347_v53 = vmul.f32 0.2, %v1085_v48 }
 0x103   :  { %v2062_v54 = vpack.c.bf16 %v1410_v52, %v1410_v52  ;;  %v1408_v55 = vsel %vm1280_vm5, %v1074_v44, %v1344_v50  ;;  %vm1281_vm7 = vcmp.gt.f32.partialorder %v1077_v51, 0.0  ;;  %v1345_v56 = vmul.f32 0.2, %v1077_v51 }
 0x104   :  { %v2060_v57 = vpack.c.bf16 %v1408_v55, %v1408_v55  ;;  %v1411_v58 = vsel %vm1283_vm6, %v1085_v48, %v1347_v53 }
 0x105   :  { %v2202_v59 = vpop.f32.mrb[20].mxu1  ;;  %1731 = vst.msk [vmem:[%s2987_s2 + $0x48] sm:$0xf] %vm1712_vm4, %v2062_v54  ;;  %v2063_v60 = vpack.c.bf16 %v1411_v58, %v1411_v58  ;;  %v1409_v61 = vsel %vm1281_vm7, %v1077_v51, %v1345_v56  ;;  %v2270_v62 = vpop.f32.mrb[20].mxu0 }
 0x106   :  { %v532_v63 = vpop.f32.mrb[21].mxu1  ;;  %1729 = vst.msk [vmem:[%s2987_s2 + $0x40] sm:$0xf] %vm1712_vm4, %v2060_v57  ;;  %v2061_v0 = vpack.c.bf16 %v1409_v61, %v1409_v61  ;;  %v1098_v1 = vadd.f32 %v2270_v62, %v2202_v59  ;;  %v1089_v2 = vpop.f32.mrb[21].mxu0 }
 0x107   :  { %v2203_v3 = vpop.f32.mrb[22].mxu1  ;;  %1732 = vst.msk [vmem:[%s2987_s2 + $0x4c] sm:$0xf] %vm1712_vm4, %v2063_v60  ;;  %v1090_v4 = vadd.f32 %v1089_v2, %v532_v63  ;;  %v2271_v5 = vpop.f32.mrb[22].mxu0 }
 0x108   :  { %v535_v6 = vpop.f32.mrb[23].mxu1  ;;  %1730 = vst.msk [vmem:[%s2987_s2 + $0x44] sm:$0xf] %vm1712_vm4, %v2061_v0  ;;  %vm1286_vm8 = vcmp.gt.f32.partialorder %v1098_v1, 0.0  ;;  %v1350_v7 = vmul.f32 0.2, %v1098_v1  ;;  %v1101_v8 = vadd.f32 %v2271_v5, %v2203_v3 }
 0x109   :  { %v1092_v9 = vpop.f32.mrb[23].mxu0  ;;  %vm1284_vm9 = vcmp.gt.f32.partialorder %v1090_v4, 0.0  ;;  %v1348_v10 = vmul.f32 0.2, %v1090_v4 }
 0x10a   :  { %v1093_v11 = vadd.f32 %v1092_v9, %v535_v6  ;;  %v1414_v12 = vsel %vm1286_vm8, %v1098_v1, %v1350_v7  ;;  %vm1287_vm10 = vcmp.gt.f32.partialorder %v1101_v8, 0.0  ;;  %v1351_v13 = vmul.f32 0.2, %v1101_v8 }
 0x10b   :  { %v2066_v14 = vpack.c.bf16 %v1414_v12, %v1414_v12  ;;  %v1412_v15 = vsel %vm1284_vm9, %v1090_v4, %v1348_v10 }
 0x10c   :  { %vm1285_vm11 = vcmp.gt.f32.partialorder %v1093_v11, 0.0  ;;  %v1349_v16 = vmul.f32 0.2, %v1093_v11  ;;  %v2064_v17 = vpack.c.bf16 %v1412_v15, %v1412_v15  ;;  %v1415_v18 = vsel %vm1287_vm10, %v1101_v8, %v1351_v13 }
 0x10d   :  { %v2206_v19 = vpop.f32.mrb[24].mxu1  ;;  %1735 = vst.msk [vmem:[%s2987_s2 + $0x58] sm:$0xf] %vm1712_vm4, %v2066_v14  ;;  %v2067_v20 = vpack.c.bf16 %v1415_v18, %v1415_v18  ;;  %v2274_v22 = vpop.f32.mrb[24].mxu0 }
 0x10e   :  { %v1413_v21 = vsel %vm1285_vm11, %v1093_v11, %v1349_v16  ;;  %v548_v23 = vpop.f32.mrb[25].mxu1  ;;  %1733 = vst.msk [vmem:[%s2987_s2 + $0x50] sm:$0xf] %vm1712_vm4, %v2064_v17  ;;  %v1114_v25 = vadd.f32 %v2274_v22, %v2206_v19  ;;  %v1105_v26 = vpop.f32.mrb[25].mxu0 }
 0x10f   :  { %v2065_v24 = vpack.c.bf16 %v1413_v21, %v1413_v21  ;;  %v2207_v27 = vpop.f32.mrb[26].mxu1  ;;  %1736 = vst.msk [vmem:[%s2987_s2 + $0x5c] sm:$0xf] %vm1712_vm4, %v2067_v20  ;;  %v1106_v28 = vadd.f32 %v1105_v26, %v548_v23  ;;  %v2275_v29 = vpop.f32.mrb[26].mxu0 }
 0x110   :  { %v551_v30 = vpop.f32.mrb[27].mxu1  ;;  %vm1290_vm12 = vcmp.gt.f32.partialorder %v1114_v25, 0.0  ;;  %v1354_v31 = vmul.f32 0.2, %v1114_v25  ;;  %v1117_v32 = vadd.f32 %v2275_v29, %v2207_v27  ;;  %v1108_v33 = vpop.f32.mrb[27].mxu0 }
 0x111   :  { %1734 = vst.msk [vmem:[%s2987_s2 + $0x54] sm:$0xf] %vm1712_vm4, %v2065_v24  ;;  %vm1288_vm13 = vcmp.gt.f32.partialorder %v1106_v28, 0.0  ;;  %v1352_v34 = vmul.f32 0.2, %v1106_v28  ;;  %v1109_v35 = vadd.f32 %v1108_v33, %v551_v30 }
 0x112   :  { %v1418_v36 = vsel %vm1290_vm12, %v1114_v25, %v1354_v31  ;;  %vm1291_vm14 = vcmp.gt.f32.partialorder %v1117_v32, 0.0  ;;  %v1355_v37 = vmul.f32 0.2, %v1117_v32 }
 0x113   :  { %v2070_v38 = vpack.c.bf16 %v1418_v36, %v1418_v36  ;;  %v1416_v39 = vsel %vm1288_vm13, %v1106_v28, %v1352_v34  ;;  %vm1289_vm15 = vcmp.gt.f32.partialorder %v1109_v35, 0.0  ;;  %v1353_v40 = vmul.f32 0.2, %v1109_v35 }
 0x114   :  { %v2068_v41 = vpack.c.bf16 %v1416_v39, %v1416_v39  ;;  %v1419_v42 = vsel %vm1291_vm14, %v1117_v32, %v1355_v37 }
 0x115   :  { %v2210_v43 = vpop.f32.mrb[28].mxu1  ;;  %1739 = vst.msk [vmem:[%s2987_s2 + $0x68] sm:$0xf] %vm1712_vm4, %v2070_v38  ;;  %v2071_v44 = vpack.c.bf16 %v1419_v42, %v1419_v42  ;;  %v1417_v45 = vsel %vm1289_vm15, %v1109_v35, %v1353_v40  ;;  %v2278_v46 = vpop.f32.mrb[28].mxu0 }
 0x116   :  { %v564_v47 = vpop.f32.mrb[29].mxu1  ;;  %1737 = vst.msk [vmem:[%s2987_s2 + $0x60] sm:$0xf] %vm1712_vm4, %v2068_v41  ;;  %v2069_v48 = vpack.c.bf16 %v1417_v45, %v1417_v45  ;;  %v1130_v49 = vadd.f32 %v2278_v46, %v2210_v43  ;;  %v1121_v50 = vpop.f32.mrb[29].mxu0 }
 0x117   :  { %v2211_v51 = vpop.f32.mrb[30].mxu1  ;;  %1740 = vst.msk [vmem:[%s2987_s2 + $0x6c] sm:$0xf] %vm1712_vm4, %v2071_v44  ;;  %v1122_v52 = vadd.f32 %v1121_v50, %v564_v47  ;;  %v2279_v53 = vpop.f32.mrb[30].mxu0 }
 0x118   :  { %v567_v54 = vpop.f32.mrb[31].mxu1  ;;  %1738 = vst.msk [vmem:[%s2987_s2 + $0x64] sm:$0xf] %vm1712_vm4, %v2069_v48  ;;  %vm1294_vm0 = vcmp.gt.f32.partialorder %v1130_v49, 0.0  ;;  %v1358_v55 = vmul.f32 0.2, %v1130_v49  ;;  %v1133_v56 = vadd.f32 %v2279_v53, %v2211_v51 }
 0x119   :  { %v1124_v57 = vpop.f32.mrb[31].mxu0  ;;  %vm1292_vm1 = vcmp.gt.f32.partialorder %v1122_v52, 0.0  ;;  %v1356_v58 = vmul.f32 0.2, %v1122_v52 }
 0x11a   :  { %v1125_v59 = vadd.f32 %v1124_v57, %v567_v54  ;;  %v1422_v60 = vsel %vm1294_vm0, %v1130_v49, %v1358_v55  ;;  %vm1295_vm2 = vcmp.gt.f32.partialorder %v1133_v56, 0.0  ;;  %v1359_v61 = vmul.f32 0.2, %v1133_v56 }
 0x11b   :  { %v2074_v62 = vpack.c.bf16 %v1422_v60, %v1422_v60  ;;  %v1420_v63 = vsel %vm1292_vm1, %v1122_v52, %v1356_v58 }
 0x11c   :  { %vm1293_vm3 = vcmp.gt.f32.partialorder %v1125_v59, 0.0  ;;  %v1357_v0 = vmul.f32 0.2, %v1125_v59  ;;  %v2072_v1 = vpack.c.bf16 %v1420_v63, %v1420_v63  ;;  %v1423_v2 = vsel %vm1295_vm2, %v1133_v56, %v1359_v61 }
 0x11d   :  { %v2214_v3 = vpop.f32.mrb[32].mxu1  ;;  %1743 = vst.msk [vmem:[%s2987_s2 + $0x78] sm:$0xf] %vm1712_vm4, %v2074_v62  ;;  %v2075_v4 = vpack.c.bf16 %v1423_v2, %v1423_v2  ;;  %v2282_v6 = vpop.f32.mrb[32].mxu0 }
 0x11e   :  { %v1421_v5 = vsel %vm1293_vm3, %v1125_v59, %v1357_v0  ;;  %v580_v7 = vpop.f32.mrb[33].mxu1  ;;  %1741 = vst.msk [vmem:[%s2987_s2 + $0x70] sm:$0xf] %vm1712_vm4, %v2072_v1  ;;  %v1146_v9 = vadd.f32 %v2282_v6, %v2214_v3  ;;  %v1137_v10 = vpop.f32.mrb[33].mxu0 }
 0x11f   :  { %v2073_v8 = vpack.c.bf16 %v1421_v5, %v1421_v5  ;;  %v2215_v11 = vpop.f32.mrb[34].mxu1  ;;  %1744 = vst.msk [vmem:[%s2987_s2 + $0x7c] sm:$0xf] %vm1712_vm4, %v2075_v4  ;;  %v1138_v12 = vadd.f32 %v1137_v10, %v580_v7  ;;  %v2283_v13 = vpop.f32.mrb[34].mxu0 }
 0x120   :  { %v583_v14 = vpop.f32.mrb[35].mxu1  ;;  %vm1298_vm5 = vcmp.gt.f32.partialorder %v1146_v9, 0.0  ;;  %v1362_v15 = vmul.f32 0.2, %v1146_v9  ;;  %v1149_v16 = vadd.f32 %v2283_v13, %v2215_v11  ;;  %v1140_v17 = vpop.f32.mrb[35].mxu0 }
 0x121   :  { %1742 = vst.msk [vmem:[%s2987_s2 + $0x74] sm:$0xf] %vm1712_vm4, %v2073_v8  ;;  %vm1296_vm6 = vcmp.gt.f32.partialorder %v1138_v12, 0.0  ;;  %v1360_v18 = vmul.f32 0.2, %v1138_v12  ;;  %v1141_v19 = vadd.f32 %v1140_v17, %v583_v14 }
 0x122   :  { %v1426_v20 = vsel %vm1298_vm5, %v1146_v9, %v1362_v15  ;;  %vm1299_vm7 = vcmp.gt.f32.partialorder %v1149_v16, 0.0  ;;  %v1363_v21 = vmul.f32 0.2, %v1149_v16 }
 0x123   :  { %v2078_v22 = vpack.c.bf16 %v1426_v20, %v1426_v20  ;;  %v1424_v23 = vsel %vm1296_vm6, %v1138_v12, %v1360_v18  ;;  %vm1297_vm8 = vcmp.gt.f32.partialorder %v1141_v19, 0.0  ;;  %v1361_v24 = vmul.f32 0.2, %v1141_v19 }
 0x124   :  { %v2076_v25 = vpack.c.bf16 %v1424_v23, %v1424_v23  ;;  %v1427_v26 = vsel %vm1299_vm7, %v1149_v16, %v1363_v21 }
 0x125   :  { %v2218_v27 = vpop.f32.mrb[36].mxu1  ;;  %1747 = vst.msk [vmem:[%s2987_s2 + $0x88] sm:$0xf] %vm1712_vm4, %v2078_v22  ;;  %v2079_v28 = vpack.c.bf16 %v1427_v26, %v1427_v26  ;;  %v1425_v29 = vsel %vm1297_vm8, %v1141_v19, %v1361_v24  ;;  %v2286_v30 = vpop.f32.mrb[36].mxu0 }
 0x126   :  { %v596_v31 = vpop.f32.mrb[37].mxu1  ;;  %1745 = vst.msk [vmem:[%s2987_s2 + $0x80] sm:$0xf] %vm1712_vm4, %v2076_v25  ;;  %v2077_v32 = vpack.c.bf16 %v1425_v29, %v1425_v29  ;;  %v1162_v33 = vadd.f32 %v2286_v30, %v2218_v27  ;;  %v1153_v34 = vpop.f32.mrb[37].mxu0 }
 0x127   :  { %v2219_v35 = vpop.f32.mrb[38].mxu1  ;;  %1748 = vst.msk [vmem:[%s2987_s2 + $0x8c] sm:$0xf] %vm1712_vm4, %v2079_v28  ;;  %v1154_v36 = vadd.f32 %v1153_v34, %v596_v31  ;;  %v2287_v37 = vpop.f32.mrb[38].mxu0 }
 0x128   :  { %v599_v38 = vpop.f32.mrb[39].mxu1  ;;  %1746 = vst.msk [vmem:[%s2987_s2 + $0x84] sm:$0xf] %vm1712_vm4, %v2077_v32  ;;  %vm1302_vm9 = vcmp.gt.f32.partialorder %v1162_v33, 0.0  ;;  %v1366_v39 = vmul.f32 0.2, %v1162_v33  ;;  %v1165_v40 = vadd.f32 %v2287_v37, %v2219_v35 }
 0x129   :  { %v1156_v41 = vpop.f32.mrb[39].mxu0  ;;  %vm1300_vm10 = vcmp.gt.f32.partialorder %v1154_v36, 0.0  ;;  %v1364_v42 = vmul.f32 0.2, %v1154_v36 }
 0x12a   :  { %v1157_v43 = vadd.f32 %v1156_v41, %v599_v38  ;;  %v1430_v44 = vsel %vm1302_vm9, %v1162_v33, %v1366_v39  ;;  %vm1303_vm11 = vcmp.gt.f32.partialorder %v1165_v40, 0.0  ;;  %v1367_v45 = vmul.f32 0.2, %v1165_v40 }
 0x12b   :  { %v2082_v46 = vpack.c.bf16 %v1430_v44, %v1430_v44  ;;  %v1428_v47 = vsel %vm1300_vm10, %v1154_v36, %v1364_v42 }
 0x12c   :  { %vm1301_vm12 = vcmp.gt.f32.partialorder %v1157_v43, 0.0  ;;  %v1365_v48 = vmul.f32 0.2, %v1157_v43  ;;  %v2080_v49 = vpack.c.bf16 %v1428_v47, %v1428_v47  ;;  %v1431_v50 = vsel %vm1303_vm11, %v1165_v40, %v1367_v45 }
 0x12d   :  { %v2222_v51 = vpop.f32.mrb[40].mxu1  ;;  %1751 = vst.msk [vmem:[%s2987_s2 + $0x98] sm:$0xf] %vm1712_vm4, %v2082_v46  ;;  %v2083_v52 = vpack.c.bf16 %v1431_v50, %v1431_v50  ;;  %v2290_v54 = vpop.f32.mrb[40].mxu0 }
 0x12e   :  { %v1429_v53 = vsel %vm1301_vm12, %v1157_v43, %v1365_v48  ;;  %v612_v55 = vpop.f32.mrb[41].mxu1  ;;  %1749 = vst.msk [vmem:[%s2987_s2 + $0x90] sm:$0xf] %vm1712_vm4, %v2080_v49  ;;  %v1178_v57 = vadd.f32 %v2290_v54, %v2222_v51  ;;  %v1169_v58 = vpop.f32.mrb[41].mxu0 }
 0x12f   :  { %v2081_v56 = vpack.c.bf16 %v1429_v53, %v1429_v53  ;;  %v2223_v59 = vpop.f32.mrb[42].mxu1  ;;  %1752 = vst.msk [vmem:[%s2987_s2 + $0x9c] sm:$0xf] %vm1712_vm4, %v2083_v52  ;;  %v1170_v60 = vadd.f32 %v1169_v58, %v612_v55  ;;  %v2291_v61 = vpop.f32.mrb[42].mxu0 }
 0x130   :  { %v615_v62 = vpop.f32.mrb[43].mxu1  ;;  %vm1306_vm13 = vcmp.gt.f32.partialorder %v1178_v57, 0.0  ;;  %v1370_v63 = vmul.f32 0.2, %v1178_v57  ;;  %v1181_v0 = vadd.f32 %v2291_v61, %v2223_v59  ;;  %v1172_v1 = vpop.f32.mrb[43].mxu0 }
 0x131   :  { %1750 = vst.msk [vmem:[%s2987_s2 + $0x94] sm:$0xf] %vm1712_vm4, %v2081_v56  ;;  %vm1304_vm14 = vcmp.gt.f32.partialorder %v1170_v60, 0.0  ;;  %v1368_v2 = vmul.f32 0.2, %v1170_v60  ;;  %v1173_v3 = vadd.f32 %v1172_v1, %v615_v62 }
 0x132   :  { %v1434_v4 = vsel %vm1306_vm13, %v1178_v57, %v1370_v63  ;;  %vm1307_vm15 = vcmp.gt.f32.partialorder %v1181_v0, 0.0  ;;  %v1371_v5 = vmul.f32 0.2, %v1181_v0 }
 0x133   :  { %v2086_v6 = vpack.c.bf16 %v1434_v4, %v1434_v4  ;;  %v1432_v7 = vsel %vm1304_vm14, %v1170_v60, %v1368_v2  ;;  %vm1305_vm0 = vcmp.gt.f32.partialorder %v1173_v3, 0.0  ;;  %v1369_v8 = vmul.f32 0.2, %v1173_v3 }
 0x134   :  { %v2084_v9 = vpack.c.bf16 %v1432_v7, %v1432_v7  ;;  %v1435_v10 = vsel %vm1307_vm15, %v1181_v0, %v1371_v5 }
 0x135   :  { %v2226_v11 = vpop.f32.mrb[44].mxu1  ;;  %1755 = vst.msk [vmem:[%s2987_s2 + $0xa8] sm:$0xf] %vm1712_vm4, %v2086_v6  ;;  %v2087_v12 = vpack.c.bf16 %v1435_v10, %v1435_v10  ;;  %v1433_v13 = vsel %vm1305_vm0, %v1173_v3, %v1369_v8  ;;  %v2294_v14 = vpop.f32.mrb[44].mxu0 }
 0x136   :  { %v628_v15 = vpop.f32.mrb[45].mxu1  ;;  %1753 = vst.msk [vmem:[%s2987_s2 + $0xa0] sm:$0xf] %vm1712_vm4, %v2084_v9  ;;  %v2085_v16 = vpack.c.bf16 %v1433_v13, %v1433_v13  ;;  %v1194_v17 = vadd.f32 %v2294_v14, %v2226_v11  ;;  %v1185_v18 = vpop.f32.mrb[45].mxu0 }
 0x137   :  { %v2227_v19 = vpop.f32.mrb[46].mxu1  ;;  %1756 = vst.msk [vmem:[%s2987_s2 + $0xac] sm:$0xf] %vm1712_vm4, %v2087_v12  ;;  %v1186_v20 = vadd.f32 %v1185_v18, %v628_v15  ;;  %v2295_v21 = vpop.f32.mrb[46].mxu0 }
 0x138   :  { %v631_v22 = vpop.f32.mrb[47].mxu1  ;;  %1754 = vst.msk [vmem:[%s2987_s2 + $0xa4] sm:$0xf] %vm1712_vm4, %v2085_v16  ;;  %vm1310_vm1 = vcmp.gt.f32.partialorder %v1194_v17, 0.0  ;;  %v1374_v23 = vmul.f32 0.2, %v1194_v17  ;;  %v1197_v24 = vadd.f32 %v2295_v21, %v2227_v19 }
 0x139   :  { %v1188_v25 = vpop.f32.mrb[47].mxu0  ;;  %vm1308_vm2 = vcmp.gt.f32.partialorder %v1186_v20, 0.0  ;;  %v1372_v26 = vmul.f32 0.2, %v1186_v20 }
 0x13a   :  { %v1189_v27 = vadd.f32 %v1188_v25, %v631_v22  ;;  %v1438_v28 = vsel %vm1310_vm1, %v1194_v17, %v1374_v23  ;;  %vm1311_vm3 = vcmp.gt.f32.partialorder %v1197_v24, 0.0  ;;  %v1375_v29 = vmul.f32 0.2, %v1197_v24 }
 0x13b   :  { %v2090_v30 = vpack.c.bf16 %v1438_v28, %v1438_v28  ;;  %v1436_v31 = vsel %vm1308_vm2, %v1186_v20, %v1372_v26 }
 0x13c   :  { %vm1309_vm5 = vcmp.gt.f32.partialorder %v1189_v27, 0.0  ;;  %v1373_v32 = vmul.f32 0.2, %v1189_v27  ;;  %v2088_v33 = vpack.c.bf16 %v1436_v31, %v1436_v31  ;;  %v1439_v34 = vsel %vm1311_vm3, %v1197_v24, %v1375_v29 }
 0x13d   :  { %v2230_v35 = vpop.f32.mrb[48].mxu1  ;;  %1759 = vst.msk [vmem:[%s2987_s2 + $0xb8] sm:$0xf] %vm1712_vm4, %v2090_v30  ;;  %v2091_v36 = vpack.c.bf16 %v1439_v34, %v1439_v34  ;;  %v2298_v38 = vpop.f32.mrb[48].mxu0 }
 0x13e   :  { %v1437_v37 = vsel %vm1309_vm5, %v1189_v27, %v1373_v32  ;;  %v644_v39 = vpop.f32.mrb[49].mxu1  ;;  %1757 = vst.msk [vmem:[%s2987_s2 + $0xb0] sm:$0xf] %vm1712_vm4, %v2088_v33  ;;  %v1210_v41 = vadd.f32 %v2298_v38, %v2230_v35  ;;  %v1201_v42 = vpop.f32.mrb[49].mxu0 }
 0x13f   :  { %v2089_v40 = vpack.c.bf16 %v1437_v37, %v1437_v37  ;;  %v2231_v43 = vpop.f32.mrb[50].mxu1  ;;  %1760 = vst.msk [vmem:[%s2987_s2 + $0xbc] sm:$0xf] %vm1712_vm4, %v2091_v36  ;;  %v1202_v44 = vadd.f32 %v1201_v42, %v644_v39  ;;  %v2299_v45 = vpop.f32.mrb[50].mxu0 }
 0x140   :  { %v647_v46 = vpop.f32.mrb[51].mxu1  ;;  %vm1314_vm6 = vcmp.gt.f32.partialorder %v1210_v41, 0.0  ;;  %v1378_v47 = vmul.f32 0.2, %v1210_v41  ;;  %v1213_v48 = vadd.f32 %v2299_v45, %v2231_v43  ;;  %v1204_v49 = vpop.f32.mrb[51].mxu0 }
 0x141   :  { %1758 = vst.msk [vmem:[%s2987_s2 + $0xb4] sm:$0xf] %vm1712_vm4, %v2089_v40  ;;  %vm1312_vm7 = vcmp.gt.f32.partialorder %v1202_v44, 0.0  ;;  %v1376_v50 = vmul.f32 0.2, %v1202_v44  ;;  %v1205_v51 = vadd.f32 %v1204_v49, %v647_v46 }
 0x142   :  { %v1442_v52 = vsel %vm1314_vm6, %v1210_v41, %v1378_v47  ;;  %vm1315_vm8 = vcmp.gt.f32.partialorder %v1213_v48, 0.0  ;;  %v1379_v53 = vmul.f32 0.2, %v1213_v48 }
 0x143   :  { %v2094_v54 = vpack.c.bf16 %v1442_v52, %v1442_v52  ;;  %v1440_v55 = vsel %vm1312_vm7, %v1202_v44, %v1376_v50  ;;  %vm1313_vm9 = vcmp.gt.f32.partialorder %v1205_v51, 0.0  ;;  %v1377_v56 = vmul.f32 0.2, %v1205_v51 }
 0x144   :  { %v2092_v57 = vpack.c.bf16 %v1440_v55, %v1440_v55  ;;  %v1443_v58 = vsel %vm1315_vm8, %v1213_v48, %v1379_v53 }
 0x145   :  { %v2234_v59 = vpop.f32.mrb[52].mxu1  ;;  %1763 = vst.msk [vmem:[%s2987_s2 + $0xc8] sm:$0xf] %vm1712_vm4, %v2094_v54  ;;  %v2095_v60 = vpack.c.bf16 %v1443_v58, %v1443_v58  ;;  %v1441_v61 = vsel %vm1313_vm9, %v1205_v51, %v1377_v56  ;;  %v2302_v62 = vpop.f32.mrb[52].mxu0 }
 0x146   :  { %v660_v63 = vpop.f32.mrb[53].mxu1  ;;  %1761 = vst.msk [vmem:[%s2987_s2 + $0xc0] sm:$0xf] %vm1712_vm4, %v2092_v57  ;;  %v2093_v0 = vpack.c.bf16 %v1441_v61, %v1441_v61  ;;  %v1226_v1 = vadd.f32 %v2302_v62, %v2234_v59  ;;  %v1217_v2 = vpop.f32.mrb[53].mxu0 }
 0x147   :  { %v2235_v3 = vpop.f32.mrb[54].mxu1  ;;  %1764 = vst.msk [vmem:[%s2987_s2 + $0xcc] sm:$0xf] %vm1712_vm4, %v2095_v60  ;;  %v1218_v4 = vadd.f32 %v1217_v2, %v660_v63  ;;  %v2303_v5 = vpop.f32.mrb[54].mxu0 }
 0x148   :  { %v663_v6 = vpop.f32.mrb[55].mxu1  ;;  %1762 = vst.msk [vmem:[%s2987_s2 + $0xc4] sm:$0xf] %vm1712_vm4, %v2093_v0  ;;  %vm1318_vm10 = vcmp.gt.f32.partialorder %v1226_v1, 0.0  ;;  %v1382_v7 = vmul.f32 0.2, %v1226_v1  ;;  %v1229_v8 = vadd.f32 %v2303_v5, %v2235_v3 }
 0x149   :  { %v1220_v9 = vpop.f32.mrb[55].mxu0  ;;  %vm1316_vm11 = vcmp.gt.f32.partialorder %v1218_v4, 0.0  ;;  %v1380_v10 = vmul.f32 0.2, %v1218_v4 }
 0x14a   :  { %v1221_v11 = vadd.f32 %v1220_v9, %v663_v6  ;;  %v1446_v12 = vsel %vm1318_vm10, %v1226_v1, %v1382_v7  ;;  %vm1319_vm12 = vcmp.gt.f32.partialorder %v1229_v8, 0.0  ;;  %v1383_v13 = vmul.f32 0.2, %v1229_v8 }
 0x14b   :  { %v2098_v14 = vpack.c.bf16 %v1446_v12, %v1446_v12  ;;  %v1444_v15 = vsel %vm1316_vm11, %v1218_v4, %v1380_v10 }
 0x14c   :  { %vm1317_vm13 = vcmp.gt.f32.partialorder %v1221_v11, 0.0  ;;  %v1381_v16 = vmul.f32 0.2, %v1221_v11  ;;  %v2096_v17 = vpack.c.bf16 %v1444_v15, %v1444_v15  ;;  %v1447_v18 = vsel %vm1319_vm12, %v1229_v8, %v1383_v13 }
 0x14d   :  { %v2238_v19 = vpop.f32.mrb[56].mxu1  ;;  %1767 = vst.msk [vmem:[%s2987_s2 + $0xd8] sm:$0xf] %vm1712_vm4, %v2098_v14  ;;  %v2099_v20 = vpack.c.bf16 %v1447_v18, %v1447_v18  ;;  %v2306_v22 = vpop.f32.mrb[56].mxu0 }
 0x14e   :  { %v1445_v21 = vsel %vm1317_vm13, %v1221_v11, %v1381_v16  ;;  %v676_v23 = vpop.f32.mrb[57].mxu1  ;;  %1765 = vst.msk [vmem:[%s2987_s2 + $0xd0] sm:$0xf] %vm1712_vm4, %v2096_v17  ;;  %v1242_v25 = vadd.f32 %v2306_v22, %v2238_v19  ;;  %v1233_v26 = vpop.f32.mrb[57].mxu0 }
 0x14f   :  { %v2097_v24 = vpack.c.bf16 %v1445_v21, %v1445_v21  ;;  %v2239_v27 = vpop.f32.mrb[58].mxu1  ;;  %1768 = vst.msk [vmem:[%s2987_s2 + $0xdc] sm:$0xf] %vm1712_vm4, %v2099_v20  ;;  %v1234_v28 = vadd.f32 %v1233_v26, %v676_v23  ;;  %v2307_v29 = vpop.f32.mrb[58].mxu0 }
 0x150   :  { %v679_v30 = vpop.f32.mrb[59].mxu1  ;;  %vm1322_vm14 = vcmp.gt.f32.partialorder %v1242_v25, 0.0  ;;  %v1386_v31 = vmul.f32 0.2, %v1242_v25  ;;  %v1245_v32 = vadd.f32 %v2307_v29, %v2239_v27  ;;  %v1236_v33 = vpop.f32.mrb[59].mxu0 }
 0x151   :  { %1766 = vst.msk [vmem:[%s2987_s2 + $0xd4] sm:$0xf] %vm1712_vm4, %v2097_v24  ;;  %vm1320_vm15 = vcmp.gt.f32.partialorder %v1234_v28, 0.0  ;;  %v1384_v34 = vmul.f32 0.2, %v1234_v28  ;;  %v1237_v35 = vadd.f32 %v1236_v33, %v679_v30 }
 0x152   :  { %v1450_v36 = vsel %vm1322_vm14, %v1242_v25, %v1386_v31  ;;  %vm1323_vm0 = vcmp.gt.f32.partialorder %v1245_v32, 0.0  ;;  %v1387_v37 = vmul.f32 0.2, %v1245_v32 }
 0x153   :  { %v2102_v38 = vpack.c.bf16 %v1450_v36, %v1450_v36  ;;  %v1448_v39 = vsel %vm1320_vm15, %v1234_v28, %v1384_v34  ;;  %vm1321_vm1 = vcmp.gt.f32.partialorder %v1237_v35, 0.0  ;;  %v1385_v40 = vmul.f32 0.2, %v1237_v35 }
 0x154   :  { %v2100_v41 = vpack.c.bf16 %v1448_v39, %v1448_v39  ;;  %v1451_v42 = vsel %vm1323_vm0, %v1245_v32, %v1387_v37 }
 0x155   :  { %v2242_v43 = vpop.f32.mrb[60].mxu1  ;;  %1771 = vst.msk [vmem:[%s2987_s2 + $0xe8] sm:$0xf] %vm1712_vm4, %v2102_v38  ;;  %v2103_v44 = vpack.c.bf16 %v1451_v42, %v1451_v42  ;;  %v1449_v45 = vsel %vm1321_vm1, %v1237_v35, %v1385_v40  ;;  %v2310_v46 = vpop.f32.mrb[60].mxu0 }
 0x156   :  { %v692_v47 = vpop.f32.mrb[61].mxu1  ;;  %1769 = vst.msk [vmem:[%s2987_s2 + $0xe0] sm:$0xf] %vm1712_vm4, %v2100_v41  ;;  %v2101_v48 = vpack.c.bf16 %v1449_v45, %v1449_v45  ;;  %v1258_v49 = vadd.f32 %v2310_v46, %v2242_v43  ;;  %v1249_v50 = vpop.f32.mrb[61].mxu0 }
 0x157   :  { %v2243_v51 = vpop.f32.mrb[62].mxu1  ;;  %1772 = vst.msk [vmem:[%s2987_s2 + $0xec] sm:$0xf] %vm1712_vm4, %v2103_v44  ;;  %v1250_v52 = vadd.f32 %v1249_v50, %v692_v47  ;;  %v2311_v53 = vpop.f32.mrb[62].mxu0 }
 0x158   :  { %v695_v54 = vpop.f32.mrb[63].mxu1  ;;  %1770 = vst.msk [vmem:[%s2987_s2 + $0xe4] sm:$0xf] %vm1712_vm4, %v2101_v48  ;;  %vm1326_vm2 = vcmp.gt.f32.partialorder %v1258_v49, 0.0  ;;  %v1390_v55 = vmul.f32 0.2, %v1258_v49  ;;  %v1261_v56 = vadd.f32 %v2311_v53, %v2243_v51 }
 0x159   :  { %v1252_v57 = vpop.f32.mrb[63].mxu0  ;;  %vm1324_vm3 = vcmp.gt.f32.partialorder %v1250_v52, 0.0  ;;  %v1388_v58 = vmul.f32 0.2, %v1250_v52 }
 0x15a   :  { %v1253_v59 = vadd.f32 %v1252_v57, %v695_v54  ;;  %v1454_v60 = vsel %vm1326_vm2, %v1258_v49, %v1390_v55  ;;  %vm1327_vm5 = vcmp.gt.f32.partialorder %v1261_v56, 0.0  ;;  %v1391_v61 = vmul.f32 0.2, %v1261_v56 }
 0x15b   :  { %v2106_v62 = vpack.c.bf16 %v1454_v60, %v1454_v60  ;;  %v1452_v63 = vsel %vm1324_vm3, %v1250_v52, %v1388_v58 }
 0x15c   :  { %vm1325_vm6 = vcmp.gt.f32.partialorder %v1253_v59, 0.0  ;;  %v1389_v0 = vmul.f32 0.2, %v1253_v59  ;;  %v2104_v1 = vpack.c.bf16 %v1452_v63, %v1452_v63  ;;  %v1455_v2 = vsel %vm1327_vm5, %v1261_v56, %v1391_v61 }
 0x15d   :  { %1775 = vst.msk [vmem:[%s2987_s2 + $0xf8] sm:$0xf] %vm1712_vm4, %v2106_v62  ;;  %v2107_v3 = vpack.c.bf16 %v1455_v2, %v1455_v2 }
 0x15e   :  { %v1453_v4 = vsel %vm1325_vm6, %v1253_v59, %v1389_v0  ;;  %1773 = vst.msk [vmem:[%s2987_s2 + $0xf0] sm:$0xf] %vm1712_vm4, %v2104_v1 }
 0x15f   :  { %v2105_v5 = vpack.c.bf16 %v1453_v4, %v1453_v4  ;;  %1776 = vst.msk [vmem:[%s2987_s2 + $0xfc] sm:$0xf] %vm1712_vm4, %v2107_v3 }
 0x161   :  { %1774 = vst.msk [vmem:[%s2987_s2 + $0xf4] sm:$0xf] %vm1712_vm4, %v2105_v5 }

// kernel: discriminative_forward.5
= control target key start
LH: loop header
LB: loop body
LE: loop exit
PB: predicated region body
PF: predicated region fallthrough
CT: control target
= control target key end

     0   :  { %vm722_vm0 = vcmask 519168   ;;  %vm828_vm1 = vcmask 523264   ;;  %s1290_s4 = smov 64   ;;  %s1603_s1 = inlined_call_operand.vmem [shape: bf16[2,256,64], index: 1, kind: input, shape index: {}]   ;;  %s1604_s0 = inlined_call_operand.vmem [shape: bf16[2,128,256], index: 0, kind: input, shape index: {}]   ;;  %s1605_s2 = inlined_call_operand.vmem [shape: bf16[128,64], index: 2, kind: output, shape index: {0}]   ;;  %s1606_s3 = inlined_call_operand.vmem [shape: f32[1,8,128], index: 3, kind: output, shape index: {1}]  }
   0x1   :  { %v1210_v0 = vld [vmem:[%s1603_s1 + $0xc0] sm:$0xff]   ;;  %v1214_v4 = vld [vmem:[%s1603_s1 + $0xc8] sm:$0xff]   ;;  %v1218_v8 = vld [vmem:[%s1603_s1 + $0xd0] sm:$0xff]  }
   0x2   :  { %v1211_v1 = vld [vmem:[%s1603_s1 + $0x40] sm:$0xff]   ;;  %1081 = vmatprep.subr.bf16.mxu0 %v1210_v0  ;;  %v1215_v5 = vld [vmem:[%s1603_s1 + $0x48] sm:$0xff]   ;;  %v1219_v9 = vld [vmem:[%s1603_s1 + $0x50] sm:$0xff]  }
   0x3   :  { %v1212_v2 = vld [vmem:[%s1603_s1 + $0x80] sm:$0xff]   ;;  %1145 = vmatprep.subr.bf16.mxu1 %v1211_v1  ;;  %v1216_v6 = vld [vmem:[%s1603_s1 + $0x88] sm:$0xff]   ;;  %v1220_v10 = vld [vmem:[%s1603_s1 + $0x90] sm:$0xff]  }
   0x4   :  { %v1213_v3 = vld [vmem:[%s1603_s1] sm:$0xff]   ;;  %1082 = vmatpush3.bf16.msra.mxu0 %v1212_v2  ;;  %v1217_v7 = vld [vmem:[%s1603_s1 + $0x8] sm:$0xff]   ;;  %v1221_v11 = vld [vmem:[%s1603_s1 + $0x10] sm:$0xff]  }
   0x5   :  { %1146 = vmatpush3.bf16.msra.mxu1 %v1213_v3  ;;  %1083 = vmatprep.subr.bf16.mxu0 %v1214_v4  ;;  %v1222_v12 = vld [vmem:[%s1603_s1 + $0xd8] sm:$0xff]   ;;  %v1226_v16 = vld [vmem:[%s1603_s1 + $0xe0] sm:$0xff]   ;;  %v1230_v20 = vld [vmem:[%s1603_s1 + $0xe8] sm:$0xff]  }
   0x6   :  { %1147 = vmatprep.subr.bf16.mxu1 %v1215_v5  ;;  %v1223_v13 = vld [vmem:[%s1603_s1 + $0x58] sm:$0xff]   ;;  %v1227_v17 = vld [vmem:[%s1603_s1 + $0x60] sm:$0xff]   ;;  %v1231_v21 = vld [vmem:[%s1603_s1 + $0x68] sm:$0xff]  }
   0x7   :  { %v1224_v14 = vld [vmem:[%s1603_s1 + $0x98] sm:$0xff]   ;;  %v1228_v18 = vld [vmem:[%s1603_s1 + $0xa0] sm:$0xff]   ;;  %v1232_v22 = vld [vmem:[%s1603_s1 + $0xa8] sm:$0xff]  }
   0x8   :  { %1084 = vmatpush3.bf16.msra.mxu0 %v1216_v6  ;;  %v1225_v15 = vld [vmem:[%s1603_s1 + $0x18] sm:$0xff]   ;;  %v1229_v19 = vld [vmem:[%s1603_s1 + $0x20] sm:$0xff]   ;;  %v1233_v23 = vld [vmem:[%s1603_s1 + $0x28] sm:$0xff]  }
   0x9   :  { %1148 = vmatpush3.bf16.msra.mxu1 %v1217_v7  ;;  %1085 = vmatprep.subr.bf16.mxu0 %v1218_v8  ;;  %v1234_v24 = vld [vmem:[%s1603_s1 + $0xf0] sm:$0xff]   ;;  %v1238_v28 = vld [vmem:[%s1603_s1 + $0xf8] sm:$0xff]   ;;  %v1242_v32 = vld [vmem:[%s1604_s0 + $0x80] ss:$8 sps:$4 sm:$0xff]  }
   0xa   :  { %1149 = vmatprep.subr.bf16.mxu1 %v1219_v9  ;;  %v1235_v25 = vld [vmem:[%s1603_s1 + $0x70] sm:$0xff]   ;;  %v1239_v29 = vld [vmem:[%s1603_s1 + $0x78] sm:$0xff]   ;;  %v1244_v33 = vld [vmem:[%s1604_s0 + $0x84] ss:$8 sps:$4 sm:$0xff]  }
   0xb   :  { %v1236_v26 = vld [vmem:[%s1603_s1 + $0xb0] sm:$0xff]   ;;  %v1240_v30 = vld [vmem:[%s1603_s1 + $0xb8] sm:$0xff]   ;;  %v1245_v34 = vld [vmem:[%s1604_s0] ss:$8 sps:$4 sm:$0xff]   ;;  %320 = vmatprep.mubr.bf16.mxu0 %v1244_v33 }
   0xc   :  { %1086 = vmatpush3.bf16.msra.mxu0 %v1220_v10  ;;  %v1237_v27 = vld [vmem:[%s1603_s1 + $0x30] sm:$0xff]   ;;  %v1241_v31 = vld [vmem:[%s1603_s1 + $0x38] sm:$0xff]   ;;  %v1247_v35 = vld [vmem:[%s1604_s0 + $0x4] ss:$8 sps:$4 sm:$0xff]  }
   0xd   :  { %1150 = vmatpush3.bf16.msra.mxu1 %v1221_v11  ;;  %1087 = vmatprep.subr.bf16.mxu0 %v1222_v12  ;;  %v1248_v36 = vld [vmem:[%s1604_s0 + $0x94] ss:$8 sps:$4 sm:$0xff]   ;;  %v1252_v38 = vld [vmem:[%s1604_s0 + $0x90] ss:$8 sps:$4 sm:$0xff]   ;;  %v1254_v40 = vld [vmem:[%s1604_s0 + $0xa4] ss:$8 sps:$4 sm:$0xff]  }
   0xe   :  { %1151 = vmatprep.subr.bf16.mxu1 %v1223_v13  ;;  %593 = vmatprep.mubr.bf16.mxu1 %v1247_v35  ;;  %v1250_v37 = vld [vmem:[%s1604_s0 + $0x14] ss:$8 sps:$4 sm:$0xff]   ;;  %v1253_v39 = vld [vmem:[%s1604_s0 + $0x10] ss:$8 sps:$4 sm:$0xff]   ;;  %v1256_v41 = vld [vmem:[%s1604_s0 + $0x24] ss:$8 sps:$4 sm:$0xff]  }
   0xf   :  { %v1258_v42 = vld [vmem:[%s1604_s0 + $0xa0] ss:$8 sps:$4 sm:$0xff]   ;;  %v1260_v44 = vld [vmem:[%s1604_s0 + $0xb4] ss:$8 sps:$4 sm:$0xff]   ;;  %v1264_v46 = vld [vmem:[%s1604_s0 + $0xb0] ss:$8 sps:$4 sm:$0xff]  }
  0x10   :  { %1088 = vmatpush3.bf16.msra.mxu0 %v1224_v14  ;;  %v1259_v43 = vld [vmem:[%s1604_s0 + $0x20] ss:$8 sps:$4 sm:$0xff]   ;;  %v1262_v45 = vld [vmem:[%s1604_s0 + $0x34] ss:$8 sps:$4 sm:$0xff]   ;;  %v1265_v47 = vld [vmem:[%s1604_s0 + $0x30] ss:$8 sps:$4 sm:$0xff]  }
  0x11   :  { %1152 = vmatpush3.bf16.msra.mxu1 %v1225_v15  ;;  %1089 = vmatprep.subr.bf16.mxu0 %v1226_v16  ;;  %v1266_v48 = vld [vmem:[%s1604_s0 + $0xc4] ss:$8 sps:$4 sm:$0xff]   ;;  %v1270_v50 = vld [vmem:[%s1604_s0 + $0xc0] ss:$8 sps:$4 sm:$0xff]   ;;  %v1272_v52 = vld [vmem:[%s1604_s0 + $0xd4] ss:$8 sps:$4 sm:$0xff]  }
  0x12   :  { %1153 = vmatprep.subr.bf16.mxu1 %v1227_v17  ;;  %v1268_v49 = vld [vmem:[%s1604_s0 + $0x44] ss:$8 sps:$4 sm:$0xff]   ;;  %v1271_v51 = vld [vmem:[%s1604_s0 + $0x40] ss:$8 sps:$4 sm:$0xff]   ;;  %v1274_v53 = vld [vmem:[%s1604_s0 + $0x54] ss:$8 sps:$4 sm:$0xff]  }
  0x13   :  { %v1276_v54 = vld [vmem:[%s1604_s0 + $0xd0] ss:$8 sps:$4 sm:$0xff]   ;;  %v1278_v56 = vld [vmem:[%s1604_s0 + $0xe4] ss:$8 sps:$4 sm:$0xff]   ;;  %v1282_v58 = vld [vmem:[%s1604_s0 + $0xe0] ss:$8 sps:$4 sm:$0xff]  }
  0x14   :  { %1090 = vmatpush3.bf16.msra.mxu0 %v1228_v18  ;;  %v1277_v55 = vld [vmem:[%s1604_s0 + $0x50] ss:$8 sps:$4 sm:$0xff]   ;;  %v1280_v57 = vld [vmem:[%s1604_s0 + $0x64] ss:$8 sps:$4 sm:$0xff]   ;;  %v1283_v59 = vld [vmem:[%s1604_s0 + $0x60] ss:$8 sps:$4 sm:$0xff]  }
  0x15   :  { %1154 = vmatpush3.bf16.msra.mxu1 %v1229_v19  ;;  %1091 = vmatprep.subr.bf16.mxu0 %v1230_v20  ;;  %v1284_v60 = vld [vmem:[%s1604_s0 + $0xf4] ss:$8 sps:$4 sm:$0xff]   ;;  %v1288_v62 = vld [vmem:[%s1604_s0 + $0xf0] ss:$8 sps:$4 sm:$0xff]  }
  0x16   :  { %1155 = vmatprep.subr.bf16.mxu1 %v1231_v21  ;;  %v1286_v61 = vld [vmem:[%s1604_s0 + $0x74] ss:$8 sps:$4 sm:$0xff]   ;;  %v1289_v63 = vld [vmem:[%s1604_s0 + $0x70] ss:$8 sps:$4 sm:$0xff]  }
  0x18   :  { %1092 = vmatpush3.bf16.msra.mxu0 %v1232_v22 }
  0x19   :  { %1156 = vmatpush3.bf16.msra.mxu1 %v1233_v23  ;;  %1093 = vmatprep.subr.bf16.mxu0 %v1234_v24 }
  0x1a   :  { %1157 = vmatprep.subr.bf16.mxu1 %v1235_v25 }
  0x1c   :  { %1094 = vmatpush3.bf16.msra.mxu0 %v1236_v26 }
  0x1d   :  { %1158 = vmatpush3.bf16.msra.mxu1 %v1237_v27  ;;  %1095 = vmatprep.subr.bf16.mxu0 %v1238_v28 }
  0x1e   :  { %1159 = vmatprep.subr.bf16.mxu1 %v1239_v29 }
  0x20   :  { %1096 = vmatpush3.bf16.msra.mxu0 %v1240_v30 }
  0x21   :  { %1160 = vmatpush3.bf16.msra.mxu1 %v1241_v31 }
  0x23   :  { %321 = vmatmul.mubr.bf16.vlgmr.msra.gmra.mrb[0].mxu0 %v1242_v32 }
  0x24   :  { %594 = vmatmul.mubr.bf16.vlgmr.msra.gmra.mrb[0].mxu1 %v1245_v34  ;;  %328 = vmatprep.mubr.bf16.mxu0 %v1248_v36 }
  0x25   :  { %601 = vmatprep.mubr.bf16.mxu1 %v1250_v37 }
  0x2b   :  { %329 = vmatmul.mubr.bf16.gmra.mrb[4].mxu0 %v1252_v38 }
  0x2c   :  { %602 = vmatmul.mubr.bf16.gmra.mrb[4].mxu1 %v1253_v39  ;;  %336 = vmatprep.mubr.bf16.mxu0 %v1254_v40 }
  0x2d   :  { %609 = vmatprep.mubr.bf16.mxu1 %v1256_v41 }
  0x33   :  { %337 = vmatmul.mubr.bf16.gmra.mrb[8].mxu0 %v1258_v42 }
  0x34   :  { %610 = vmatmul.mubr.bf16.gmra.mrb[8].mxu1 %v1259_v43  ;;  %344 = vmatprep.mubr.bf16.mxu0 %v1260_v44 }
  0x35   :  { %617 = vmatprep.mubr.bf16.mxu1 %v1262_v45 }
  0x3b   :  { %345 = vmatmul.mubr.bf16.gmra.mrb[12].mxu0 %v1264_v46 }
  0x3c   :  { %618 = vmatmul.mubr.bf16.gmra.mrb[12].mxu1 %v1265_v47  ;;  %352 = vmatprep.mubr.bf16.mxu0 %v1266_v48 }
  0x3d   :  { %625 = vmatprep.mubr.bf16.mxu1 %v1268_v49 }
  0x43   :  { %353 = vmatmul.mubr.bf16.gmra.mrb[16].mxu0 %v1270_v50 }
  0x44   :  { %626 = vmatmul.mubr.bf16.gmra.mrb[16].mxu1 %v1271_v51  ;;  %360 = vmatprep.mubr.bf16.mxu0 %v1272_v52 }
  0x45   :  { %633 = vmatprep.mubr.bf16.mxu1 %v1274_v53 }
  0x4b   :  { %361 = vmatmul.mubr.bf16.gmra.mrb[20].mxu0 %v1276_v54 }
  0x4c   :  { %634 = vmatmul.mubr.bf16.gmra.mrb[20].mxu1 %v1277_v55  ;;  %368 = vmatprep.mubr.bf16.mxu0 %v1278_v56 }
  0x4d   :  { %641 = vmatprep.mubr.bf16.mxu1 %v1280_v57 }
  0x53   :  { %369 = vmatmul.mubr.bf16.gmra.mrb[24].mxu0 %v1282_v58 }
  0x54   :  { %642 = vmatmul.mubr.bf16.gmra.mrb[24].mxu1 %v1283_v59  ;;  %376 = vmatprep.mubr.bf16.mxu0 %v1284_v60 }
  0x55   :  { %649 = vmatprep.mubr.bf16.mxu1 %v1286_v61 }
  0x5b   :  { %377 = vmatmul.mubr.bf16.gmra.mrb[28].mxu0 %v1288_v62 }
  0x5c   :  { %650 = vmatmul.mubr.bf16.gmra.mrb[28].mxu1 %v1289_v63 }
  0xf6   :  { %v1097_v0 = vpop.f32.mrb[0].mxu0 }
  0xf7   :  { %v1161_v1 = vpop.f32.mrb[0].mxu1  ;;  %v1098_v2 = vpop.f32.mrb[1].mxu0 }
  0xf8   :  { %v1099_v3 = vadd.f32 %v1098_v2, %v1097_v0  ;;  %v1162_v4 = vpop.f32.mrb[1].mxu1  ;;  %v1100_v5 = vpop.f32.mrb[2].mxu0 }
  0xf9   :  { %v1163_v6 = vadd.f32 %v1162_v4, %v1161_v1  ;;  %v1164_v7 = vpop.f32.mrb[2].mxu1  ;;  %v1101_v8 = vpop.f32.mrb[3].mxu0 }
  0xfa   :  { %v1102_v9 = vadd.f32 %v1101_v8, %v1100_v5  ;;  %v1165_v10 = vpop.f32.mrb[3].mxu1 }
  0xfb   :  { %v596_v11 = vadd.f32 %v1163_v6, %v1099_v3  ;;  %v1166_v12 = vadd.f32 %v1165_v10, %v1164_v7 }
  0xfd   :  { %v1065_v13 = vpack.c.bf16 %v596_v11, %v596_v11  ;;  %v866_v14 = vmul.f32 %v596_v11, %v596_v11  ;;  %v599_v15 = vadd.f32 %v1166_v12, %v1102_v9  ;;  %v829_v17 = vsel %vm828_vm1, %v596_v11, 0.0 }
  0xfe   :  { %v1103_v16 = vpop.f32.mrb[4].mxu0 }
  0xff   :  { %723 = vst.msk [vmem:[%s1605_s2] sm:$0xf] %vm722_vm0, %v1065_v13  ;;  %v1066_v18 = vpack.c.bf16 %v599_v15, %v599_v15  ;;  %v830_v19 = vsel %vm828_vm1, %v599_v15, 0.0  ;;  %v867_v20 = vmul.f32 %v599_v15, %v599_v15  ;;  %v1167_v21 = vpop.f32.mrb[4].mxu1  ;;  %v1104_v22 = vpop.f32.mrb[5].mxu0  ;;  %v882_v27 = vsel %vm828_vm1, %v866_v14, 0.0 }
 0x100   :  { %v831_v23 = vadd.f32 %v830_v19, %v829_v17  ;;  %v1105_v24 = vadd.f32 %v1104_v22, %v1103_v16  ;;  %v1168_v25 = vpop.f32.mrb[5].mxu1  ;;  %v1106_v26 = vpop.f32.mrb[6].mxu0 }
 0x101   :  { %724 = vst.msk [vmem:[%s1605_s2 + $0x4] sm:$0xf] %vm722_vm0, %v1066_v18  ;;  %v883_v28 = vsel %vm828_vm1, %v867_v20, 0.0  ;;  %v1169_v29 = vadd.f32 %v1168_v25, %v1167_v21  ;;  %v1170_v30 = vpop.f32.mrb[6].mxu1  ;;  %v1107_v31 = vpop.f32.mrb[7].mxu0 }
 0x102   :  { %v884_v32 = vadd.f32 %v883_v28, %v882_v27  ;;  %v1108_v33 = vadd.f32 %v1107_v31, %v1106_v26  ;;  %v1171_v34 = vpop.f32.mrb[7].mxu1 }
 0x103   :  { %v604_v35 = vadd.f32 %v1169_v29, %v1105_v24  ;;  %v1172_v36 = vadd.f32 %v1171_v34, %v1170_v30 }
 0x105   :  { %v1067_v37 = vpack.c.bf16 %v604_v35, %v604_v35  ;;  %v832_v38 = vsel %vm828_vm1, %v604_v35, 0.0  ;;  %v868_v39 = vmul.f32 %v604_v35, %v604_v35  ;;  %v607_v40 = vadd.f32 %v1172_v36, %v1108_v33 }
 0x106   :  { %v833_v41 = vadd.f32 %v832_v38, %v831_v23  ;;  %v1109_v42 = vpop.f32.mrb[8].mxu0 }
 0x107   :  { %725 = vst.msk [vmem:[%s1605_s2 + $0x8] sm:$0xf] %vm722_vm0, %v1067_v37  ;;  %v885_v43 = vsel %vm828_vm1, %v868_v39, 0.0  ;;  %v1068_v44 = vpack.c.bf16 %v607_v40, %v607_v40  ;;  %v834_v45 = vsel %vm828_vm1, %v607_v40, 0.0  ;;  %v869_v46 = vmul.f32 %v607_v40, %v607_v40  ;;  %v1173_v47 = vpop.f32.mrb[8].mxu1  ;;  %v1110_v48 = vpop.f32.mrb[9].mxu0 }
 0x108   :  { %v886_v49 = vadd.f32 %v885_v43, %v884_v32  ;;  %v835_v50 = vadd.f32 %v834_v45, %v833_v41  ;;  %v1111_v51 = vadd.f32 %v1110_v48, %v1109_v42  ;;  %v1174_v52 = vpop.f32.mrb[9].mxu1  ;;  %v1112_v53 = vpop.f32.mrb[10].mxu0 }
 0x109   :  { %726 = vst.msk [vmem:[%s1605_s2 + $0xc] sm:$0xf] %vm722_vm0, %v1068_v44  ;;  %v887_v54 = vsel %vm828_vm1, %v869_v46, 0.0  ;;  %v1175_v55 = vadd.f32 %v1174_v52, %v1173_v47  ;;  %v1176_v56 = vpop.f32.mrb[10].mxu1  ;;  %v1113_v57 = vpop.f32.mrb[11].mxu0 }
 0x10a   :  { %v888_v58 = vadd.f32 %v887_v54, %v886_v49  ;;  %v1114_v59 = vadd.f32 %v1113_v57, %v1112_v53  ;;  %v1177_v60 = vpop.f32.mrb[11].mxu1 }
 0x10b   :  { %v612_v61 = vadd.f32 %v1175_v55, %v1111_v51  ;;  %v1178_v62 = vadd.f32 %v1177_v60, %v1176_v56 }
 0x10d   :  { %v1069_v63 = vpack.c.bf16 %v612_v61, %v612_v61  ;;  %v836_v0 = vsel %vm828_vm1, %v612_v61, 0.0  ;;  %v870_v1 = vmul.f32 %v612_v61, %v612_v61  ;;  %v615_v2 = vadd.f32 %v1178_v62, %v1114_v59 }
 0x10e   :  { %v837_v3 = vadd.f32 %v836_v0, %v835_v50  ;;  %v1115_v4 = vpop.f32.mrb[12].mxu0 }
 0x10f   :  { %727 = vst.msk [vmem:[%s1605_s2 + $0x10] sm:$0xf] %vm722_vm0, %v1069_v63  ;;  %v889_v5 = vsel %vm828_vm1, %v870_v1, 0.0  ;;  %v1070_v6 = vpack.c.bf16 %v615_v2, %v615_v2  ;;  %v838_v7 = vsel %vm828_vm1, %v615_v2, 0.0  ;;  %v871_v8 = vmul.f32 %v615_v2, %v615_v2  ;;  %v1179_v9 = vpop.f32.mrb[12].mxu1  ;;  %v1116_v10 = vpop.f32.mrb[13].mxu0 }
 0x110   :  { %v890_v11 = vadd.f32 %v889_v5, %v888_v58  ;;  %v839_v12 = vadd.f32 %v838_v7, %v837_v3  ;;  %v1117_v13 = vadd.f32 %v1116_v10, %v1115_v4  ;;  %v1180_v14 = vpop.f32.mrb[13].mxu1  ;;  %v1118_v15 = vpop.f32.mrb[14].mxu0 }
 0x111   :  { %728 = vst.msk [vmem:[%s1605_s2 + $0x14] sm:$0xf] %vm722_vm0, %v1070_v6  ;;  %v891_v16 = vsel %vm828_vm1, %v871_v8, 0.0  ;;  %v1181_v17 = vadd.f32 %v1180_v14, %v1179_v9  ;;  %v1182_v18 = vpop.f32.mrb[14].mxu1  ;;  %v1119_v19 = vpop.f32.mrb[15].mxu0 }
 0x112   :  { %v892_v20 = vadd.f32 %v891_v16, %v890_v11  ;;  %v1120_v21 = vadd.f32 %v1119_v19, %v1118_v15  ;;  %v1183_v22 = vpop.f32.mrb[15].mxu1 }
 0x113   :  { %v620_v23 = vadd.f32 %v1181_v17, %v1117_v13  ;;  %v1184_v24 = vadd.f32 %v1183_v22, %v1182_v18 }
 0x115   :  { %v1071_v25 = vpack.c.bf16 %v620_v23, %v620_v23  ;;  %v840_v26 = vsel %vm828_vm1, %v620_v23, 0.0  ;;  %v872_v27 = vmul.f32 %v620_v23, %v620_v23  ;;  %v623_v28 = vadd.f32 %v1184_v24, %v1120_v21 }
 0x116   :  { %v841_v29 = vadd.f32 %v840_v26, %v839_v12  ;;  %v1121_v30 = vpop.f32.mrb[16].mxu0 }
 0x117   :  { %729 = vst.msk [vmem:[%s1605_s2 + $0x18] sm:$0xf] %vm722_vm0, %v1071_v25  ;;  %v893_v31 = vsel %vm828_vm1, %v872_v27, 0.0  ;;  %v1072_v32 = vpack.c.bf16 %v623_v28, %v623_v28  ;;  %v842_v33 = vsel %vm828_vm1, %v623_v28, 0.0  ;;  %v873_v34 = vmul.f32 %v623_v28, %v623_v28  ;;  %v1185_v35 = vpop.f32.mrb[16].mxu1  ;;  %v1122_v36 = vpop.f32.mrb[17].mxu0 }
 0x118   :  { %v894_v37 = vadd.f32 %v893_v31, %v892_v20  ;;  %v843_v38 = vadd.f32 %v842_v33, %v841_v29  ;;  %v1123_v39 = vadd.f32 %v1122_v36, %v1121_v30  ;;  %v1186_v40 = vpop.f32.mrb[17].mxu1  ;;  %v1124_v41 = vpop.f32.mrb[18].mxu0 }
 0x119   :  { %730 = vst.msk [vmem:[%s1605_s2 + $0x1c] sm:$0xf] %vm722_vm0, %v1072_v32  ;;  %v895_v42 = vsel %vm828_vm1, %v873_v34, 0.0  ;;  %v1187_v43 = vadd.f32 %v1186_v40, %v1185_v35  ;;  %v1188_v44 = vpop.f32.mrb[18].mxu1  ;;  %v1125_v45 = vpop.f32.mrb[19].mxu0 }
 0x11a   :  { %v896_v46 = vadd.f32 %v895_v42, %v894_v37  ;;  %v1126_v47 = vadd.f32 %v1125_v45, %v1124_v41  ;;  %v1189_v48 = vpop.f32.mrb[19].mxu1 }
 0x11b   :  { %v628_v49 = vadd.f32 %v1187_v43, %v1123_v39  ;;  %v1190_v50 = vadd.f32 %v1189_v48, %v1188_v44 }
 0x11d   :  { %v1073_v51 = vpack.c.bf16 %v628_v49, %v628_v49  ;;  %v844_v52 = vsel %vm828_vm1, %v628_v49, 0.0  ;;  %v874_v53 = vmul.f32 %v628_v49, %v628_v49  ;;  %v631_v54 = vadd.f32 %v1190_v50, %v1126_v47 }
 0x11e   :  { %v845_v55 = vadd.f32 %v844_v52, %v843_v38  ;;  %v1127_v56 = vpop.f32.mrb[20].mxu0 }
 0x11f   :  { %731 = vst.msk [vmem:[%s1605_s2 + $0x20] sm:$0xf] %vm722_vm0, %v1073_v51  ;;  %v897_v57 = vsel %vm828_vm1, %v874_v53, 0.0  ;;  %v1074_v58 = vpack.c.bf16 %v631_v54, %v631_v54  ;;  %v846_v59 = vsel %vm828_vm1, %v631_v54, 0.0  ;;  %v875_v60 = vmul.f32 %v631_v54, %v631_v54  ;;  %v1191_v61 = vpop.f32.mrb[20].mxu1  ;;  %v1128_v62 = vpop.f32.mrb[21].mxu0 }
 0x120   :  { %v898_v63 = vadd.f32 %v897_v57, %v896_v46  ;;  %v847_v0 = vadd.f32 %v846_v59, %v845_v55  ;;  %v1129_v1 = vadd.f32 %v1128_v62, %v1127_v56  ;;  %v1192_v2 = vpop.f32.mrb[21].mxu1  ;;  %v1130_v3 = vpop.f32.mrb[22].mxu0 }
 0x121   :  { %732 = vst.msk [vmem:[%s1605_s2 + $0x24] sm:$0xf] %vm722_vm0, %v1074_v58  ;;  %v899_v4 = vsel %vm828_vm1, %v875_v60, 0.0  ;;  %v1193_v5 = vadd.f32 %v1192_v2, %v1191_v61  ;;  %v1194_v6 = vpop.f32.mrb[22].mxu1  ;;  %v1131_v7 = vpop.f32.mrb[23].mxu0 }
 0x122   :  { %v900_v8 = vadd.f32 %v899_v4, %v898_v63  ;;  %v1132_v9 = vadd.f32 %v1131_v7, %v1130_v3  ;;  %v1195_v10 = vpop.f32.mrb[23].mxu1 }
 0x123   :  { %v636_v11 = vadd.f32 %v1193_v5, %v1129_v1  ;;  %v1196_v12 = vadd.f32 %v1195_v10, %v1194_v6 }
 0x125   :  { %v1075_v13 = vpack.c.bf16 %v636_v11, %v636_v11  ;;  %v848_v14 = vsel %vm828_vm1, %v636_v11, 0.0  ;;  %v876_v15 = vmul.f32 %v636_v11, %v636_v11  ;;  %v639_v16 = vadd.f32 %v1196_v12, %v1132_v9 }
 0x126   :  { %v849_v17 = vadd.f32 %v848_v14, %v847_v0  ;;  %v1133_v18 = vpop.f32.mrb[24].mxu0 }
 0x127   :  { %733 = vst.msk [vmem:[%s1605_s2 + $0x28] sm:$0xf] %vm722_vm0, %v1075_v13  ;;  %v901_v19 = vsel %vm828_vm1, %v876_v15, 0.0  ;;  %v1076_v20 = vpack.c.bf16 %v639_v16, %v639_v16  ;;  %v850_v21 = vsel %vm828_vm1, %v639_v16, 0.0  ;;  %v877_v22 = vmul.f32 %v639_v16, %v639_v16  ;;  %v1197_v23 = vpop.f32.mrb[24].mxu1  ;;  %v1134_v24 = vpop.f32.mrb[25].mxu0 }
 0x128   :  { %v902_v25 = vadd.f32 %v901_v19, %v900_v8  ;;  %v851_v26 = vadd.f32 %v850_v21, %v849_v17  ;;  %v1135_v27 = vadd.f32 %v1134_v24, %v1133_v18  ;;  %v1198_v28 = vpop.f32.mrb[25].mxu1  ;;  %v1136_v29 = vpop.f32.mrb[26].mxu0 }
 0x129   :  { %734 = vst.msk [vmem:[%s1605_s2 + $0x2c] sm:$0xf] %vm722_vm0, %v1076_v20  ;;  %v903_v30 = vsel %vm828_vm1, %v877_v22, 0.0  ;;  %v1199_v31 = vadd.f32 %v1198_v28, %v1197_v23  ;;  %v1200_v32 = vpop.f32.mrb[26].mxu1  ;;  %v1137_v33 = vpop.f32.mrb[27].mxu0  ;;  %v924_v23 = vlaneseq }
 0x12a   :  { %v904_v34 = vadd.f32 %v903_v30, %v902_v25  ;;  %v1138_v35 = vadd.f32 %v1137_v33, %v1136_v29  ;;  %v1201_v36 = vpop.f32.mrb[27].mxu1 }
 0x12b   :  { %v644_v37 = vadd.f32 %v1199_v31, %v1135_v27  ;;  %v1202_v38 = vadd.f32 %v1201_v36, %v1200_v32  ;;  %v925_v25 = vshrl.u32 %v924_v23, 7 }
 0x12d   :  { %v1077_v39 = vpack.c.bf16 %v644_v37, %v644_v37  ;;  %v852_v40 = vsel %vm828_vm1, %v644_v37, 0.0  ;;  %v878_v41 = vmul.f32 %v644_v37, %v644_v37  ;;  %v647_v42 = vadd.f32 %v1202_v38, %v1138_v35 }
 0x12e   :  { %v853_v43 = vadd.f32 %v852_v40, %v851_v26  ;;  %v1139_v44 = vpop.f32.mrb[28].mxu0  ;;  %v926_v27 = vsub.s32 0, %v925_v25 }
 0x12f   :  { %735 = vst.msk [vmem:[%s1605_s2 + $0x30] sm:$0xf] %vm722_vm0, %v1077_v39  ;;  %v905_v45 = vsel %vm828_vm1, %v878_v41, 0.0  ;;  %v1078_v46 = vpack.c.bf16 %v647_v42, %v647_v42  ;;  %v854_v47 = vsel %vm828_vm1, %v647_v42, 0.0  ;;  %v879_v48 = vmul.f32 %v647_v42, %v647_v42  ;;  %v1203_v49 = vpop.f32.mrb[28].mxu1  ;;  %v1140_v50 = vpop.f32.mrb[29].mxu0 }
 0x130   :  { %v906_v51 = vadd.f32 %v905_v45, %v904_v34  ;;  %v855_v52 = vadd.f32 %v854_v47, %v853_v43  ;;  %v1141_v53 = vadd.f32 %v1140_v50, %v1139_v44  ;;  %v1204_v54 = vpop.f32.mrb[29].mxu1  ;;  %v1142_v55 = vpop.f32.mrb[30].mxu0 }
 0x131   :  { %736 = vst.msk [vmem:[%s1605_s2 + $0x34] sm:$0xf] %vm722_vm0, %v1078_v46  ;;  %v907_v56 = vsel %vm828_vm1, %v879_v48, 0.0  ;;  %v1205_v57 = vadd.f32 %v1204_v54, %v1203_v49  ;;  %v1206_v58 = vpop.f32.mrb[30].mxu1  ;;  %v1143_v59 = vpop.f32.mrb[31].mxu0 }
 0x132   :  { %v908_v60 = vadd.f32 %v907_v56, %v906_v51  ;;  %v1144_v61 = vadd.f32 %v1143_v59, %v1142_v55  ;;  %v1207_v62 = vpop.f32.mrb[31].mxu1 }
 0x133   :  { %v652_v63 = vadd.f32 %v1205_v57, %v1141_v53  ;;  %v1208_v0 = vadd.f32 %v1207_v62, %v1206_v58 }
 0x135   :  { %v1079_v1 = vpack.c.bf16 %v652_v63, %v652_v63  ;;  %v856_v2 = vsel %vm828_vm1, %v652_v63, 0.0  ;;  %v880_v3 = vmul.f32 %v652_v63, %v652_v63  ;;  %v655_v4 = vadd.f32 %v1208_v0, %v1144_v61 }
 0x136   :  { %v857_v5 = vadd.f32 %v856_v2, %v855_v52 }
 0x137   :  { %737 = vst.msk [vmem:[%s1605_s2 + $0x38] sm:$0xf] %vm722_vm0, %v1079_v1  ;;  %v909_v6 = vsel %vm828_vm1, %v880_v3, 0.0  ;;  %v1080_v7 = vpack.c.bf16 %v655_v4, %v655_v4  ;;  %v858_v8 = vsel %vm828_vm1, %v655_v4, 0.0  ;;  %v881_v9 = vmul.f32 %v655_v4, %v655_v4 }
 0x138   :  { %v859_v10 = vadd.f32 %v858_v8, %v857_v5  ;;  %v910_v11 = vadd.f32 %v909_v6, %v908_v60 }
 0x139   :  { %738 = vst.msk [vmem:[%s1605_s2 + $0x3c] sm:$0xf] %vm722_vm0, %v1080_v7  ;;  %v911_v12 = vsel %vm828_vm1, %v881_v9, 0.0 }
 0x13a   :  { %v912_v13 = vadd.f32 %v911_v12, %v910_v11  ;;  %v860_v20 = vrot.slane %v859_v10, 4 }
 0x13c   :  { %v913_v14 = vrot.slane %v912_v13, 4  ;;  %v861_v21 = vadd.f32 %v860_v20, %v859_v10 }
 0x13e   :  { %v914_v15 = vadd.f32 %v913_v14, %v912_v13  ;;  %v862_v22 = vrot.slane %v861_v21, 2 }
 0x140   :  { %v915_v16 = vrot.slane %v914_v15, 2  ;;  %v863_v24 = vadd.f32 %v862_v22, %v861_v21 }
 0x142   :  { %v916_v17 = vadd.f32 %v915_v16, %v914_v15  ;;  %v864_v26 = vrot.slane %v863_v24, 1 }
 0x144   :  { %v917_v18 = vrot.slane %v916_v17, 1  ;;  %v865_v28 = vadd.f32 %v864_v26, %v863_v24 }
 0x146   :  { %v918_v19 = vadd.f32 %v917_v18, %v916_v17 }
 0x148   :  { %920 = vrot.lane.b32.xlu0 %v918_v19, %s1290_s4 }
 0x1ba   :  { %v921_v29 = vpop.permute.xlu0 %920 }
 0x1bb   :  { %v923_v30 = vsel %vm828_vm1, %v865_v28, %v921_v29 }
 0x1bc   :  { %v927_v31 = vrot.slane %v923_v30, %v926_v27 }
 0x1be   :  { %928 = vst [vmem:[%s1606_s3] sm:$0xff] %v927_v31 }

// kernel: discriminative_forward.6
= control target key start
LH: loop header
LB: loop body
LE: loop exit
PB: predicated region body
PF: predicated region fallthrough
CT: control target
= control target key end

     0   :  { %s1552_s1 = inlined_call_operand.vmem [shape: bf16[2,512,128], index: 1, kind: input, shape index: {}]   ;;  %s1553_s0 = inlined_call_operand.vmem [shape: bf16[2,32,512], index: 0, kind: input, shape index: {}]   ;;  %s1554_s2 = inlined_call_operand.vmem [shape: bf16[32,128], index: 2, kind: output, shape index: {0}]   ;;  %s1555_s3 = inlined_call_operand.vmem [shape: f32[1,8,256], index: 3, kind: output, shape index: {1}]  }
   0x1   :  { %v1192_v0 = vld [vmem:[%s1552_s1 + $0x140] sm:$0xff]   ;;  %v1196_v4 = vld [vmem:[%s1552_s1 + $0x148] sm:$0xff]   ;;  %v1200_v8 = vld [vmem:[%s1552_s1 + $0x150] sm:$0xff]  }
   0x2   :  { %v1193_v1 = vld [vmem:[%s1552_s1 + $0x1c0] sm:$0xff]   ;;  %1080 = vmatprep.subr.bf16.mxu0 %v1192_v0  ;;  %v1197_v5 = vld [vmem:[%s1552_s1 + $0x1c8] sm:$0xff]   ;;  %v1201_v9 = vld [vmem:[%s1552_s1 + $0x1d0] sm:$0xff]  }
   0x3   :  { %v1194_v2 = vld [vmem:[%s1552_s1 + $0x100] sm:$0xff]   ;;  %1108 = vmatprep.subr.bf16.mxu1 %v1193_v1  ;;  %v1198_v6 = vld [vmem:[%s1552_s1 + $0x108] sm:$0xff]   ;;  %v1202_v10 = vld [vmem:[%s1552_s1 + $0x110] sm:$0xff]  }
   0x4   :  { %v1195_v3 = vld [vmem:[%s1552_s1 + $0x180] sm:$0xff]   ;;  %1081 = vmatpush3.bf16.msra.mxu0 %v1194_v2  ;;  %v1199_v7 = vld [vmem:[%s1552_s1 + $0x188] sm:$0xff]   ;;  %v1203_v11 = vld [vmem:[%s1552_s1 + $0x190] sm:$0xff]  }
   0x5   :  { %1109 = vmatpush3.bf16.msra.mxu1 %v1195_v3  ;;  %1082 = vmatprep.subr.bf16.mxu0 %v1196_v4  ;;  %v1204_v12 = vld [vmem:[%s1552_s1 + $0x158] sm:$0xff]   ;;  %v1208_v16 = vld [vmem:[%s1552_s1 + $0x160] sm:$0xff]   ;;  %v1212_v20 = vld [vmem:[%s1552_s1 + $0x168] sm:$0xff]  }
   0x6   :  { %1110 = vmatprep.subr.bf16.mxu1 %v1197_v5  ;;  %v1205_v13 = vld [vmem:[%s1552_s1 + $0x1d8] sm:$0xff]   ;;  %v1209_v17 = vld [vmem:[%s1552_s1 + $0x1e0] sm:$0xff]   ;;  %v1213_v21 = vld [vmem:[%s1552_s1 + $0x1e8] sm:$0xff]  }
   0x7   :  { %v1206_v14 = vld [vmem:[%s1552_s1 + $0x118] sm:$0xff]   ;;  %v1210_v18 = vld [vmem:[%s1552_s1 + $0x120] sm:$0xff]   ;;  %v1214_v22 = vld [vmem:[%s1552_s1 + $0x128] sm:$0xff]  }
   0x8   :  { %1083 = vmatpush3.bf16.msra.mxu0 %v1198_v6  ;;  %v1207_v15 = vld [vmem:[%s1552_s1 + $0x198] sm:$0xff]   ;;  %v1211_v19 = vld [vmem:[%s1552_s1 + $0x1a0] sm:$0xff]   ;;  %v1215_v23 = vld [vmem:[%s1552_s1 + $0x1a8] sm:$0xff]  }
   0x9   :  { %1111 = vmatpush3.bf16.msra.mxu1 %v1199_v7  ;;  %1084 = vmatprep.subr.bf16.mxu0 %v1200_v8  ;;  %v1216_v24 = vld [vmem:[%s1552_s1 + $0x170] sm:$0xff]   ;;  %v1220_v28 = vld [vmem:[%s1552_s1 + $0x178] sm:$0xff]   ;;  %v1230_v36 = vld [vmem:[%s1552_s1 + $0x40] sm:$0xff]  }
   0xa   :  { %1112 = vmatprep.subr.bf16.mxu1 %v1201_v9  ;;  %v1217_v25 = vld [vmem:[%s1552_s1 + $0x1f0] sm:$0xff]   ;;  %v1221_v29 = vld [vmem:[%s1552_s1 + $0x1f8] sm:$0xff]   ;;  %v1231_v37 = vld [vmem:[%s1552_s1 + $0xc0] sm:$0xff]  }
   0xb   :  { %v1218_v26 = vld [vmem:[%s1552_s1 + $0x130] sm:$0xff]   ;;  %v1222_v30 = vld [vmem:[%s1552_s1 + $0x138] sm:$0xff]   ;;  %v1232_v38 = vld [vmem:[%s1552_s1] sm:$0xff]  }
   0xc   :  { %1085 = vmatpush3.bf16.msra.mxu0 %v1202_v10  ;;  %v1219_v27 = vld [vmem:[%s1552_s1 + $0x1b0] sm:$0xff]   ;;  %v1223_v31 = vld [vmem:[%s1552_s1 + $0x1b8] sm:$0xff]   ;;  %v1233_v39 = vld [vmem:[%s1552_s1 + $0x80] sm:$0xff]  }
   0xd   :  { %1113 = vmatpush3.bf16.msra.mxu1 %v1203_v11  ;;  %1086 = vmatprep.subr.bf16.mxu0 %v1204_v12  ;;  %v1224_v32 = vld [vmem:[%s1553_s0 + $0x40] ss:$16 sps:$4 sm:$0xff]   ;;  %v1226_v33 = vld [vmem:[%s1553_s0 + $0x44] ss:$16 sps:$4 sm:$0xff]   ;;  %v1227_v34 = vld [vmem:[%s1553_s0 + $0x48] ss:$16 sps:$4 sm:$0xff]  }
   0xe   :  { %1114 = vmatprep.subr.bf16.mxu1 %v1205_v13  ;;  %v1229_v35 = vld [vmem:[%s1553_s0 + $0x4c] ss:$16 sps:$4 sm:$0xff]   ;;  %424 = vmatprep.mubr.bf16.mxu0 %v1226_v33  ;;  %v1238_v44 = vld [vmem:[%s1552_s1 + $0x50] sm:$0xff]   ;;  %v1246_v52 = vld [vmem:[%s1552_s1 + $0x60] sm:$0xff]  }
   0xf   :  { %473 = vmatprep.mubr.bf16.mxu1 %v1229_v35  ;;  %v1234_v40 = vld [vmem:[%s1552_s1 + $0x48] sm:$0xff]   ;;  %v1239_v45 = vld [vmem:[%s1552_s1 + $0xd0] sm:$0xff]   ;;  %v1242_v48 = vld [vmem:[%s1552_s1 + $0x58] sm:$0xff]  }
  0x10   :  { %1087 = vmatpush3.bf16.msra.mxu0 %v1206_v14  ;;  %v1235_v41 = vld [vmem:[%s1552_s1 + $0xc8] sm:$0xff]   ;;  %v1240_v46 = vld [vmem:[%s1552_s1 + $0x10] sm:$0xff]   ;;  %v1243_v49 = vld [vmem:[%s1552_s1 + $0xd8] sm:$0xff]  }
  0x11   :  { %1115 = vmatpush3.bf16.msra.mxu1 %v1207_v15  ;;  %1088 = vmatprep.subr.bf16.mxu0 %v1208_v16  ;;  %v1236_v42 = vld [vmem:[%s1552_s1 + $0x8] sm:$0xff]   ;;  %v1241_v47 = vld [vmem:[%s1552_s1 + $0x90] sm:$0xff]   ;;  %v1244_v50 = vld [vmem:[%s1552_s1 + $0x18] sm:$0xff]  }
  0x12   :  { %1116 = vmatprep.subr.bf16.mxu1 %v1209_v17  ;;  %v1237_v43 = vld [vmem:[%s1552_s1 + $0x88] sm:$0xff]   ;;  %v1245_v51 = vld [vmem:[%s1552_s1 + $0x98] sm:$0xff]   ;;  %v1247_v53 = vld [vmem:[%s1552_s1 + $0xe0] sm:$0xff]  }
  0x13   :  { %v1248_v54 = vld [vmem:[%s1552_s1 + $0x20] sm:$0xff]   ;;  %v1252_v57 = vld [vmem:[%s1553_s0 + $0x6c] ss:$16 sps:$4 sm:$0xff]   ;;  %v1257_v61 = vld [vmem:[%s1553_s0 + $0x68] ss:$16 sps:$4 sm:$0xff]  }
  0x14   :  { %1089 = vmatpush3.bf16.msra.mxu0 %v1210_v18  ;;  %v1249_v55 = vld [vmem:[%s1552_s1 + $0xa0] sm:$0xff]   ;;  %v1254_v58 = vld [vmem:[%s1552_s1 + $0x68] sm:$0xff]   ;;  %v1260_v0 = vld [vmem:[%s1552_s1 + $0x70] sm:$0xff]  }
  0x15   :  { %1117 = vmatpush3.bf16.msra.mxu1 %v1211_v19  ;;  %1090 = vmatprep.subr.bf16.mxu0 %v1212_v20  ;;  %v1250_v56 = vld [vmem:[%s1553_s0 + $0x64] ss:$16 sps:$4 sm:$0xff]   ;;  %v1255_v59 = vld [vmem:[%s1552_s1 + $0xe8] sm:$0xff]   ;;  %v1256_v60 = vld [vmem:[%s1553_s0 + $0x60] ss:$16 sps:$4 sm:$0xff]  }
  0x16   :  { %1118 = vmatprep.subr.bf16.mxu1 %v1213_v21  ;;  %v1258_v62 = vld [vmem:[%s1552_s1 + $0x28] sm:$0xff]   ;;  %v1261_v1 = vld [vmem:[%s1552_s1 + $0xf0] sm:$0xff]   ;;  %v1264_v4 = vld [vmem:[%s1552_s1 + $0x78] sm:$0xff]  }
  0x17   :  { %v1259_v63 = vld [vmem:[%s1552_s1 + $0xa8] sm:$0xff]   ;;  %v1262_v2 = vld [vmem:[%s1552_s1 + $0x30] sm:$0xff]   ;;  %v1265_v5 = vld [vmem:[%s1552_s1 + $0xf8] sm:$0xff]  }
  0x18   :  { %1091 = vmatpush3.bf16.msra.mxu0 %v1214_v22  ;;  %v1263_v3 = vld [vmem:[%s1552_s1 + $0xb0] sm:$0xff]   ;;  %v1266_v6 = vld [vmem:[%s1552_s1 + $0x38] sm:$0xff]  }
  0x19   :  { %1119 = vmatpush3.bf16.msra.mxu1 %v1215_v23  ;;  %1092 = vmatprep.subr.bf16.mxu0 %v1216_v24  ;;  %v1267_v7 = vld [vmem:[%s1552_s1 + $0xb8] sm:$0xff]   ;;  %v1268_v8 = vld [vmem:[%s1553_s0] ss:$16 sps:$4 sm:$0xff]   ;;  %v1270_v9 = vld [vmem:[%s1553_s0 + $0x4] ss:$16 sps:$4 sm:$0xff]  }
  0x1a   :  { %1120 = vmatprep.subr.bf16.mxu1 %v1217_v25  ;;  %v1271_v10 = vld [vmem:[%s1553_s0 + $0x8] ss:$16 sps:$4 sm:$0xff]   ;;  %v1273_v11 = vld [vmem:[%s1553_s0 + $0xc] ss:$16 sps:$4 sm:$0xff]   ;;  %v1274_v12 = vld [vmem:[%s1553_s0 + $0x24] ss:$16 sps:$4 sm:$0xff]  }
  0x1b   :  { %v1276_v13 = vld [vmem:[%s1553_s0 + $0x2c] ss:$16 sps:$4 sm:$0xff]   ;;  %v1278_v14 = vld [vmem:[%s1553_s0 + $0x20] ss:$16 sps:$4 sm:$0xff]   ;;  %v1279_v15 = vld [vmem:[%s1553_s0 + $0x28] ss:$16 sps:$4 sm:$0xff]  }
  0x1c   :  { %1093 = vmatpush3.bf16.msra.mxu0 %v1218_v26 }
  0x1d   :  { %1121 = vmatpush3.bf16.msra.mxu1 %v1219_v27  ;;  %1094 = vmatprep.subr.bf16.mxu0 %v1220_v28 }
  0x1e   :  { %1122 = vmatprep.subr.bf16.mxu1 %v1221_v29 }
  0x20   :  { %1095 = vmatpush3.bf16.msra.mxu0 %v1222_v30 }
  0x21   :  { %1123 = vmatpush3.bf16.msra.mxu1 %v1223_v31  ;;  %1136 = vmatprep.subr.bf16.mxu0 %v1230_v36 }
  0x22   :  { %1164 = vmatprep.subr.bf16.mxu1 %v1231_v37 }
  0x23   :  { %425 = vmatmul.mubr.bf16.vlgmr.msra.gmra.mrb[0].mxu0 %v1224_v32 }
  0x24   :  { %474 = vmatmul.mubr.bf16.vlgmr.msra.gmra.mrb[0].mxu1 %v1227_v34  ;;  %1137 = vmatpush3.bf16.msra.mxu0 %v1232_v38 }
  0x25   :  { %1165 = vmatpush3.bf16.msra.mxu1 %v1233_v39  ;;  %1138 = vmatprep.subr.bf16.mxu0 %v1234_v40 }
  0x26   :  { %1166 = vmatprep.subr.bf16.mxu1 %v1235_v41  ;;  %432 = vmatprep.mubr.bf16.mxu0 %v1250_v56 }
  0x27   :  { %481 = vmatprep.mubr.bf16.mxu1 %v1252_v57 }
  0x28   :  { %1139 = vmatpush3.bf16.msra.mxu0 %v1236_v42 }
  0x29   :  { %1167 = vmatpush3.bf16.msra.mxu1 %v1237_v43  ;;  %1140 = vmatprep.subr.bf16.mxu0 %v1238_v44 }
  0x2a   :  { %1168 = vmatprep.subr.bf16.mxu1 %v1239_v45 }
  0x2b   :  { %433 = vmatmul.mubr.bf16.gmra.mrb[4].mxu0 %v1256_v60 }
  0x2c   :  { %1141 = vmatpush3.bf16.msra.mxu0 %v1240_v46  ;;  %482 = vmatmul.mubr.bf16.gmra.mrb[4].mxu1 %v1257_v61 }
  0x2d   :  { %1169 = vmatpush3.bf16.msra.mxu1 %v1241_v47  ;;  %1142 = vmatprep.subr.bf16.mxu0 %v1242_v48 }
  0x2e   :  { %1170 = vmatprep.subr.bf16.mxu1 %v1243_v49  ;;  %754 = vmatprep.mubr.bf16.mxu0 %v1270_v9 }
  0x2f   :  { %803 = vmatprep.mubr.bf16.mxu1 %v1273_v11 }
  0x30   :  { %1143 = vmatpush3.bf16.msra.mxu0 %v1244_v50 }
  0x31   :  { %1171 = vmatpush3.bf16.msra.mxu1 %v1245_v51  ;;  %1144 = vmatprep.subr.bf16.mxu0 %v1246_v52 }
  0x32   :  { %1172 = vmatprep.subr.bf16.mxu1 %v1247_v53 }
  0x34   :  { %1145 = vmatpush3.bf16.msra.mxu0 %v1248_v54 }
  0x35   :  { %1173 = vmatpush3.bf16.msra.mxu1 %v1249_v55  ;;  %1146 = vmatprep.subr.bf16.mxu0 %v1254_v58 }
  0x36   :  { %1174 = vmatprep.subr.bf16.mxu1 %v1255_v59 }
  0x38   :  { %1147 = vmatpush3.bf16.msra.mxu0 %v1258_v62 }
  0x39   :  { %1175 = vmatpush3.bf16.msra.mxu1 %v1259_v63  ;;  %1148 = vmatprep.subr.bf16.mxu0 %v1260_v0 }
  0x3a   :  { %1176 = vmatprep.subr.bf16.mxu1 %v1261_v1 }
  0x3c   :  { %1149 = vmatpush3.bf16.msra.mxu0 %v1262_v2 }
  0x3d   :  { %1177 = vmatpush3.bf16.msra.mxu1 %v1263_v3  ;;  %1150 = vmatprep.subr.bf16.mxu0 %v1264_v4 }
  0x3e   :  { %1178 = vmatprep.subr.bf16.mxu1 %v1265_v5 }
  0x40   :  { %1151 = vmatpush3.bf16.msra.mxu0 %v1266_v6 }
  0x41   :  { %1179 = vmatpush3.bf16.msra.mxu1 %v1267_v7 }
  0x43   :  { %755 = vmatmul.mubr.bf16.vlgmr.msra.gmra.mrb[8].mxu0 %v1268_v8 }
  0x44   :  { %804 = vmatmul.mubr.bf16.vlgmr.msra.gmra.mrb[8].mxu1 %v1271_v10  ;;  %762 = vmatprep.mubr.bf16.mxu0 %v1274_v12 }
  0x45   :  { %811 = vmatprep.mubr.bf16.mxu1 %v1276_v13 }
  0x4b   :  { %763 = vmatmul.mubr.bf16.gmra.mrb[12].mxu0 %v1278_v14 }
  0x4c   :  { %812 = vmatmul.mubr.bf16.gmra.mrb[12].mxu1 %v1279_v15 }
  0xf6   :  { %v1096_v16 = vpop.f32.mrb[0].mxu0 }
  0xf7   :  { %v1124_v17 = vpop.f32.mrb[0].mxu1  ;;  %v1097_v18 = vpop.f32.mrb[1].mxu0 }
  0xf8   :  { %v1098_v19 = vadd.f32 %v1097_v18, %v1096_v16  ;;  %v1125_v20 = vpop.f32.mrb[1].mxu1  ;;  %v1099_v21 = vpop.f32.mrb[2].mxu0 }
  0xf9   :  { %v1126_v22 = vadd.f32 %v1125_v20, %v1124_v17  ;;  %v1127_v23 = vpop.f32.mrb[2].mxu1  ;;  %v1100_v24 = vpop.f32.mrb[3].mxu0 }
  0xfa   :  { %v1101_v25 = vadd.f32 %v1100_v24, %v1099_v21  ;;  %v1128_v26 = vpop.f32.mrb[3].mxu1 }
  0xfb   :  { %v476_v27 = vadd.f32 %v1126_v22, %v1098_v19  ;;  %v1129_v28 = vadd.f32 %v1128_v26, %v1127_v23 }
  0xfd   :  { %v479_v29 = vadd.f32 %v1129_v28, %v1101_v25  ;;  %v891_v25 = vlaneseq }
  0xfe   :  { %v1102_v30 = vpop.f32.mrb[4].mxu0 }
  0xff   :  { %v1130_v31 = vpop.f32.mrb[4].mxu1  ;;  %v1103_v32 = vpop.f32.mrb[5].mxu0 }
 0x100   :  { %v1104_v33 = vadd.f32 %v1103_v32, %v1102_v30  ;;  %v1131_v34 = vpop.f32.mrb[5].mxu1  ;;  %v1105_v35 = vpop.f32.mrb[6].mxu0  ;;  %v892_v30 = vshrl.u32 %v891_v25, 7 }
 0x101   :  { %v1132_v36 = vadd.f32 %v1131_v34, %v1130_v31  ;;  %v1133_v37 = vpop.f32.mrb[6].mxu1  ;;  %v1106_v38 = vpop.f32.mrb[7].mxu0 }
 0x102   :  { %v1107_v39 = vadd.f32 %v1106_v38, %v1105_v35  ;;  %v1134_v40 = vpop.f32.mrb[7].mxu1  ;;  %v893_v35 = vsub.s32 0, %v892_v30 }
 0x103   :  { %v484_v41 = vadd.f32 %v1132_v36, %v1104_v33  ;;  %v1135_v42 = vadd.f32 %v1134_v40, %v1133_v37 }
 0x105   :  { %v487_v43 = vadd.f32 %v1135_v42, %v1107_v39 }
 0x116   :  { %v1152_v44 = vpop.f32.mrb[8].mxu0 }
 0x117   :  { %v1180_v45 = vpop.f32.mrb[8].mxu1  ;;  %v1153_v46 = vpop.f32.mrb[9].mxu0 }
 0x118   :  { %v1154_v47 = vadd.f32 %v1153_v46, %v1152_v44  ;;  %v1181_v48 = vpop.f32.mrb[9].mxu1  ;;  %v1155_v49 = vpop.f32.mrb[10].mxu0 }
 0x119   :  { %v1182_v50 = vadd.f32 %v1181_v48, %v1180_v45  ;;  %v1183_v51 = vpop.f32.mrb[10].mxu1  ;;  %v1156_v52 = vpop.f32.mrb[11].mxu0 }
 0x11a   :  { %v757_v53 = vadd.f32 %v1154_v47, %v476_v27  ;;  %v1157_v54 = vadd.f32 %v1156_v52, %v1155_v49  ;;  %v1184_v55 = vpop.f32.mrb[11].mxu1 }
 0x11b   :  { %v1185_v56 = vadd.f32 %v1184_v55, %v1183_v51 }
 0x11c   :  { %v806_v57 = vadd.f32 %v1182_v50, %v757_v53  ;;  %v760_v58 = vadd.f32 %v1157_v54, %v479_v29 }
 0x11e   :  { %v809_v59 = vadd.f32 %v1185_v56, %v760_v58  ;;  %v1158_v60 = vpop.f32.mrb[12].mxu0  ;;  %v878_v61 = vmul.f32 %v806_v57, %v806_v57 }
 0x11f   :  { %v1186_v62 = vpop.f32.mrb[12].mxu1  ;;  %v1159_v63 = vpop.f32.mrb[13].mxu0 }
 0x120   :  { %v1072_v0 = vpack.c.bf16 %v809_v59, %v806_v57  ;;  %v869_v1 = vadd.f32 %v809_v59, %v806_v57  ;;  %v879_v2 = vmul.f32 %v809_v59, %v809_v59  ;;  %v1160_v3 = vadd.f32 %v1159_v63, %v1158_v60  ;;  %v1187_v4 = vpop.f32.mrb[13].mxu1  ;;  %v1161_v5 = vpop.f32.mrb[14].mxu0 }
 0x121   :  { %v1188_v6 = vadd.f32 %v1187_v4, %v1186_v62  ;;  %v1189_v7 = vpop.f32.mrb[14].mxu1  ;;  %v1162_v8 = vpop.f32.mrb[15].mxu0 }
 0x122   :  { %1073 = vst [vmem:[%s1554_s2] sm:$0xff] %v1072_v0   ;;  %v882_v9 = vadd.f32 %v879_v2, %v878_v61  ;;  %v765_v10 = vadd.f32 %v1160_v3, %v484_v41  ;;  %v1163_v11 = vadd.f32 %v1162_v8, %v1161_v5  ;;  %v1190_v12 = vpop.f32.mrb[15].mxu1 }
 0x123   :  { %v1191_v13 = vadd.f32 %v1190_v12, %v1189_v7 }
 0x124   :  { %v814_v14 = vadd.f32 %v1188_v6, %v765_v10  ;;  %v768_v15 = vadd.f32 %v1163_v11, %v487_v43 }
 0x126   :  { %v870_v16 = vadd.f32 %v869_v1, %v814_v14  ;;  %v880_v17 = vmul.f32 %v814_v14, %v814_v14  ;;  %v817_v18 = vadd.f32 %v1191_v13, %v768_v15 }
 0x128   :  { %v883_v19 = vadd.f32 %v882_v9, %v880_v17  ;;  %v1077_v20 = vpack.c.bf16 %v817_v18, %v814_v14  ;;  %v871_v21 = vadd.f32 %v870_v16, %v817_v18  ;;  %v881_v22 = vmul.f32 %v817_v18, %v817_v18 }
 0x12a   :  { %1079 = vst [vmem:[%s1554_s2 + $0x8] sm:$0xff] %v1077_v20   ;;  %v872_v23 = vrot.slane %v871_v21, 4  ;;  %v884_v24 = vadd.f32 %v883_v19, %v881_v22 }
 0x12c   :  { %v873_v26 = vadd.f32 %v872_v23, %v871_v21  ;;  %v885_v27 = vrot.slane %v884_v24, 4 }
 0x12e   :  { %v874_v28 = vrot.slane %v873_v26, 2  ;;  %v886_v29 = vadd.f32 %v885_v27, %v884_v24 }
 0x130   :  { %v875_v31 = vadd.f32 %v874_v28, %v873_v26  ;;  %v887_v32 = vrot.slane %v886_v29, 2 }
 0x132   :  { %v876_v33 = vrot.slane %v875_v31, 1  ;;  %v888_v34 = vadd.f32 %v887_v32, %v886_v29 }
 0x134   :  { %v877_v36 = vadd.f32 %v876_v33, %v875_v31  ;;  %v889_v37 = vrot.slane %v888_v34, 1 }
 0x136   :  { %v890_v38 = vadd.f32 %v889_v37, %v888_v34  ;;  %v894_v39 = vrot.slane %v877_v36, %v893_v35 }
 0x138   :  { %v898_v40 = vrot.slane %v890_v38, %v893_v35  ;;  %899 = vst [vmem:[%s1555_s3] sm:$0xff] %v894_v39 }
 0x13a   :  { %900 = vst [vmem:[%s1555_s3 + $0x8] sm:$0xff] %v898_v40 }

// kernel: discriminative_forward.7
= control target key start
LH: loop header
LB: loop body
LE: loop exit
PB: predicated region body
PF: predicated region fallthrough
CT: control target
= control target key end

     0   :  { %s3716_s1 = inlined_call_operand.vmem [shape: bf16[2,1024,256], index: 1, kind: input, shape index: {}]   ;;  %s3717_s0 = inlined_call_operand.vmem [shape: bf16[2,8,1024], index: 0, kind: input, shape index: {}]   ;;  %s3718_s2 = inlined_call_operand.vmem [shape: bf16[8,256], index: 2, kind: output, shape index: {0}]   ;;  %s3719_s3 = inlined_call_operand.vmem [shape: f32[1,8,512], index: 3, kind: output, shape index: {1}]  }
   0x1   :  { %v2453_v0 = vld [vmem:[%s3716_s1 + $0x404] ss:$8 sps:$4 sm:$0xff]   ;;  %v2457_v2 = vld [vmem:[%s3716_s1 + $0x400] ss:$8 sps:$4 sm:$0xff]   ;;  %v2459_v4 = vld [vmem:[%s3716_s1 + $0x414] ss:$8 sps:$4 sm:$0xff]  }
   0x2   :  { %v2455_v1 = vld [vmem:[%s3716_s1 + $0x4] ss:$8 sps:$4 sm:$0xff]   ;;  %947 = vmatprep.subr.bf16.mxu1 %v2453_v0  ;;  %v2458_v3 = vld [vmem:[%s3716_s1] ss:$8 sps:$4 sm:$0xff]   ;;  %v2461_v5 = vld [vmem:[%s3716_s1 + $0x14] ss:$8 sps:$4 sm:$0xff]  }
   0x3   :  { %1779 = vmatprep.subr.bf16.mxu0 %v2455_v1  ;;  %948 = vmatpush1.bf16.msra.mxu1 %v2457_v2  ;;  %v2463_v6 = vld [vmem:[%s3716_s1 + $0x410] ss:$8 sps:$4 sm:$0xff]   ;;  %v2465_v8 = vld [vmem:[%s3716_s1 + $0x424] ss:$8 sps:$4 sm:$0xff]   ;;  %v2469_v10 = vld [vmem:[%s3716_s1 + $0x420] ss:$8 sps:$4 sm:$0xff]  }
   0x4   :  { %1780 = vmatpush1.bf16.msra.mxu0 %v2458_v3  ;;  %949 = vmatprep.subr.bf16.mxu1 %v2459_v4  ;;  %v2464_v7 = vld [vmem:[%s3716_s1 + $0x10] ss:$8 sps:$4 sm:$0xff]   ;;  %v2467_v9 = vld [vmem:[%s3716_s1 + $0x24] ss:$8 sps:$4 sm:$0xff]   ;;  %v2470_v11 = vld [vmem:[%s3716_s1 + $0x20] ss:$8 sps:$4 sm:$0xff]  }
   0x5   :  { %1781 = vmatprep.subr.bf16.mxu0 %v2461_v5  ;;  %v2471_v12 = vld [vmem:[%s3716_s1 + $0x434] ss:$8 sps:$4 sm:$0xff]   ;;  %v2475_v14 = vld [vmem:[%s3716_s1 + $0x430] ss:$8 sps:$4 sm:$0xff]   ;;  %v2477_v16 = vld [vmem:[%s3716_s1 + $0x444] ss:$8 sps:$4 sm:$0xff]  }
   0x6   :  { %v2473_v13 = vld [vmem:[%s3716_s1 + $0x34] ss:$8 sps:$4 sm:$0xff]   ;;  %v2476_v15 = vld [vmem:[%s3716_s1 + $0x30] ss:$8 sps:$4 sm:$0xff]   ;;  %v2479_v17 = vld [vmem:[%s3716_s1 + $0x44] ss:$8 sps:$4 sm:$0xff]  }
   0x7   :  { %950 = vmatpush1.bf16.msra.mxu1 %v2463_v6  ;;  %v2481_v18 = vld [vmem:[%s3716_s1 + $0x440] ss:$8 sps:$4 sm:$0xff]   ;;  %v2483_v20 = vld [vmem:[%s3716_s1 + $0x454] ss:$8 sps:$4 sm:$0xff]   ;;  %v2487_v22 = vld [vmem:[%s3716_s1 + $0x450] ss:$8 sps:$4 sm:$0xff]  }
   0x8   :  { %1782 = vmatpush1.bf16.msra.mxu0 %v2464_v7  ;;  %951 = vmatprep.subr.bf16.mxu1 %v2465_v8  ;;  %v2482_v19 = vld [vmem:[%s3716_s1 + $0x40] ss:$8 sps:$4 sm:$0xff]   ;;  %v2485_v21 = vld [vmem:[%s3716_s1 + $0x54] ss:$8 sps:$4 sm:$0xff]   ;;  %v2488_v23 = vld [vmem:[%s3716_s1 + $0x50] ss:$8 sps:$4 sm:$0xff]  }
   0x9   :  { %1783 = vmatprep.subr.bf16.mxu0 %v2467_v9  ;;  %v2489_v24 = vld [vmem:[%s3716_s1 + $0x464] ss:$8 sps:$4 sm:$0xff]   ;;  %v2493_v26 = vld [vmem:[%s3716_s1 + $0x460] ss:$8 sps:$4 sm:$0xff]   ;;  %v2495_v28 = vld [vmem:[%s3716_s1 + $0x474] ss:$8 sps:$4 sm:$0xff]  }
   0xa   :  { %v2491_v25 = vld [vmem:[%s3716_s1 + $0x64] ss:$8 sps:$4 sm:$0xff]   ;;  %v2494_v27 = vld [vmem:[%s3716_s1 + $0x60] ss:$8 sps:$4 sm:$0xff]   ;;  %v2497_v29 = vld [vmem:[%s3716_s1 + $0x74] ss:$8 sps:$4 sm:$0xff]  }
   0xb   :  { %952 = vmatpush1.bf16.msra.mxu1 %v2469_v10  ;;  %v2499_v30 = vld [vmem:[%s3716_s1 + $0x470] ss:$8 sps:$4 sm:$0xff]   ;;  %v2501_v32 = vld [vmem:[%s3716_s1 + $0x484] ss:$8 sps:$4 sm:$0xff]   ;;  %v2505_v34 = vld [vmem:[%s3716_s1 + $0x480] ss:$8 sps:$4 sm:$0xff]  }
   0xc   :  { %1784 = vmatpush1.bf16.msra.mxu0 %v2470_v11  ;;  %953 = vmatprep.subr.bf16.mxu1 %v2471_v12  ;;  %v2500_v31 = vld [vmem:[%s3716_s1 + $0x70] ss:$8 sps:$4 sm:$0xff]   ;;  %v2503_v33 = vld [vmem:[%s3716_s1 + $0x84] ss:$8 sps:$4 sm:$0xff]   ;;  %v2506_v35 = vld [vmem:[%s3716_s1 + $0x80] ss:$8 sps:$4 sm:$0xff]  }
   0xd   :  { %1785 = vmatprep.subr.bf16.mxu0 %v2473_v13  ;;  %v2507_v36 = vld [vmem:[%s3716_s1 + $0x494] ss:$8 sps:$4 sm:$0xff]   ;;  %v2511_v38 = vld [vmem:[%s3716_s1 + $0x490] ss:$8 sps:$4 sm:$0xff]   ;;  %v2513_v40 = vld [vmem:[%s3716_s1 + $0x4a4] ss:$8 sps:$4 sm:$0xff]  }
   0xe   :  { %v2509_v37 = vld [vmem:[%s3716_s1 + $0x94] ss:$8 sps:$4 sm:$0xff]   ;;  %v2512_v39 = vld [vmem:[%s3716_s1 + $0x90] ss:$8 sps:$4 sm:$0xff]   ;;  %v2515_v41 = vld [vmem:[%s3716_s1 + $0xa4] ss:$8 sps:$4 sm:$0xff]  }
   0xf   :  { %954 = vmatpush1.bf16.msra.mxu1 %v2475_v14  ;;  %v2517_v42 = vld [vmem:[%s3716_s1 + $0x4a0] ss:$8 sps:$4 sm:$0xff]   ;;  %v2519_v44 = vld [vmem:[%s3716_s1 + $0x4b4] ss:$8 sps:$4 sm:$0xff]   ;;  %v2523_v47 = vld [vmem:[%s3716_s1 + $0x4b0] ss:$8 sps:$4 sm:$0xff]  }
  0x10   :  { %1786 = vmatpush1.bf16.msra.mxu0 %v2476_v15  ;;  %955 = vmatprep.subr.bf16.mxu1 %v2477_v16  ;;  %v2518_v43 = vld [vmem:[%s3716_s1 + $0xa0] ss:$8 sps:$4 sm:$0xff]   ;;  %v2521_v45 = vld [vmem:[%s3716_s1 + $0xb4] ss:$8 sps:$4 sm:$0xff]   ;;  %v2524_v49 = vld [vmem:[%s3716_s1 + $0xb0] ss:$8 sps:$4 sm:$0xff]  }
  0x11   :  { %1787 = vmatprep.subr.bf16.mxu0 %v2479_v17  ;;  %v2021_v46 = vld [vmem:[%s3717_s0 + $0x20] sm:$0xff]  ;;  %v2531_v56 = vld [vmem:[%s3716_s1 + $0x4d4] ss:$8 sps:$4 sm:$0xff]   ;;  %v2535_v58 = vld [vmem:[%s3716_s1 + $0x4d0] ss:$8 sps:$4 sm:$0xff]  }
  0x12   :  { %v2154_v48 = vcombine.high %v2021_v46, %v2021_v46  ;;  %v13_v50 = vld [vmem:[%s3717_s0] sm:$0xff]  ;;  %v2533_v57 = vld [vmem:[%s3716_s1 + $0xd4] ss:$8 sps:$4 sm:$0xff]   ;;  %v2536_v59 = vld [vmem:[%s3716_s1 + $0xd0] ss:$8 sps:$4 sm:$0xff]   ;;  %v2153_v6 = vcombine.low %v2021_v46, %v2021_v46 }
  0x13   :  { %956 = vmatpush1.bf16.msra.mxu1 %v2481_v18  ;;  %v2525_v51 = vld [vmem:[%s3716_s1 + $0x4c4] ss:$8 sps:$4 sm:$0xff]   ;;  %v2290_v53 = vcombine.high %v13_v50, %v13_v50  ;;  %v2529_v54 = vld [vmem:[%s3716_s1 + $0x4c0] ss:$8 sps:$4 sm:$0xff]   ;;  %v2543_v0 = vld [vmem:[%s3716_s1 + $0x4f4] ss:$8 sps:$4 sm:$0xff]   ;;  %v2289_v7 = vcombine.low %v13_v50, %v13_v50 }
  0x14   :  { %1788 = vmatpush1.bf16.msra.mxu0 %v2482_v19  ;;  %957 = vmatprep.subr.bf16.mxu1 %v2483_v20  ;;  %v2527_v52 = vld [vmem:[%s3716_s1 + $0xc4] ss:$8 sps:$4 sm:$0xff]   ;;  %v2530_v55 = vld [vmem:[%s3716_s1 + $0xc0] ss:$8 sps:$4 sm:$0xff]   ;;  %v2545_v1 = vld [vmem:[%s3716_s1 + $0xf4] ss:$8 sps:$4 sm:$0xff]  }
  0x15   :  { %1789 = vmatprep.subr.bf16.mxu0 %v2485_v21  ;;  %979 = vmatprep.mubr.bf16.mxu1 %v2154_v48  ;;  %v2537_v60 = vld [vmem:[%s3716_s1 + $0x4e4] ss:$8 sps:$4 sm:$0xff]   ;;  %v2541_v62 = vld [vmem:[%s3716_s1 + $0x4e0] ss:$8 sps:$4 sm:$0xff]   ;;  %v2547_v2 = vld [vmem:[%s3716_s1 + $0x4f0] ss:$8 sps:$4 sm:$0xff]  }
  0x16   :  { %1811 = vmatprep.mubr.bf16.mxu0 %v2290_v53  ;;  %v2539_v61 = vld [vmem:[%s3716_s1 + $0xe4] ss:$8 sps:$4 sm:$0xff]   ;;  %v2542_v63 = vld [vmem:[%s3716_s1 + $0xe0] ss:$8 sps:$4 sm:$0xff]   ;;  %v2548_v3 = vld [vmem:[%s3716_s1 + $0xf0] ss:$8 sps:$4 sm:$0xff]  }
  0x17   :  { %958 = vmatpush1.bf16.msra.mxu1 %v2487_v22  ;;  %v2553_v4 = vld [vmem:[%s3716_s1 + $0x504] ss:$8 sps:$4 sm:$0xff]   ;;  %v2551_v8 = vld [vmem:[%s3716_s1 + $0x500] ss:$8 sps:$4 sm:$0xff]   ;;  %v2561_v10 = vld [vmem:[%s3716_s1 + $0x514] ss:$8 sps:$4 sm:$0xff]  }
  0x18   :  { %1790 = vmatpush1.bf16.msra.mxu0 %v2488_v23  ;;  %959 = vmatprep.subr.bf16.mxu1 %v2489_v24  ;;  %v2558_v5 = vld [vmem:[%s3716_s1 + $0x104] ss:$8 sps:$4 sm:$0xff]   ;;  %v2556_v9 = vld [vmem:[%s3716_s1 + $0x100] ss:$8 sps:$4 sm:$0xff]   ;;  %v2564_v11 = vld [vmem:[%s3716_s1 + $0x114] ss:$8 sps:$4 sm:$0xff]  }
  0x19   :  { %1791 = vmatprep.subr.bf16.mxu0 %v2491_v25  ;;  %v2559_v12 = vld [vmem:[%s3716_s1 + $0x510] ss:$8 sps:$4 sm:$0xff]   ;;  %v2567_v14 = vld [vmem:[%s3716_s1 + $0x524] ss:$8 sps:$4 sm:$0xff]   ;;  %v2565_v16 = vld [vmem:[%s3716_s1 + $0x520] ss:$8 sps:$4 sm:$0xff]  }
  0x1a   :  { %v2562_v13 = vld [vmem:[%s3716_s1 + $0x110] ss:$8 sps:$4 sm:$0xff]   ;;  %v2570_v15 = vld [vmem:[%s3716_s1 + $0x124] ss:$8 sps:$4 sm:$0xff]   ;;  %v2568_v17 = vld [vmem:[%s3716_s1 + $0x120] ss:$8 sps:$4 sm:$0xff]  }
  0x1b   :  { %960 = vmatpush1.bf16.msra.mxu1 %v2493_v26  ;;  %v2573_v18 = vld [vmem:[%s3716_s1 + $0x534] ss:$8 sps:$4 sm:$0xff]   ;;  %v2571_v20 = vld [vmem:[%s3716_s1 + $0x530] ss:$8 sps:$4 sm:$0xff]   ;;  %v2579_v22 = vld [vmem:[%s3716_s1 + $0x544] ss:$8 sps:$4 sm:$0xff]  }
  0x1c   :  { %1792 = vmatpush1.bf16.msra.mxu0 %v2494_v27  ;;  %961 = vmatprep.subr.bf16.mxu1 %v2495_v28  ;;  %v2576_v19 = vld [vmem:[%s3716_s1 + $0x134] ss:$8 sps:$4 sm:$0xff]   ;;  %v2574_v21 = vld [vmem:[%s3716_s1 + $0x130] ss:$8 sps:$4 sm:$0xff]   ;;  %v2582_v23 = vld [vmem:[%s3716_s1 + $0x144] ss:$8 sps:$4 sm:$0xff]  }
  0x1d   :  { %1793 = vmatprep.subr.bf16.mxu0 %v2497_v29  ;;  %v2577_v24 = vld [vmem:[%s3716_s1 + $0x540] ss:$8 sps:$4 sm:$0xff]   ;;  %v2585_v26 = vld [vmem:[%s3716_s1 + $0x554] ss:$8 sps:$4 sm:$0xff]   ;;  %v2583_v28 = vld [vmem:[%s3716_s1 + $0x550] ss:$8 sps:$4 sm:$0xff]  }
  0x1e   :  { %v2580_v25 = vld [vmem:[%s3716_s1 + $0x140] ss:$8 sps:$4 sm:$0xff]   ;;  %v2588_v27 = vld [vmem:[%s3716_s1 + $0x154] ss:$8 sps:$4 sm:$0xff]   ;;  %v2586_v29 = vld [vmem:[%s3716_s1 + $0x150] ss:$8 sps:$4 sm:$0xff]  }
  0x1f   :  { %962 = vmatpush1.bf16.msra.mxu1 %v2499_v30  ;;  %v2591_v30 = vld [vmem:[%s3716_s1 + $0x564] ss:$8 sps:$4 sm:$0xff]   ;;  %v2609_v46 = vld [vmem:[%s3716_s1 + $0x594] ss:$8 sps:$4 sm:$0xff]   ;;  %v2607_v48 = vld [vmem:[%s3716_s1 + $0x590] ss:$8 sps:$4 sm:$0xff]  }
  0x20   :  { %1794 = vmatpush1.bf16.msra.mxu0 %v2500_v31  ;;  %963 = vmatprep.subr.bf16.mxu1 %v2501_v32  ;;  %v2594_v31 = vld [vmem:[%s3716_s1 + $0x164] ss:$8 sps:$4 sm:$0xff]   ;;  %v2616_v53 = vld [vmem:[%s3716_s1 + $0x1a0] ss:$8 sps:$4 sm:$0xff]  }
  0x21   :  { %1795 = vmatprep.subr.bf16.mxu0 %v2503_v33  ;;  %v3152_v32 = vld [vmem:[%s3717_s0 + $0x28] sm:$0xff] }
  0x22   :  { %v2589_v33 = vld [vmem:[%s3716_s1 + $0x560] ss:$8 sps:$4 sm:$0xff]   ;;  %v2615_v50 = vld [vmem:[%s3716_s1 + $0x5a4] ss:$8 sps:$4 sm:$0xff]  }
  0x23   :  { %964 = vmatpush1.bf16.msra.mxu1 %v2505_v34  ;;  %v2592_v34 = vld [vmem:[%s3716_s1 + $0x160] ss:$8 sps:$4 sm:$0xff]  }
  0x24   :  { %1796 = vmatpush1.bf16.msra.mxu0 %v2506_v35  ;;  %965 = vmatprep.subr.bf16.mxu1 %v2507_v36  ;;  %v2156_v35 = vcombine.high %v3152_v32, %v3152_v32  ;;  %v3165_v36 = vld [vmem:[%s3717_s0 + $0x8] sm:$0xff] }
  0x25   :  { %1797 = vmatprep.subr.bf16.mxu0 %v2509_v37  ;;  %v2597_v37 = vld [vmem:[%s3716_s1 + $0x574] ss:$8 sps:$4 sm:$0xff]  }
  0x27   :  { %966 = vmatpush1.bf16.msra.mxu1 %v2511_v38  ;;  %v2292_v38 = vcombine.high %v3165_v36, %v3165_v36 }
  0x28   :  { %1798 = vmatpush1.bf16.msra.mxu0 %v2512_v39  ;;  %967 = vmatprep.subr.bf16.mxu1 %v2513_v40  ;;  %v2600_v39 = vld [vmem:[%s3716_s1 + $0x174] ss:$8 sps:$4 sm:$0xff]   ;;  %v2595_v40 = vld [vmem:[%s3716_s1 + $0x570] ss:$8 sps:$4 sm:$0xff]  }
  0x29   :  { %1799 = vmatprep.subr.bf16.mxu0 %v2515_v41  ;;  %v2598_v41 = vld [vmem:[%s3716_s1 + $0x170] ss:$8 sps:$4 sm:$0xff]  }
  0x2b   :  { %968 = vmatpush1.bf16.msra.mxu1 %v2517_v42  ;;  %v2603_v42 = vld [vmem:[%s3716_s1 + $0x584] ss:$8 sps:$4 sm:$0xff]  }
  0x2c   :  { %1800 = vmatpush1.bf16.msra.mxu0 %v2518_v43  ;;  %969 = vmatprep.subr.bf16.mxu1 %v2519_v44  ;;  %v2606_v43 = vld [vmem:[%s3716_s1 + $0x184] ss:$8 sps:$4 sm:$0xff]   ;;  %v2601_v44 = vld [vmem:[%s3716_s1 + $0x580] ss:$8 sps:$4 sm:$0xff]  }
  0x2d   :  { %1801 = vmatprep.subr.bf16.mxu0 %v2521_v45  ;;  %v2604_v45 = vld [vmem:[%s3716_s1 + $0x180] ss:$8 sps:$4 sm:$0xff]  }
  0x2f   :  { %970 = vmatpush1.bf16.msra.mxu1 %v2523_v47  ;;  %v2612_v47 = vld [vmem:[%s3716_s1 + $0x194] ss:$8 sps:$4 sm:$0xff]  }
  0x30   :  { %1802 = vmatpush1.bf16.msra.mxu0 %v2524_v49  ;;  %971 = vmatprep.subr.bf16.mxu1 %v2525_v51  ;;  %v2610_v49 = vld [vmem:[%s3716_s1 + $0x190] ss:$8 sps:$4 sm:$0xff]   ;;  %v2618_v51 = vld [vmem:[%s3716_s1 + $0x1a4] ss:$8 sps:$4 sm:$0xff]  }
  0x31   :  { %1803 = vmatprep.subr.bf16.mxu0 %v2527_v52  ;;  %v2613_v52 = vld [vmem:[%s3716_s1 + $0x5a0] ss:$8 sps:$4 sm:$0xff]  }
  0x33   :  { %972 = vmatpush1.bf16.msra.mxu1 %v2529_v54  ;;  %v2621_v54 = vld [vmem:[%s3716_s1 + $0x5b4] ss:$8 sps:$4 sm:$0xff]  }
  0x34   :  { %1804 = vmatpush1.bf16.msra.mxu0 %v2530_v55  ;;  %973 = vmatprep.subr.bf16.mxu1 %v2531_v56  ;;  %v2624_v55 = vld [vmem:[%s3716_s1 + $0x1b4] ss:$8 sps:$4 sm:$0xff]   ;;  %v2619_v56 = vld [vmem:[%s3716_s1 + $0x5b0] ss:$8 sps:$4 sm:$0xff]  }
  0x35   :  { %1805 = vmatprep.subr.bf16.mxu0 %v2533_v57  ;;  %v2622_v57 = vld [vmem:[%s3716_s1 + $0x1b0] ss:$8 sps:$4 sm:$0xff]  }
  0x37   :  { %974 = vmatpush1.bf16.msra.mxu1 %v2535_v58  ;;  %v2627_v58 = vld [vmem:[%s3716_s1 + $0x5c4] ss:$8 sps:$4 sm:$0xff]  }
  0x38   :  { %1806 = vmatpush1.bf16.msra.mxu0 %v2536_v59  ;;  %975 = vmatprep.subr.bf16.mxu1 %v2537_v60  ;;  %v2630_v59 = vld [vmem:[%s3716_s1 + $0x1c4] ss:$8 sps:$4 sm:$0xff]   ;;  %v2625_v60 = vld [vmem:[%s3716_s1 + $0x5c0] ss:$8 sps:$4 sm:$0xff]  }
  0x39   :  { %1807 = vmatprep.subr.bf16.mxu0 %v2539_v61  ;;  %v2628_v61 = vld [vmem:[%s3716_s1 + $0x1c0] ss:$8 sps:$4 sm:$0xff]  }
  0x3b   :  { %976 = vmatpush1.bf16.msra.mxu1 %v2541_v62  ;;  %v2633_v62 = vld [vmem:[%s3716_s1 + $0x5d4] ss:$8 sps:$4 sm:$0xff]  }
  0x3c   :  { %1808 = vmatpush1.bf16.msra.mxu0 %v2542_v63  ;;  %977 = vmatprep.subr.bf16.mxu1 %v2543_v0  ;;  %v2636_v63 = vld [vmem:[%s3716_s1 + $0x1d4] ss:$8 sps:$4 sm:$0xff]   ;;  %v2631_v0 = vld [vmem:[%s3716_s1 + $0x5d0] ss:$8 sps:$4 sm:$0xff]  }
  0x3d   :  { %1809 = vmatprep.subr.bf16.mxu0 %v2545_v1  ;;  %v2634_v1 = vld [vmem:[%s3716_s1 + $0x1d0] ss:$8 sps:$4 sm:$0xff]  }
  0x3f   :  { %978 = vmatpush1.bf16.msra.mxu1 %v2547_v2  ;;  %v2639_v2 = vld [vmem:[%s3716_s1 + $0x5e4] ss:$8 sps:$4 sm:$0xff]  }
  0x40   :  { %1810 = vmatpush1.bf16.msra.mxu0 %v2548_v3  ;;  %988 = vmatprep.subr.bf16.mxu1 %v2553_v4  ;;  %v2642_v3 = vld [vmem:[%s3716_s1 + $0x1e4] ss:$8 sps:$4 sm:$0xff]   ;;  %v2637_v4 = vld [vmem:[%s3716_s1 + $0x5e0] ss:$8 sps:$4 sm:$0xff]  }
  0x41   :  { %1820 = vmatprep.subr.bf16.mxu0 %v2558_v5  ;;  %v2640_v5 = vld [vmem:[%s3716_s1 + $0x1e0] ss:$8 sps:$4 sm:$0xff]  }
  0x42   :  { %980 = vmatmul.mubr.bf16.vlgmr.msra.gmra.mrb[0].mxu1 %v2153_v6  ;;  %v2645_v6 = vld [vmem:[%s3716_s1 + $0x5f4] ss:$8 sps:$4 sm:$0xff]  }
  0x43   :  { %1812 = vmatmul.mubr.bf16.vlgmr.msra.gmra.mrb[0].mxu0 %v2289_v7  ;;  %989 = vmatpush1.bf16.msra.mxu1 %v2551_v8  ;;  %v2648_v7 = vld [vmem:[%s3716_s1 + $0x1f4] ss:$8 sps:$4 sm:$0xff]   ;;  %v2643_v8 = vld [vmem:[%s3716_s1 + $0x5f0] ss:$8 sps:$4 sm:$0xff]  }
  0x44   :  { %1821 = vmatpush1.bf16.msra.mxu0 %v2556_v9  ;;  %990 = vmatprep.subr.bf16.mxu1 %v2561_v10  ;;  %v2646_v9 = vld [vmem:[%s3716_s1 + $0x1f0] ss:$8 sps:$4 sm:$0xff]   ;;  %v2653_v10 = vld [vmem:[%s3716_s1 + $0x604] ss:$8 sps:$4 sm:$0xff]  }
  0x45   :  { %1822 = vmatprep.subr.bf16.mxu0 %v2564_v11  ;;  %1020 = vmatprep.mubr.bf16.mxu1 %v2156_v35  ;;  %v2658_v11 = vld [vmem:[%s3716_s1 + $0x204] ss:$8 sps:$4 sm:$0xff]   ;;  %v2680_v35 = vld [vmem:[%s3716_s1 + $0x240] ss:$8 sps:$4 sm:$0xff]  }
  0x46   :  { %1852 = vmatprep.mubr.bf16.mxu0 %v2292_v38  ;;  %v2683_v38 = vld [vmem:[%s3716_s1 + $0x650] ss:$8 sps:$4 sm:$0xff]  }
  0x47   :  { %991 = vmatpush1.bf16.msra.mxu1 %v2559_v12  ;;  %v2155_v12 = vcombine.low %v3152_v32, %v3152_v32  ;;  %v2679_v32 = vld [vmem:[%s3716_s1 + $0x644] ss:$8 sps:$4 sm:$0xff]  }
  0x48   :  { %1823 = vmatpush1.bf16.msra.mxu0 %v2562_v13  ;;  %992 = vmatprep.subr.bf16.mxu1 %v2567_v14  ;;  %v2651_v13 = vld [vmem:[%s3716_s1 + $0x600] ss:$8 sps:$4 sm:$0xff]   ;;  %v2291_v14 = vcombine.low %v3165_v36, %v3165_v36  ;;  %v2685_v36 = vld [vmem:[%s3716_s1 + $0x654] ss:$8 sps:$4 sm:$0xff]  }
  0x49   :  { %1824 = vmatprep.subr.bf16.mxu0 %v2570_v15  ;;  %v2656_v15 = vld [vmem:[%s3716_s1 + $0x200] ss:$8 sps:$4 sm:$0xff]  }
  0x4b   :  { %993 = vmatpush1.bf16.msra.mxu1 %v2565_v16  ;;  %v2661_v16 = vld [vmem:[%s3716_s1 + $0x614] ss:$8 sps:$4 sm:$0xff]  }
  0x4c   :  { %1825 = vmatpush1.bf16.msra.mxu0 %v2568_v17  ;;  %994 = vmatprep.subr.bf16.mxu1 %v2573_v18  ;;  %v2664_v17 = vld [vmem:[%s3716_s1 + $0x214] ss:$8 sps:$4 sm:$0xff]  }
  0x4d   :  { %1826 = vmatprep.subr.bf16.mxu0 %v2576_v19  ;;  %v3302_v18 = vld [vmem:[%s3717_s0 + $0x30] sm:$0xff] }
  0x4e   :  { %v2158_v19 = vcombine.high %v3302_v18, %v3302_v18 }
  0x4f   :  { %995 = vmatpush1.bf16.msra.mxu1 %v2571_v20  ;;  %v3309_v20 = vld [vmem:[%s3717_s0 + $0x10] sm:$0xff] }
  0x50   :  { %1827 = vmatpush1.bf16.msra.mxu0 %v2574_v21  ;;  %996 = vmatprep.subr.bf16.mxu1 %v2579_v22  ;;  %v2659_v21 = vld [vmem:[%s3716_s1 + $0x610] ss:$8 sps:$4 sm:$0xff]  }
  0x51   :  { %1828 = vmatprep.subr.bf16.mxu0 %v2582_v23  ;;  %v2662_v22 = vld [vmem:[%s3716_s1 + $0x210] ss:$8 sps:$4 sm:$0xff]   ;;  %v2294_v23 = vcombine.high %v3309_v20, %v3309_v20 }
  0x53   :  { %997 = vmatpush1.bf16.msra.mxu1 %v2577_v24  ;;  %v2667_v24 = vld [vmem:[%s3716_s1 + $0x624] ss:$8 sps:$4 sm:$0xff]  }
  0x54   :  { %1829 = vmatpush1.bf16.msra.mxu0 %v2580_v25  ;;  %998 = vmatprep.subr.bf16.mxu1 %v2585_v26  ;;  %v2670_v25 = vld [vmem:[%s3716_s1 + $0x224] ss:$8 sps:$4 sm:$0xff]   ;;  %v2665_v26 = vld [vmem:[%s3716_s1 + $0x620] ss:$8 sps:$4 sm:$0xff]  }
  0x55   :  { %1830 = vmatprep.subr.bf16.mxu0 %v2588_v27  ;;  %v2668_v27 = vld [vmem:[%s3716_s1 + $0x220] ss:$8 sps:$4 sm:$0xff]  }
  0x57   :  { %999 = vmatpush1.bf16.msra.mxu1 %v2583_v28  ;;  %v2673_v28 = vld [vmem:[%s3716_s1 + $0x634] ss:$8 sps:$4 sm:$0xff]  }
  0x58   :  { %1831 = vmatpush1.bf16.msra.mxu0 %v2586_v29  ;;  %1000 = vmatprep.subr.bf16.mxu1 %v2591_v30  ;;  %v2676_v29 = vld [vmem:[%s3716_s1 + $0x234] ss:$8 sps:$4 sm:$0xff]   ;;  %v2671_v30 = vld [vmem:[%s3716_s1 + $0x630] ss:$8 sps:$4 sm:$0xff]  }
  0x59   :  { %1832 = vmatprep.subr.bf16.mxu0 %v2594_v31  ;;  %v2674_v31 = vld [vmem:[%s3716_s1 + $0x230] ss:$8 sps:$4 sm:$0xff]  }
  0x5b   :  { %1001 = vmatpush1.bf16.msra.mxu1 %v2589_v33  ;;  %v2682_v33 = vld [vmem:[%s3716_s1 + $0x244] ss:$8 sps:$4 sm:$0xff]  }
  0x5c   :  { %1833 = vmatpush1.bf16.msra.mxu0 %v2592_v34  ;;  %1002 = vmatprep.subr.bf16.mxu1 %v2597_v37  ;;  %v2677_v34 = vld [vmem:[%s3716_s1 + $0x640] ss:$8 sps:$4 sm:$0xff]   ;;  %v2688_v37 = vld [vmem:[%s3716_s1 + $0x254] ss:$8 sps:$4 sm:$0xff]  }
  0x5d   :  { %1834 = vmatprep.subr.bf16.mxu0 %v2600_v39  ;;  %v2686_v39 = vld [vmem:[%s3716_s1 + $0x250] ss:$8 sps:$4 sm:$0xff]  }
  0x5f   :  { %1003 = vmatpush1.bf16.msra.mxu1 %v2595_v40  ;;  %v2691_v40 = vld [vmem:[%s3716_s1 + $0x664] ss:$8 sps:$4 sm:$0xff]  }
  0x60   :  { %1835 = vmatpush1.bf16.msra.mxu0 %v2598_v41  ;;  %1004 = vmatprep.subr.bf16.mxu1 %v2603_v42  ;;  %v2694_v41 = vld [vmem:[%s3716_s1 + $0x264] ss:$8 sps:$4 sm:$0xff]   ;;  %v2689_v42 = vld [vmem:[%s3716_s1 + $0x660] ss:$8 sps:$4 sm:$0xff]  }
  0x61   :  { %1836 = vmatprep.subr.bf16.mxu0 %v2606_v43  ;;  %v2692_v43 = vld [vmem:[%s3716_s1 + $0x260] ss:$8 sps:$4 sm:$0xff]  }
  0x63   :  { %1005 = vmatpush1.bf16.msra.mxu1 %v2601_v44  ;;  %v2697_v44 = vld [vmem:[%s3716_s1 + $0x674] ss:$8 sps:$4 sm:$0xff]  }
  0x64   :  { %1837 = vmatpush1.bf16.msra.mxu0 %v2604_v45  ;;  %1006 = vmatprep.subr.bf16.mxu1 %v2609_v46  ;;  %v2700_v45 = vld [vmem:[%s3716_s1 + $0x274] ss:$8 sps:$4 sm:$0xff]   ;;  %v2695_v46 = vld [vmem:[%s3716_s1 + $0x670] ss:$8 sps:$4 sm:$0xff]  }
  0x65   :  { %1838 = vmatprep.subr.bf16.mxu0 %v2612_v47  ;;  %v2698_v47 = vld [vmem:[%s3716_s1 + $0x270] ss:$8 sps:$4 sm:$0xff]  }
  0x67   :  { %1007 = vmatpush1.bf16.msra.mxu1 %v2607_v48  ;;  %v2703_v48 = vld [vmem:[%s3716_s1 + $0x684] ss:$8 sps:$4 sm:$0xff]  }
  0x68   :  { %1839 = vmatpush1.bf16.msra.mxu0 %v2610_v49  ;;  %1008 = vmatprep.subr.bf16.mxu1 %v2615_v50  ;;  %v2706_v49 = vld [vmem:[%s3716_s1 + $0x284] ss:$8 sps:$4 sm:$0xff]   ;;  %v2701_v50 = vld [vmem:[%s3716_s1 + $0x680] ss:$8 sps:$4 sm:$0xff]  }
  0x69   :  { %1840 = vmatprep.subr.bf16.mxu0 %v2618_v51  ;;  %v2704_v51 = vld [vmem:[%s3716_s1 + $0x280] ss:$8 sps:$4 sm:$0xff]  }
  0x6b   :  { %1009 = vmatpush1.bf16.msra.mxu1 %v2613_v52  ;;  %v2709_v52 = vld [vmem:[%s3716_s1 + $0x694] ss:$8 sps:$4 sm:$0xff]  }
  0x6c   :  { %1841 = vmatpush1.bf16.msra.mxu0 %v2616_v53  ;;  %1010 = vmatprep.subr.bf16.mxu1 %v2621_v54  ;;  %v2712_v53 = vld [vmem:[%s3716_s1 + $0x294] ss:$8 sps:$4 sm:$0xff]   ;;  %v2707_v54 = vld [vmem:[%s3716_s1 + $0x690] ss:$8 sps:$4 sm:$0xff]  }
  0x6d   :  { %1842 = vmatprep.subr.bf16.mxu0 %v2624_v55  ;;  %v2710_v55 = vld [vmem:[%s3716_s1 + $0x290] ss:$8 sps:$4 sm:$0xff]  }
  0x6f   :  { %1011 = vmatpush1.bf16.msra.mxu1 %v2619_v56  ;;  %v2715_v56 = vld [vmem:[%s3716_s1 + $0x6a4] ss:$8 sps:$4 sm:$0xff]  }
  0x70   :  { %1843 = vmatpush1.bf16.msra.mxu0 %v2622_v57  ;;  %1012 = vmatprep.subr.bf16.mxu1 %v2627_v58  ;;  %v2718_v57 = vld [vmem:[%s3716_s1 + $0x2a4] ss:$8 sps:$4 sm:$0xff]   ;;  %v2713_v58 = vld [vmem:[%s3716_s1 + $0x6a0] ss:$8 sps:$4 sm:$0xff]  }
  0x71   :  { %1844 = vmatprep.subr.bf16.mxu0 %v2630_v59  ;;  %v2716_v59 = vld [vmem:[%s3716_s1 + $0x2a0] ss:$8 sps:$4 sm:$0xff]  }
  0x73   :  { %1013 = vmatpush1.bf16.msra.mxu1 %v2625_v60  ;;  %v2721_v60 = vld [vmem:[%s3716_s1 + $0x6b4] ss:$8 sps:$4 sm:$0xff]  }
  0x74   :  { %1845 = vmatpush1.bf16.msra.mxu0 %v2628_v61  ;;  %1014 = vmatprep.subr.bf16.mxu1 %v2633_v62  ;;  %v2724_v61 = vld [vmem:[%s3716_s1 + $0x2b4] ss:$8 sps:$4 sm:$0xff]   ;;  %v2719_v62 = vld [vmem:[%s3716_s1 + $0x6b0] ss:$8 sps:$4 sm:$0xff]  }
  0x75   :  { %1846 = vmatprep.subr.bf16.mxu0 %v2636_v63  ;;  %v2722_v63 = vld [vmem:[%s3716_s1 + $0x2b0] ss:$8 sps:$4 sm:$0xff]  }
  0x77   :  { %1015 = vmatpush1.bf16.msra.mxu1 %v2631_v0  ;;  %v2727_v0 = vld [vmem:[%s3716_s1 + $0x6c4] ss:$8 sps:$4 sm:$0xff]  }
  0x78   :  { %1847 = vmatpush1.bf16.msra.mxu0 %v2634_v1  ;;  %1016 = vmatprep.subr.bf16.mxu1 %v2639_v2  ;;  %v2730_v1 = vld [vmem:[%s3716_s1 + $0x2c4] ss:$8 sps:$4 sm:$0xff]   ;;  %v2725_v2 = vld [vmem:[%s3716_s1 + $0x6c0] ss:$8 sps:$4 sm:$0xff]  }
  0x79   :  { %1848 = vmatprep.subr.bf16.mxu0 %v2642_v3  ;;  %v2728_v3 = vld [vmem:[%s3716_s1 + $0x2c0] ss:$8 sps:$4 sm:$0xff]  }
  0x7b   :  { %1017 = vmatpush1.bf16.msra.mxu1 %v2637_v4  ;;  %v2733_v4 = vld [vmem:[%s3716_s1 + $0x6d4] ss:$8 sps:$4 sm:$0xff]  }
  0x7c   :  { %1849 = vmatpush1.bf16.msra.mxu0 %v2640_v5  ;;  %1018 = vmatprep.subr.bf16.mxu1 %v2645_v6  ;;  %v2736_v5 = vld [vmem:[%s3716_s1 + $0x2d4] ss:$8 sps:$4 sm:$0xff]   ;;  %v2731_v6 = vld [vmem:[%s3716_s1 + $0x6d0] ss:$8 sps:$4 sm:$0xff]  }
  0x7d   :  { %1850 = vmatprep.subr.bf16.mxu0 %v2648_v7  ;;  %v2734_v7 = vld [vmem:[%s3716_s1 + $0x2d0] ss:$8 sps:$4 sm:$0xff]  }
  0x7f   :  { %1019 = vmatpush1.bf16.msra.mxu1 %v2643_v8  ;;  %v2739_v8 = vld [vmem:[%s3716_s1 + $0x6e4] ss:$8 sps:$4 sm:$0xff]  }
  0x80   :  { %1851 = vmatpush1.bf16.msra.mxu0 %v2646_v9  ;;  %1029 = vmatprep.subr.bf16.mxu1 %v2653_v10  ;;  %v2742_v9 = vld [vmem:[%s3716_s1 + $0x2e4] ss:$8 sps:$4 sm:$0xff]   ;;  %v2737_v10 = vld [vmem:[%s3716_s1 + $0x6e0] ss:$8 sps:$4 sm:$0xff]  }
  0x81   :  { %1861 = vmatprep.subr.bf16.mxu0 %v2658_v11  ;;  %v2740_v11 = vld [vmem:[%s3716_s1 + $0x2e0] ss:$8 sps:$4 sm:$0xff]  }
  0x82   :  { %1021 = vmatmul.mubr.bf16.vlgmr.msra.gmra.mrb[0].mxu1 %v2155_v12  ;;  %v2745_v12 = vld [vmem:[%s3716_s1 + $0x6f4] ss:$8 sps:$4 sm:$0xff]  }
  0x83   :  { %1853 = vmatmul.mubr.bf16.vlgmr.msra.gmra.mrb[0].mxu0 %v2291_v14  ;;  %1030 = vmatpush1.bf16.msra.mxu1 %v2651_v13  ;;  %v2748_v13 = vld [vmem:[%s3716_s1 + $0x2f4] ss:$8 sps:$4 sm:$0xff]   ;;  %v2743_v14 = vld [vmem:[%s3716_s1 + $0x6f0] ss:$8 sps:$4 sm:$0xff]  }
  0x84   :  { %1862 = vmatpush1.bf16.msra.mxu0 %v2656_v15  ;;  %1031 = vmatprep.subr.bf16.mxu1 %v2661_v16  ;;  %v2746_v15 = vld [vmem:[%s3716_s1 + $0x2f0] ss:$8 sps:$4 sm:$0xff]   ;;  %v2753_v16 = vld [vmem:[%s3716_s1 + $0x704] ss:$8 sps:$4 sm:$0xff]  }
  0x85   :  { %1863 = vmatprep.subr.bf16.mxu0 %v2664_v17  ;;  %1061 = vmatprep.mubr.bf16.mxu1 %v2158_v19  ;;  %v2758_v17 = vld [vmem:[%s3716_s1 + $0x304] ss:$8 sps:$4 sm:$0xff]   ;;  %v2157_v19 = vcombine.low %v3302_v18, %v3302_v18  ;;  %v2756_v18 = vld [vmem:[%s3716_s1 + $0x300] ss:$8 sps:$4 sm:$0xff]  }
  0x86   :  { %1893 = vmatprep.mubr.bf16.mxu0 %v2294_v23  ;;  %v3505_v23 = vld [vmem:[%s3717_s0 + $0x18] sm:$0xff] }
  0x87   :  { %1032 = vmatpush1.bf16.msra.mxu1 %v2659_v21  ;;  %v2293_v21 = vcombine.low %v3309_v20, %v3309_v20  ;;  %v2761_v20 = vld [vmem:[%s3716_s1 + $0x714] ss:$8 sps:$4 sm:$0xff]  }
  0x88   :  { %1864 = vmatpush1.bf16.msra.mxu0 %v2662_v22  ;;  %1033 = vmatprep.subr.bf16.mxu1 %v2667_v24  ;;  %v3500_v22 = vld [vmem:[%s3717_s0 + $0x38] sm:$0xff]  ;;  %v2751_v24 = vld [vmem:[%s3716_s1 + $0x700] ss:$8 sps:$4 sm:$0xff]  }
  0x89   :  { %1865 = vmatprep.subr.bf16.mxu0 %v2670_v25  ;;  %v2764_v25 = vld [vmem:[%s3716_s1 + $0x314] ss:$8 sps:$4 sm:$0xff]  }
  0x8b   :  { %1034 = vmatpush1.bf16.msra.mxu1 %v2665_v26  ;;  %v2160_v26 = vcombine.high %v3500_v22, %v3500_v22 }
  0x8c   :  { %1866 = vmatpush1.bf16.msra.mxu0 %v2668_v27  ;;  %1035 = vmatprep.subr.bf16.mxu1 %v2673_v28  ;;  %v2296_v27 = vcombine.high %v3505_v23, %v3505_v23  ;;  %v2759_v28 = vld [vmem:[%s3716_s1 + $0x710] ss:$8 sps:$4 sm:$0xff]  }
  0x8d   :  { %1867 = vmatprep.subr.bf16.mxu0 %v2676_v29  ;;  %v2762_v29 = vld [vmem:[%s3716_s1 + $0x310] ss:$8 sps:$4 sm:$0xff]  }
  0x8f   :  { %1036 = vmatpush1.bf16.msra.mxu1 %v2671_v30  ;;  %v2767_v30 = vld [vmem:[%s3716_s1 + $0x724] ss:$8 sps:$4 sm:$0xff]  }
  0x90   :  { %1868 = vmatpush1.bf16.msra.mxu0 %v2674_v31  ;;  %1037 = vmatprep.subr.bf16.mxu1 %v2679_v32  ;;  %v2770_v31 = vld [vmem:[%s3716_s1 + $0x324] ss:$8 sps:$4 sm:$0xff]   ;;  %v2765_v32 = vld [vmem:[%s3716_s1 + $0x720] ss:$8 sps:$4 sm:$0xff]  }
  0x91   :  { %1869 = vmatprep.subr.bf16.mxu0 %v2682_v33  ;;  %v2768_v33 = vld [vmem:[%s3716_s1 + $0x320] ss:$8 sps:$4 sm:$0xff]  }
  0x93   :  { %1038 = vmatpush1.bf16.msra.mxu1 %v2677_v34  ;;  %v2773_v34 = vld [vmem:[%s3716_s1 + $0x734] ss:$8 sps:$4 sm:$0xff]  }
  0x94   :  { %1870 = vmatpush1.bf16.msra.mxu0 %v2680_v35  ;;  %1039 = vmatprep.subr.bf16.mxu1 %v2685_v36  ;;  %v2776_v35 = vld [vmem:[%s3716_s1 + $0x334] ss:$8 sps:$4 sm:$0xff]   ;;  %v2771_v36 = vld [vmem:[%s3716_s1 + $0x730] ss:$8 sps:$4 sm:$0xff]  }
  0x95   :  { %1871 = vmatprep.subr.bf16.mxu0 %v2688_v37  ;;  %v2774_v37 = vld [vmem:[%s3716_s1 + $0x330] ss:$8 sps:$4 sm:$0xff]  }
  0x97   :  { %1040 = vmatpush1.bf16.msra.mxu1 %v2683_v38  ;;  %v2779_v38 = vld [vmem:[%s3716_s1 + $0x744] ss:$8 sps:$4 sm:$0xff]  }
  0x98   :  { %1872 = vmatpush1.bf16.msra.mxu0 %v2686_v39  ;;  %1041 = vmatprep.subr.bf16.mxu1 %v2691_v40  ;;  %v2782_v39 = vld [vmem:[%s3716_s1 + $0x344] ss:$8 sps:$4 sm:$0xff]   ;;  %v2777_v40 = vld [vmem:[%s3716_s1 + $0x740] ss:$8 sps:$4 sm:$0xff]  }
  0x99   :  { %1873 = vmatprep.subr.bf16.mxu0 %v2694_v41  ;;  %v2780_v41 = vld [vmem:[%s3716_s1 + $0x340] ss:$8 sps:$4 sm:$0xff]  }
  0x9b   :  { %1042 = vmatpush1.bf16.msra.mxu1 %v2689_v42  ;;  %v2785_v42 = vld [vmem:[%s3716_s1 + $0x754] ss:$8 sps:$4 sm:$0xff]  }
  0x9c   :  { %1874 = vmatpush1.bf16.msra.mxu0 %v2692_v43  ;;  %1043 = vmatprep.subr.bf16.mxu1 %v2697_v44  ;;  %v2788_v43 = vld [vmem:[%s3716_s1 + $0x354] ss:$8 sps:$4 sm:$0xff]   ;;  %v2783_v44 = vld [vmem:[%s3716_s1 + $0x750] ss:$8 sps:$4 sm:$0xff]  }
  0x9d   :  { %1875 = vmatprep.subr.bf16.mxu0 %v2700_v45  ;;  %v2786_v45 = vld [vmem:[%s3716_s1 + $0x350] ss:$8 sps:$4 sm:$0xff]  }
  0x9f   :  { %1044 = vmatpush1.bf16.msra.mxu1 %v2695_v46  ;;  %v2791_v46 = vld [vmem:[%s3716_s1 + $0x764] ss:$8 sps:$4 sm:$0xff]  }
  0xa0   :  { %1876 = vmatpush1.bf16.msra.mxu0 %v2698_v47  ;;  %1045 = vmatprep.subr.bf16.mxu1 %v2703_v48  ;;  %v2794_v47 = vld [vmem:[%s3716_s1 + $0x364] ss:$8 sps:$4 sm:$0xff]   ;;  %v2789_v48 = vld [vmem:[%s3716_s1 + $0x760] ss:$8 sps:$4 sm:$0xff]  }
  0xa1   :  { %1877 = vmatprep.subr.bf16.mxu0 %v2706_v49  ;;  %v2792_v49 = vld [vmem:[%s3716_s1 + $0x360] ss:$8 sps:$4 sm:$0xff]  }
  0xa3   :  { %1046 = vmatpush1.bf16.msra.mxu1 %v2701_v50  ;;  %v2797_v50 = vld [vmem:[%s3716_s1 + $0x774] ss:$8 sps:$4 sm:$0xff]  }
  0xa4   :  { %1878 = vmatpush1.bf16.msra.mxu0 %v2704_v51  ;;  %1047 = vmatprep.subr.bf16.mxu1 %v2709_v52  ;;  %v2800_v51 = vld [vmem:[%s3716_s1 + $0x374] ss:$8 sps:$4 sm:$0xff]   ;;  %v2795_v52 = vld [vmem:[%s3716_s1 + $0x770] ss:$8 sps:$4 sm:$0xff]  }
  0xa5   :  { %1879 = vmatprep.subr.bf16.mxu0 %v2712_v53  ;;  %v2798_v53 = vld [vmem:[%s3716_s1 + $0x370] ss:$8 sps:$4 sm:$0xff]  }
  0xa7   :  { %1048 = vmatpush1.bf16.msra.mxu1 %v2707_v54  ;;  %v2803_v54 = vld [vmem:[%s3716_s1 + $0x784] ss:$8 sps:$4 sm:$0xff]  }
  0xa8   :  { %1880 = vmatpush1.bf16.msra.mxu0 %v2710_v55  ;;  %1049 = vmatprep.subr.bf16.mxu1 %v2715_v56  ;;  %v2806_v55 = vld [vmem:[%s3716_s1 + $0x384] ss:$8 sps:$4 sm:$0xff]   ;;  %v2801_v56 = vld [vmem:[%s3716_s1 + $0x780] ss:$8 sps:$4 sm:$0xff]  }
  0xa9   :  { %1881 = vmatprep.subr.bf16.mxu0 %v2718_v57  ;;  %v2804_v57 = vld [vmem:[%s3716_s1 + $0x380] ss:$8 sps:$4 sm:$0xff]  }
  0xab   :  { %1050 = vmatpush1.bf16.msra.mxu1 %v2713_v58  ;;  %v2809_v58 = vld [vmem:[%s3716_s1 + $0x794] ss:$8 sps:$4 sm:$0xff]  }
  0xac   :  { %1882 = vmatpush1.bf16.msra.mxu0 %v2716_v59  ;;  %1051 = vmatprep.subr.bf16.mxu1 %v2721_v60  ;;  %v2812_v59 = vld [vmem:[%s3716_s1 + $0x394] ss:$8 sps:$4 sm:$0xff]   ;;  %v2807_v60 = vld [vmem:[%s3716_s1 + $0x790] ss:$8 sps:$4 sm:$0xff]  }
  0xad   :  { %1883 = vmatprep.subr.bf16.mxu0 %v2724_v61  ;;  %v2810_v61 = vld [vmem:[%s3716_s1 + $0x390] ss:$8 sps:$4 sm:$0xff]  }
  0xaf   :  { %1052 = vmatpush1.bf16.msra.mxu1 %v2719_v62  ;;  %v2815_v62 = vld [vmem:[%s3716_s1 + $0x7a4] ss:$8 sps:$4 sm:$0xff]  }
  0xb0   :  { %1884 = vmatpush1.bf16.msra.mxu0 %v2722_v63  ;;  %1053 = vmatprep.subr.bf16.mxu1 %v2727_v0  ;;  %v2818_v63 = vld [vmem:[%s3716_s1 + $0x3a4] ss:$8 sps:$4 sm:$0xff]   ;;  %v2813_v0 = vld [vmem:[%s3716_s1 + $0x7a0] ss:$8 sps:$4 sm:$0xff]  }
  0xb1   :  { %1885 = vmatprep.subr.bf16.mxu0 %v2730_v1  ;;  %v2816_v1 = vld [vmem:[%s3716_s1 + $0x3a0] ss:$8 sps:$4 sm:$0xff]  }
  0xb3   :  { %1054 = vmatpush1.bf16.msra.mxu1 %v2725_v2  ;;  %v2821_v2 = vld [vmem:[%s3716_s1 + $0x7b4] ss:$8 sps:$4 sm:$0xff]  }
  0xb4   :  { %1886 = vmatpush1.bf16.msra.mxu0 %v2728_v3  ;;  %1055 = vmatprep.subr.bf16.mxu1 %v2733_v4  ;;  %v2824_v3 = vld [vmem:[%s3716_s1 + $0x3b4] ss:$8 sps:$4 sm:$0xff]   ;;  %v2819_v4 = vld [vmem:[%s3716_s1 + $0x7b0] ss:$8 sps:$4 sm:$0xff]  }
  0xb5   :  { %1887 = vmatprep.subr.bf16.mxu0 %v2736_v5  ;;  %v2822_v5 = vld [vmem:[%s3716_s1 + $0x3b0] ss:$8 sps:$4 sm:$0xff]  }
  0xb7   :  { %1056 = vmatpush1.bf16.msra.mxu1 %v2731_v6  ;;  %v2827_v6 = vld [vmem:[%s3716_s1 + $0x7c4] ss:$8 sps:$4 sm:$0xff]  }
  0xb8   :  { %1888 = vmatpush1.bf16.msra.mxu0 %v2734_v7  ;;  %1057 = vmatprep.subr.bf16.mxu1 %v2739_v8  ;;  %v2830_v7 = vld [vmem:[%s3716_s1 + $0x3c4] ss:$8 sps:$4 sm:$0xff]   ;;  %v2825_v8 = vld [vmem:[%s3716_s1 + $0x7c0] ss:$8 sps:$4 sm:$0xff]  }
  0xb9   :  { %1889 = vmatprep.subr.bf16.mxu0 %v2742_v9  ;;  %v2828_v9 = vld [vmem:[%s3716_s1 + $0x3c0] ss:$8 sps:$4 sm:$0xff]  }
  0xbb   :  { %1058 = vmatpush1.bf16.msra.mxu1 %v2737_v10  ;;  %v2833_v10 = vld [vmem:[%s3716_s1 + $0x7d4] ss:$8 sps:$4 sm:$0xff]  }
  0xbc   :  { %1890 = vmatpush1.bf16.msra.mxu0 %v2740_v11  ;;  %1059 = vmatprep.subr.bf16.mxu1 %v2745_v12  ;;  %v2836_v11 = vld [vmem:[%s3716_s1 + $0x3d4] ss:$8 sps:$4 sm:$0xff]   ;;  %v2831_v12 = vld [vmem:[%s3716_s1 + $0x7d0] ss:$8 sps:$4 sm:$0xff]  }
  0xbd   :  { %1891 = vmatprep.subr.bf16.mxu0 %v2748_v13  ;;  %v2834_v13 = vld [vmem:[%s3716_s1 + $0x3d0] ss:$8 sps:$4 sm:$0xff]  }
  0xbf   :  { %1060 = vmatpush1.bf16.msra.mxu1 %v2743_v14  ;;  %v2839_v14 = vld [vmem:[%s3716_s1 + $0x7e4] ss:$8 sps:$4 sm:$0xff]  }
  0xc0   :  { %1892 = vmatpush1.bf16.msra.mxu0 %v2746_v15  ;;  %1070 = vmatprep.subr.bf16.mxu1 %v2753_v16  ;;  %v2842_v15 = vld [vmem:[%s3716_s1 + $0x3e4] ss:$8 sps:$4 sm:$0xff]   ;;  %v2837_v16 = vld [vmem:[%s3716_s1 + $0x7e0] ss:$8 sps:$4 sm:$0xff]  }
  0xc1   :  { %1902 = vmatprep.subr.bf16.mxu0 %v2758_v17  ;;  %v2840_v17 = vld [vmem:[%s3716_s1 + $0x3e0] ss:$8 sps:$4 sm:$0xff]  }
  0xc2   :  { %1062 = vmatmul.mubr.bf16.vlgmr.msra.gmra.mrb[0].mxu1 %v2157_v19  ;;  %v2845_v19 = vld [vmem:[%s3716_s1 + $0x7f4] ss:$8 sps:$4 sm:$0xff]  }
  0xc3   :  { %1894 = vmatmul.mubr.bf16.vlgmr.msra.gmra.mrb[0].mxu0 %v2293_v21  ;;  %1071 = vmatpush1.bf16.msra.mxu1 %v2751_v24  ;;  %v2848_v21 = vld [vmem:[%s3716_s1 + $0x3f4] ss:$8 sps:$4 sm:$0xff]   ;;  %v2843_v24 = vld [vmem:[%s3716_s1 + $0x7f0] ss:$8 sps:$4 sm:$0xff]  }
  0xc4   :  { %1903 = vmatpush1.bf16.msra.mxu0 %v2756_v18  ;;  %1072 = vmatprep.subr.bf16.mxu1 %v2761_v20  ;;  %v2846_v18 = vld [vmem:[%s3716_s1 + $0x3f0] ss:$8 sps:$4 sm:$0xff]   ;;  %v2159_v20 = vcombine.low %v3500_v22, %v3500_v22 }
  0xc5   :  { %1904 = vmatprep.subr.bf16.mxu0 %v2764_v25  ;;  %1102 = vmatprep.mubr.bf16.mxu1 %v2160_v26  ;;  %v2295_v25 = vcombine.low %v3505_v23, %v3505_v23 }
  0xc6   :  { %1934 = vmatprep.mubr.bf16.mxu0 %v2296_v27 }
  0xc7   :  { %1073 = vmatpush1.bf16.msra.mxu1 %v2759_v28 }
  0xc8   :  { %1905 = vmatpush1.bf16.msra.mxu0 %v2762_v29  ;;  %1074 = vmatprep.subr.bf16.mxu1 %v2767_v30 }
  0xc9   :  { %1906 = vmatprep.subr.bf16.mxu0 %v2770_v31 }
  0xcb   :  { %1075 = vmatpush1.bf16.msra.mxu1 %v2765_v32 }
  0xcc   :  { %1907 = vmatpush1.bf16.msra.mxu0 %v2768_v33  ;;  %1076 = vmatprep.subr.bf16.mxu1 %v2773_v34 }
  0xcd   :  { %1908 = vmatprep.subr.bf16.mxu0 %v2776_v35 }
  0xcf   :  { %1077 = vmatpush1.bf16.msra.mxu1 %v2771_v36  ;;  %v1993_v36 = vlaneseq }
  0xd0   :  { %1909 = vmatpush1.bf16.msra.mxu0 %v2774_v37  ;;  %1078 = vmatprep.subr.bf16.mxu1 %v2779_v38 }
  0xd1   :  { %1910 = vmatprep.subr.bf16.mxu0 %v2782_v39 }
  0xd3   :  { %1079 = vmatpush1.bf16.msra.mxu1 %v2777_v40 }
  0xd4   :  { %1911 = vmatpush1.bf16.msra.mxu0 %v2780_v41  ;;  %1080 = vmatprep.subr.bf16.mxu1 %v2785_v42 }
  0xd5   :  { %1912 = vmatprep.subr.bf16.mxu0 %v2788_v43 }
  0xd7   :  { %1081 = vmatpush1.bf16.msra.mxu1 %v2783_v44 }
  0xd8   :  { %1913 = vmatpush1.bf16.msra.mxu0 %v2786_v45  ;;  %1082 = vmatprep.subr.bf16.mxu1 %v2791_v46  ;;  %v1994_v46 = vshrl.u32 %v1993_v36, 7 }
  0xd9   :  { %1914 = vmatprep.subr.bf16.mxu0 %v2794_v47 }
  0xdb   :  { %1083 = vmatpush1.bf16.msra.mxu1 %v2789_v48 }
  0xdc   :  { %1915 = vmatpush1.bf16.msra.mxu0 %v2792_v49  ;;  %1084 = vmatprep.subr.bf16.mxu1 %v2797_v50 }
  0xdd   :  { %1916 = vmatprep.subr.bf16.mxu0 %v2800_v51 }
  0xdf   :  { %1085 = vmatpush1.bf16.msra.mxu1 %v2795_v52 }
  0xe0   :  { %1917 = vmatpush1.bf16.msra.mxu0 %v2798_v53  ;;  %1086 = vmatprep.subr.bf16.mxu1 %v2803_v54 }
  0xe1   :  { %1918 = vmatprep.subr.bf16.mxu0 %v2806_v55  ;;  %v1995_v55 = vsub.s32 0, %v1994_v46 }
  0xe3   :  { %1087 = vmatpush1.bf16.msra.mxu1 %v2801_v56 }
  0xe4   :  { %1919 = vmatpush1.bf16.msra.mxu0 %v2804_v57  ;;  %1088 = vmatprep.subr.bf16.mxu1 %v2809_v58 }
  0xe5   :  { %1920 = vmatprep.subr.bf16.mxu0 %v2812_v59 }
  0xe7   :  { %1089 = vmatpush1.bf16.msra.mxu1 %v2807_v60 }
  0xe8   :  { %1921 = vmatpush1.bf16.msra.mxu0 %v2810_v61  ;;  %1090 = vmatprep.subr.bf16.mxu1 %v2815_v62 }
  0xe9   :  { %1922 = vmatprep.subr.bf16.mxu0 %v2818_v63 }
  0xeb   :  { %1091 = vmatpush1.bf16.msra.mxu1 %v2813_v0 }
  0xec   :  { %1923 = vmatpush1.bf16.msra.mxu0 %v2816_v1  ;;  %1092 = vmatprep.subr.bf16.mxu1 %v2821_v2 }
  0xed   :  { %1924 = vmatprep.subr.bf16.mxu0 %v2824_v3 }
  0xef   :  { %1093 = vmatpush1.bf16.msra.mxu1 %v2819_v4 }
  0xf0   :  { %1925 = vmatpush1.bf16.msra.mxu0 %v2822_v5  ;;  %1094 = vmatprep.subr.bf16.mxu1 %v2827_v6 }
  0xf1   :  { %1926 = vmatprep.subr.bf16.mxu0 %v2830_v7 }
  0xf3   :  { %1095 = vmatpush1.bf16.msra.mxu1 %v2825_v8 }
  0xf4   :  { %1927 = vmatpush1.bf16.msra.mxu0 %v2828_v9  ;;  %1096 = vmatprep.subr.bf16.mxu1 %v2833_v10 }
  0xf5   :  { %1928 = vmatprep.subr.bf16.mxu0 %v2836_v11 }
  0xf7   :  { %1097 = vmatpush1.bf16.msra.mxu1 %v2831_v12 }
  0xf8   :  { %1929 = vmatpush1.bf16.msra.mxu0 %v2834_v13  ;;  %1098 = vmatprep.subr.bf16.mxu1 %v2839_v14 }
  0xf9   :  { %1930 = vmatprep.subr.bf16.mxu0 %v2842_v15 }
  0xfb   :  { %1099 = vmatpush1.bf16.msra.mxu1 %v2837_v16 }
  0xfc   :  { %1931 = vmatpush1.bf16.msra.mxu0 %v2840_v17  ;;  %1100 = vmatprep.subr.bf16.mxu1 %v2845_v19 }
  0xfd   :  { %1932 = vmatprep.subr.bf16.mxu0 %v2848_v21 }
  0xff   :  { %1101 = vmatpush1.bf16.msra.mxu1 %v2843_v24 }
 0x100   :  { %1933 = vmatpush1.bf16.msra.mxu0 %v2846_v18 }
 0x102   :  { %1103 = vmatmul.mubr.bf16.vlgmr.msra.gmra.mrb[0].mxu1 %v2159_v20 }
 0x103   :  { %1935 = vmatmul.mubr.bf16.vlgmr.msra.gmra.mrb[0].mxu0 %v2295_v25 }
 0x1d5   :  { %v1104_v26 = vpop.f32.mrb[0].mxu1 }
 0x1d6   :  { %v1936_v27 = vpop.f32.mrb[0].mxu0  ;;  %v1106_v29 = vpop.f32.mrb[1].mxu1 }
 0x1d7   :  { %v2427_v28 = vadd.f32 %v1936_v27, %v1104_v26  ;;  %v1938_v30 = vpop.f32.mrb[1].mxu0  ;;  %v1108_v32 = vpop.f32.mrb[2].mxu1 }
 0x1d8   :  { %v2428_v31 = vadd.f32 %v1938_v30, %v1106_v29  ;;  %v1940_v33 = vpop.f32.mrb[2].mxu0  ;;  %v1109_v37 = vpop.f32.mrb[3].mxu1 }
 0x1d9   :  { %v1967_v34 = vrot.slane %v2427_v28, 4  ;;  %v1979_v35 = vmul.f32 %v2427_v28, %v2427_v28  ;;  %v1941_v22 = vpop.f32.mrb[3].mxu0 }
 0x1da   :  { %v2426_v38 = vpack.c.bf16 %v2428_v31, %v2427_v28  ;;  %v1973_v39 = vrot.slane %v2428_v31, 4  ;;  %v1980_v23 = vmul.f32 %v2428_v31, %v2428_v31 }
 0x1db   :  { %v1968_v40 = vadd.f32 %v2427_v28, %v1967_v34  ;;  %v1981_v41 = vrot.slane %v1979_v35, 4 }
 0x1dc   :  { %1951 = vst [vmem:[%s3718_s2] sm:$0xff] %v2426_v38  ;;  %v1974_v42 = vadd.f32 %v2428_v31, %v1973_v39  ;;  %v1987_v43 = vrot.slane %v1980_v23, 4 }
 0x1dd   :  { %v1969_v44 = vrot.slane %v1968_v40, 2  ;;  %v1982_v45 = vadd.f32 %v1981_v41, %v1979_v35 }
 0x1de   :  { %v1975_v47 = vrot.slane %v1974_v42, 2  ;;  %v1988_v48 = vadd.f32 %v1987_v43, %v1980_v23 }
 0x1df   :  { %v1970_v49 = vadd.f32 %v1969_v44, %v1968_v40  ;;  %v1983_v50 = vrot.slane %v1982_v45, 2 }
 0x1e0   :  { %v1976_v51 = vadd.f32 %v1975_v47, %v1974_v42  ;;  %v1989_v52 = vrot.slane %v1988_v48, 2 }
 0x1e1   :  { %v1971_v53 = vrot.slane %v1970_v49, 1  ;;  %v1984_v54 = vadd.f32 %v1983_v50, %v1982_v45 }
 0x1e2   :  { %v1977_v56 = vrot.slane %v1976_v51, 1  ;;  %v1990_v57 = vadd.f32 %v1989_v52, %v1988_v48 }
 0x1e3   :  { %v1972_v58 = vadd.f32 %v1971_v53, %v1970_v49  ;;  %v1985_v59 = vrot.slane %v1984_v54, 1 }
 0x1e4   :  { %v1978_v60 = vadd.f32 %v1977_v56, %v1976_v51  ;;  %v1991_v61 = vrot.slane %v1990_v57, 1 }
 0x1e5   :  { %v1986_v62 = vadd.f32 %v1985_v59, %v1984_v54  ;;  %v1996_v63 = vrot.slane %v1972_v58, %v1995_v55 }
 0x1e6   :  { %v1992_v0 = vadd.f32 %v1991_v61, %v1990_v57  ;;  %v2000_v1 = vrot.slane %v1978_v60, %v1995_v55 }
 0x1e7   :  { %v2004_v2 = vrot.slane %v1986_v62, %v1995_v55  ;;  %2009 = vst [vmem:[%s3719_s3] sm:$0xff] %v1996_v63 }
 0x1e8   :  { %v2008_v3 = vrot.slane %v1992_v0, %v1995_v55  ;;  %2010 = vst [vmem:[%s3719_s3 + $0x8] sm:$0xff] %v2000_v1 }
 0x1e9   :  { %2011 = vst [vmem:[%s3719_s3 + $0x10] sm:$0xff] %v2004_v2 }
 0x1ea   :  { %2012 = vst [vmem:[%s3719_s3 + $0x18] sm:$0xff] %v2008_v3 }

</bundles_post_ra>
